<compile_context>
chip_gen: v7x
topology: tpu7x:2x2x1
jax: 0.10.0
libtpu: 0.0.40
codegen_flags: <defaults>
</compile_context>

<pallas_src>
import jax
import jax.numpy as jnp
from jax import lax
from jax.experimental import pallas as pl
from jax.experimental.pallas import tpu as pltpu


def _round_up(n, m):
    return (n + m - 1) // m * m


def _pick_block_m(batch):
    """MXU-row-aligned batch tile.

    * cap 512 on v6e/v7x (amortizes the ~0.35us per-grid-step overhead),
      256 on v5e where the binding slot is the single vst port.
    * for batch > 128, guarantee >= 2 grid steps so the "parallel" grid axis
      can be sharded across both v7x TensorCores.
    """
    cap = 512
    try:
        kind = jax.devices()[0].device_kind.lower()
        if "v5 lite" in kind or "v5e" in kind or "v5litepod" in kind:
            cap = 256
    except Exception:
        pass
    if batch <= 128:
        return 128
    half = _round_up((batch + 1) // 2, 128)
    return max(128, min(cap, half))


def _make_mlp_kernel(n_sub, sub_m, q, qp):
    """Fused 3-layer MLP over one (n_sub*sub_m, q) batch tile."""

    def mlp_kernel(x_ref, w1_ref, b1_ref, w2_ref, b2_ref, w3_ref, b3_ref,
                   o_ref, xpad_ref):
        # Keep the K-padding lanes of the bf16 staging buffer exactly zero.
        # Done every grid step (not just step 0) so it stays correct when the
        # "parallel" axis is sharded across TensorCores with per-core scratch.
        if qp > q:
            pad_from = (q // 128) * 128  # aligned lane-tile boundary
            xpad_ref[:, pad_from:] = jnp.zeros(
                (xpad_ref.shape[0], qp - pad_from), jnp.bfloat16)

        # Hoist small bias loads out of the sub-tile loop.
        b1 = b1_ref[...]
        b2 = b2_ref[...]
        b3 = b3_ref[...]

        def body(j, carry):
            r0 = pl.multiple_of(j * sub_m, sub_m)
            rows = pl.ds(r0, sub_m)
            # In-kernel f32 -> bf16 cast + lane-aligned K staging (replaces the
            # wrapper-side pad/cast HBM round trip). Padding lanes stay zero.
            xpad_ref[rows, :q] = x_ref[rows, :].astype(jnp.bfloat16)
            xc = xpad_ref[rows, :]
            h1 = jnp.dot(xc, w1_ref[...], preferred_element_type=jnp.float32)
            h1 = jnp.maximum(h1 + b1, 0.0).astype(jnp.bfloat16)      # ReLU(layer1)
            h2 = jnp.dot(h1, w2_ref[...], preferred_element_type=jnp.float32)
            h2 = jnp.maximum(h2 + b2, 0.0).astype(jnp.bfloat16)      # ReLU(layer2)
            out = jnp.dot(h2, w3_ref[...], preferred_element_type=jnp.float32)
            o_ref[rows, :] = (out + b3).astype(o_ref.dtype)
            return carry

        # Sub-tiling over M: shrinks the live h1/h2 working set and lets the
        # LLO scheduler overlap one chunk's VPU epilogue with the next chunk's
        # MXU work.
        lax.fori_loop(0, n_sub, body, 0, unroll=True)

    return mlp_kernel


@jax.jit
def classifier_mutagenicity_forward(x, params):
    """x: (B, queryset_size) float32. Returns (B, 2) float32 logits."""
    w1, b1, w2, b2, w3, b3 = params
    B, Q = x.shape
    Qp = w1.shape[0]          # padded queryset_size (K of layer 1)
    Hp = w1.shape[1]          # padded hidden (1024)
    Op = w3.shape[1]          # padded output (128)

    block_m = _pick_block_m(B)
    sub_m = min(block_m, 128)
    n_sub = block_m // sub_m
    n_tiles = pl.cdiv(B, block_m)
    Bp = n_tiles * block_m

    # Grid-invariant operands (weights/biases) only ever need one VMEM buffer.
    resident = dict(pipeline_mode=pl.Buffered(1))

    weight_bytes = sum(int(p.size) * p.dtype.itemsize
                       for p in (w1, b1, w2, b2, w3, b3))
    vmem_bytes = (
        weight_bytes                       # single-buffered resident weights/biases
        + 2 * block_m * Q * 4              # double-buffered f32 x tile
        + block_m * Qp * 2                 # bf16 staging scratch
        + 2 * block_m * Op * 4             # double-buffered f32 out tile
        + 2 * sub_m * Hp * (4 + 2)         # live h1/h2 intermediates (f32 + bf16)
    )
    # Generation-aware cap: v7x only has 64 MiB physical VMEM per TensorCore.
    vmem_limit = min(max(vmem_bytes + (8 << 20), 16 << 20), 48 << 20)

    cost = pl.CostEstimate(
        flops=2 * Bp * (Qp * Hp + Hp * Hp + Hp * Op),
        transcendentals=0,
        bytes_accessed=weight_bytes + B * Q * 4 + Bp * Op * 4,
    )

    kernel = _make_mlp_kernel(n_sub, sub_m, Q, Qp)

    out_p = pl.pallas_call(
        kernel,
        out_shape=jax.ShapeDtypeStruct((Bp, Op), jnp.float32),
        grid_spec=pltpu.PrefetchScalarGridSpec(
            num_scalar_prefetch=0,
            grid=(n_tiles,),
            in_specs=[
                pl.BlockSpec((block_m, Q), lambda i: (i, 0)),           # x tile (f32)
                pl.BlockSpec((Qp, Hp), lambda i: (0, 0), **resident),   # W1
                pl.BlockSpec((1, Hp), lambda i: (0, 0), **resident),    # b1
                pl.BlockSpec((Hp, Hp), lambda i: (0, 0), **resident),   # W2
                pl.BlockSpec((1, Hp), lambda i: (0, 0), **resident),    # b2
                pl.BlockSpec((Hp, Op), lambda i: (0, 0), **resident),   # W3
                pl.BlockSpec((1, Op), lambda i: (0, 0), **resident),    # b3
            ],
            out_specs=pl.BlockSpec((block_m, Op), lambda i: (i, 0)),
            scratch_shapes=[pltpu.VMEM((block_m, Qp), jnp.bfloat16)],   # x staging
        ),
        compiler_params=pltpu.CompilerParams(
            dimension_semantics=("parallel",),
            vmem_limit_bytes=int(vmem_limit),
        ),
        cost_estimate=cost,
    )(x, w1, b1, w2, b2, w3, b3)

    # Slice away padding: true batch and true output_dim=2.
    return out_p[:B, :2]


def init_params(key, queryset_size, hidden=1000, output_dim=2):
    """PyTorch-style init (uniform +/- 1/sqrt(fan_in)), stored as (in, out),
    zero-padded to lane-aligned shapes; weights cast to bf16, biases kept f32."""
    Qp = _round_up(queryset_size, 128)
    Hp = _round_up(hidden, 128)       # 1000 -> 1024
    Op = _round_up(output_dim, 128)   # 2 -> 128

    keys = jax.random.split(key, 6)

    def linear(kw, kb, fan_in, fan_out, pad_in, pad_out):
        bound = 1.0 / jnp.sqrt(float(fan_in))
        w = jax.random.uniform(kw, (fan_in, fan_out), jnp.float32, -bound, bound)
        b = jax.random.uniform(kb, (fan_out,), jnp.float32, -bound, bound)
        w_p = jnp.zeros((pad_in, pad_out), jnp.float32).at[:fan_in, :fan_out].set(w)
        b_p = jnp.zeros((1, pad_out), jnp.float32).at[0, :fan_out].set(b)
        return w_p.astype(jnp.bfloat16), b_p, w, b

    w1p, b1p, w1, b1 = linear(keys[0], keys[1], queryset_size, hidden, Qp, Hp)
    w2p, b2p, w2, b2 = linear(keys[2], keys[3], hidden, hidden, Hp, Hp)
    w3p, b3p, w3, b3 = linear(keys[4], keys[5], hidden, output_dim, Hp, Op)

    padded = (w1p, b1p, w2p, b2p, w3p, b3p)
    unpadded = (w1, b1, w2, b2, w3, b3)
    return padded, unpadded


def reference_forward(x, unpadded_params):
    """Pure-JAX f32 reference mirroring the PyTorch forward."""
    w1, b1, w2, b2, w3, b3 = unpadded_params
    h = jnp.maximum(x @ w1 + b1, 0.0)
    h = jnp.maximum(h @ w2 + b2, 0.0)
    return h @ w3 + b3


if __name__ == "__main__":
    queryset_size = 200   # small synthetic queryset size
    batch = 2

    key = jax.random.PRNGKey(0)
    kx, kp = jax.random.split(key)
    x = jax.random.normal(kx, (batch, queryset_size), dtype=jnp.float32)

    padded_params, unpadded_params = init_params(kp, queryset_size)

    out = classifier_mutagenicity_forward(x, padded_params)
    out = jax.block_until_ready(out)

    ref = reference_forward(x, unpadded_params)
    assert out.shape == (batch, 2), out.shape
    # bf16 weights/activations (f32 accumulation) -> loosened tolerance vs f32 ref.
    assert jnp.allclose(out, ref, atol=7.5e-2, rtol=7.5e-2), (out, ref)

    print("KERNEL_OK")
</pallas_src>

<mosaic_0001>
module attributes {stable_mosaic.version = 11 : i64} {
  func.func @mlp_kernel(%arg0: i32, %arg1: memref<128x200xf32, #tpu.memory_space<vmem>>, %arg2: memref<256x1024xbf16, #tpu.memory_space<vmem>>, %arg3: memref<1x1024xf32, #tpu.memory_space<vmem>>, %arg4: memref<1024x1024xbf16, #tpu.memory_space<vmem>>, %arg5: memref<1x1024xf32, #tpu.memory_space<vmem>>, %arg6: memref<1024x128xbf16, #tpu.memory_space<vmem>>, %arg7: memref<1x128xf32, #tpu.memory_space<vmem>>, %arg8: memref<128x128xf32, #tpu.memory_space<vmem>>, %arg9: memref<128x256xbf16, #tpu.memory_space<vmem>>) attributes {dimension_semantics = [#tpu.dimension_semantics<parallel>], iteration_bounds = array<i64: 1>, scalar_prefetch = 0 : i64, scratch_operands = 1 : i64, tpu.core_type = #tpu.core_type<tc>, window_params = [{transform_indices = @transform_0, window_bounds = array<i64: 128, 200>}, {pipeline_mode = #tpu.pipeline_mode<synchronous>, transform_indices = @transform_1, window_bounds = array<i64: 256, 1024>}, {pipeline_mode = #tpu.pipeline_mode<synchronous>, transform_indices = @transform_2, window_bounds = array<i64: 1, 1024>}, {pipeline_mode = #tpu.pipeline_mode<synchronous>, transform_indices = @transform_3, window_bounds = array<i64: 1024, 1024>}, {pipeline_mode = #tpu.pipeline_mode<synchronous>, transform_indices = @transform_4, window_bounds = array<i64: 1, 1024>}, {pipeline_mode = #tpu.pipeline_mode<synchronous>, transform_indices = @transform_5, window_bounds = array<i64: 1024, 128>}, {pipeline_mode = #tpu.pipeline_mode<synchronous>, transform_indices = @transform_6, window_bounds = array<i64: 1, 128>}, {transform_indices = @transform_7, window_bounds = array<i64: 128, 128>}]} {
    %cst = arith.constant 0.000000e+00 : bf16
    %0 = vector.broadcast %cst : bf16 to vector<128x128xbf16>
    %c0 = arith.constant 0 : index
    %c128 = arith.constant 128 : index
    %1 = vector.load %arg9[%c0, %c128] : memref<128x256xbf16, #tpu.memory_space<vmem>>, vector<128x128xbf16>
    tpu.vector_store %arg9[%c0, %c128], %0 {strides = array<i32>} : memref<128x256xbf16, #tpu.memory_space<vmem>>, vector<128x128xbf16>,
    %c0_0 = arith.constant 0 : index
    %c0_1 = arith.constant 0 : index
    %2 = vector.load %arg3[%c0_0, %c0_1] : memref<1x1024xf32, #tpu.memory_space<vmem>>, vector<1x1024xf32>
    %c0_2 = arith.constant 0 : index
    %c0_3 = arith.constant 0 : index
    %3 = vector.load %arg5[%c0_2, %c0_3] : memref<1x1024xf32, #tpu.memory_space<vmem>>, vector<1x1024xf32>
    %c0_4 = arith.constant 0 : index
    %c0_5 = arith.constant 0 : index
    %4 = vector.load %arg7[%c0_4, %c0_5] : memref<1x128xf32, #tpu.memory_space<vmem>>, vector<1x128xf32>
    %c0_i32 = arith.constant 0 : i32
    %c128_i32 = arith.constant 128 : i32
    %5 = arith.muli %c0_i32, %c128_i32 : i32
    %6 = tpu.assume_multiple %5, 128 : i32
    %7 = arith.index_cast %6 : i32 to index
    %c0_6 = arith.constant 0 : index
    %8 = vector.load %arg1[%7, %c0_6] : memref<128x200xf32, #tpu.memory_space<vmem>>, vector<128x200xf32>
    %9 = arith.truncf %8 : vector<128x200xf32> to vector<128x200xbf16>
    %10 = arith.index_cast %6 : i32 to index
    %c0_7 = arith.constant 0 : index
    %11 = vector.load %arg9[%10, %c0_7] : memref<128x256xbf16, #tpu.memory_space<vmem>>, vector<128x200xbf16>
    tpu.vector_store %arg9[%10, %c0_7], %9 {strides = array<i32>} : memref<128x256xbf16, #tpu.memory_space<vmem>>, vector<128x200xbf16>,
    %12 = arith.index_cast %6 : i32 to index
    %c0_8 = arith.constant 0 : index
    %13 = vector.load %arg9[%12, %c0_8] : memref<128x256xbf16, #tpu.memory_space<vmem>>, vector<128x256xbf16>
    %c0_9 = arith.constant 0 : index
    %c0_10 = arith.constant 0 : index
    %14 = vector.load %arg2[%c0_9, %c0_10] : memref<256x1024xbf16, #tpu.memory_space<vmem>>, vector<256x1024xbf16>
    %cst_11 = arith.constant dense<0.000000e+00> : vector<128x1024xf32>
    %15 = tpu.matmul %13, %14, %cst_11 {dimension_numbers = #tpu.dot_dimension_numbers<[1], [0], [0], [1], [0, 0, 1, 1], [], []>} : vector<128x256xbf16>, vector<256x1024xbf16>, vector<128x1024xf32> -> vector<128x1024xf32>
    %16 = vector.broadcast %2 : vector<1x1024xf32> to vector<128x1024xf32>
    %17 = arith.addf %15, %16 : vector<128x1024xf32>
    %cst_12 = arith.constant 0.000000e+00 : f32
    %18 = vector.broadcast %cst_12 : f32 to vector<128x1024xf32>
    %19 = arith.maximumf %17, %18 : vector<128x1024xf32>
    %20 = arith.truncf %19 : vector<128x1024xf32> to vector<128x1024xbf16>
    %c0_13 = arith.constant 0 : index
    %c0_14 = arith.constant 0 : index
    %21 = vector.load %arg4[%c0_13, %c0_14] : memref<1024x1024xbf16, #tpu.memory_space<vmem>>, vector<1024x1024xbf16>
    %cst_15 = arith.constant dense<0.000000e+00> : vector<128x1024xf32>
    %22 = tpu.matmul %20, %21, %cst_15 {dimension_numbers = #tpu.dot_dimension_numbers<[1], [0], [0], [1], [0, 0, 1, 1], [], []>} : vector<128x1024xbf16>, vector<1024x1024xbf16>, vector<128x1024xf32> -> vector<128x1024xf32>
    %23 = vector.broadcast %3 : vector<1x1024xf32> to vector<128x1024xf32>
    %24 = arith.addf %22, %23 : vector<128x1024xf32>
    %cst_16 = arith.constant 0.000000e+00 : f32
    %25 = vector.broadcast %cst_16 : f32 to vector<128x1024xf32>
    %26 = arith.maximumf %24, %25 : vector<128x1024xf32>
    %27 = arith.truncf %26 : vector<128x1024xf32> to vector<128x1024xbf16>
    %c0_17 = arith.constant 0 : index
    %c0_18 = arith.constant 0 : index
    %28 = vector.load %arg6[%c0_17, %c0_18] : memref<1024x128xbf16, #tpu.memory_space<vmem>>, vector<1024x128xbf16>
    %cst_19 = arith.constant dense<0.000000e+00> : vector<128x128xf32>
    %29 = tpu.matmul %27, %28, %cst_19 {dimension_numbers = #tpu.dot_dimension_numbers<[1], [0], [0], [1], [0, 0, 1, 1], [], []>} : vector<128x1024xbf16>, vector<1024x128xbf16>, vector<128x128xf32> -> vector<128x128xf32>
    %30 = vector.broadcast %4 : vector<1x128xf32> to vector<128x128xf32>
    %31 = arith.addf %29, %30 : vector<128x128xf32>
    %32 = arith.index_cast %6 : i32 to index
    %c0_20 = arith.constant 0 : index
    %33 = vector.load %arg8[%32, %c0_20] : memref<128x128xf32, #tpu.memory_space<vmem>>, vector<128x128xf32>
    tpu.vector_store %arg8[%32, %c0_20], %31 {strides = array<i32>} : memref<128x128xf32, #tpu.memory_space<vmem>>, vector<128x128xf32>,
    %c1_i32 = arith.constant 1 : i32
    return
  }
  func.func @transform_0(%arg0: i32) -> (i32, i32) {
    %c0_i32 = arith.constant 0 : i32
    %c0_i32_0 = arith.constant 0 : i32
    return %arg0, %c0_i32 : i32, i32
  }
  func.func @transform_1(%arg0: i32) -> (i32, i32) {
    %c0_i32 = arith.constant 0 : i32
    %c0_i32_0 = arith.constant 0 : i32
    %c0_i32_1 = arith.constant 0 : i32
    return %c0_i32, %c0_i32_0 : i32, i32
  }
  func.func @transform_2(%arg0: i32) -> (i32, i32) {
    %c0_i32 = arith.constant 0 : i32
    %c0_i32_0 = arith.constant 0 : i32
    %c0_i32_1 = arith.constant 0 : i32
    return %c0_i32, %c0_i32_0 : i32, i32
  }
  func.func @transform_3(%arg0: i32) -> (i32, i32) {
    %c0_i32 = arith.constant 0 : i32
    %c0_i32_0 = arith.constant 0 : i32
    %c0_i32_1 = arith.constant 0 : i32
    return %c0_i32, %c0_i32_0 : i32, i32
  }
  func.func @transform_4(%arg0: i32) -> (i32, i32) {
    %c0_i32 = arith.constant 0 : i32
    %c0_i32_0 = arith.constant 0 : i32
    %c0_i32_1 = arith.constant 0 : i32
    return %c0_i32, %c0_i32_0 : i32, i32
  }
  func.func @transform_5(%arg0: i32) -> (i32, i32) {
    %c0_i32 = arith.constant 0 : i32
    %c0_i32_0 = arith.constant 0 : i32
    %c0_i32_1 = arith.constant 0 : i32
    return %c0_i32, %c0_i32_0 : i32, i32
  }
  func.func @transform_6(%arg0: i32) -> (i32, i32) {
    %c0_i32 = arith.constant 0 : i32
    %c0_i32_0 = arith.constant 0 : i32
    %c0_i32_1 = arith.constant 0 : i32
    return %c0_i32, %c0_i32_0 : i32, i32
  }
  func.func @transform_7(%arg0: i32) -> (i32, i32) {
    %c0_i32 = arith.constant 0 : i32
    %c0_i32_0 = arith.constant 0 : i32
    return %arg0, %c0_i32 : i32, i32
  }
}

</mosaic_0001>

<bundles_post_ra>
// kernel: classifier_mutagenicity_forward.1
= control target key start
LH: loop header
LB: loop body
LE: loop exit
PB: predicated region body
PF: predicated region fallthrough
CT: control target
= control target key end

     0   :  { %12 = vsyncpa [#allocation4], 0  ;;  %s11658_s0 = inlined_call_operand.hbm [shape: f32[2,200], index: 0, kind: input, shape index: {}]   ;;  %s11659_s1 = inlined_call_operand.hbm [shape: bf16[256,1024], index: 1, kind: input, shape index: {}]   ;;  %s11660_s2 = inlined_call_operand.hbm [shape: f32[1,1024], index: 2, kind: input, shape index: {}]   ;;  %s11661_s3 = inlined_call_operand.hbm [shape: bf16[1024,1024], index: 3, kind: input, shape index: {}]   ;;  %s11662_s4 = inlined_call_operand.hbm [shape: f32[1,1024], index: 4, kind: input, shape index: {}]   ;;  %s11663_s5 = inlined_call_operand.hbm [shape: bf16[1024,128], index: 5, kind: input, shape index: {}]   ;;  %s11664_s6 = inlined_call_operand.hbm [shape: f32[1,128], index: 6, kind: input, shape index: {}]   ;;  %s11665_s7 = inlined_call_operand.vmem [shape: f32[128,128], index: 7, kind: output, shape index: {}]  }
   0x1   :  { %13 = vsyncpa [#allocation6], 0 }
   0x2   :  { %14 = vsyncpa [#allocation9], 0 }
   0x3   :  { %15 = vsyncpa [#allocation12], 0 }
   0x4   :  { %20 = vsyncadd [#allocation4], 4032  ;;  %s9912_s24 = smov [#allocation5]   ;;  %s9750_s28 = scalar_lea.hbm %s11659_s1, 16384 }
   0x5   :  { %s33_s25 = sshll.u32 %s9912_s24, 4  ;;  %p9751_p0 = scmp.ne.s32.totalorder %s11659_s1, %s9750_s28  ;;  %s34_s25 = int_to_ptr.vmem [resolvable:$true] %s33_s25 }
   0x6   :  { %p9754_p1 = scmp.lt.u32.totalorder %s9750_s28, %s11659_s1 }
   0x8   :  { %p9756_p2 = pnand %p9754_p1, %p9751_p0 }
   0xa   :  { %9759 = shalt.err (!%p9756_p2)
}
   0xb   :  { %s9760_s10 = scalar_lea.vmem %s34_s25, 16384  ;;  %p9765_p4 = scmp.lt.s32.totalorder %s34_s25, %s34_s25 }
   0xc   :  { %p9761_p3 = scmp.ne.s32.totalorder %s34_s25, %s9760_s10  ;;  %p9766_p5 = scmp.lt.s32.totalorder %s9760_s10, %s9760_s10 }
   0xe   :  { %p9767_p6 = por %p9766_p5, %p9765_p4 }
  0x10   :  { %p9768_p7 = pnand %p9767_p6, %p9761_p3 }
  0x12   :  { %9771 = shalt.err (!%p9768_p7)
}
  0x13   :  { %s9913_s11 = smov 512   ;;  %s9914_s12 = smov 32  }
  0x14   :  { %39 = dma.hbm_to_vmem [thread:$0]  %s11659_s1, 16384, %s34_s25, [#allocation6], %s9913_s11, %s9913_s11, %s9914_s12  }
  0x15   :  { %s9915_s15 = smov [#allocation8]   ;;  %s9772_s19 = scalar_lea.hbm %s11661_s3, 65536 }
  0x16   :  { %s55_s16 = sshll.u32 %s9915_s15, 4  ;;  %p9773_p8 = scmp.ne.s32.totalorder %s11661_s3, %s9772_s19  ;;  %s56_s16 = int_to_ptr.vmem [resolvable:$true] %s55_s16 }
  0x17   :  { %p9776_p9 = scmp.lt.u32.totalorder %s9772_s19, %s11661_s3 }
  0x19   :  { %p9778_p10 = pnand %p9776_p9, %p9773_p8 }
  0x1b   :  { %9781 = shalt.err (!%p9778_p10)
}
  0x1c   :  { %s9782_s24 = scalar_lea.vmem %s56_s16, 65536  ;;  %p9787_p12 = scmp.lt.s32.totalorder %s56_s16, %s56_s16 }
  0x1d   :  { %p9783_p11 = scmp.ne.s32.totalorder %s56_s16, %s9782_s24  ;;  %p9788_p13 = scmp.lt.s32.totalorder %s9782_s24, %s9782_s24 }
  0x1f   :  { %p9789_p0 = por %p9788_p13, %p9787_p12 }
  0x21   :  { %p9790_p1 = pnand %p9789_p0, %p9783_p11 }
  0x23   :  { %9793 = shalt.err (!%p9790_p1)
}
  0x24   :  { %61 = dma.hbm_to_vmem [thread:$0]  %s11661_s3, 65536, %s56_s16, [#allocation9], %s9913_s11, %s9913_s11, %s9914_s12  }
  0x25   :  { %s9916_s26 = smov [#allocation11]   ;;  %s9917_s28 = smov [#allocation3]  }
  0x26   :  { %s77_s27 = sshll.u32 %s9916_s26, 4  ;;  %s21_s29 = sshll.u32 %s9917_s28, 4  ;;  %s78_s27 = int_to_ptr.vmem [resolvable:$true] %s77_s27  ;;  %s9988_s29 = int_to_ptr.vmem [resolvable:$true] %s21_s29 }
  0x27   :  { %s9794_s9 = scalar_lea.hbm %s11663_s5, 8192 }
  0x28   :  { %p9795_p2 = scmp.ne.s32.totalorder %s11663_s5, %s9794_s9  ;;  %p9798_p3 = scmp.lt.u32.totalorder %s9794_s9, %s11663_s5 }
  0x2a   :  { %p9800_p4 = pnand %p9798_p3, %p9795_p2 }
  0x2c   :  { %9803 = shalt.err (!%p9800_p4)
}
  0x2d   :  { %s9804_s3 = scalar_lea.vmem %s78_s27, 8192  ;;  %p9809_p6 = scmp.lt.s32.totalorder %s78_s27, %s78_s27 }
  0x2e   :  { %p9805_p5 = scmp.ne.s32.totalorder %s78_s27, %s9804_s3  ;;  %p9810_p7 = scmp.lt.s32.totalorder %s9804_s3, %s9804_s3 }
  0x30   :  { %p9811_p8 = por %p9810_p7, %p9809_p6 }
  0x32   :  { %p9812_p9 = pnand %p9811_p8, %p9805_p5 }
  0x34   :  { %9815 = shalt.err (!%p9812_p9)
}
  0x35   :  { %s9918_s11 = smov 64   ;;  %s9919_s12 = smov 4  }
  0x36   :  { %83 = dma.hbm_to_vmem [thread:$0]  %s11663_s5, 8192, %s78_s27, [#allocation12], %s9918_s11, %s9918_s11, %s9919_s12  }
  0x37   :  { %s9816_s20 = scalar_lea.hbm %s11658_s0, 64 }
  0x38   :  { %p9817_p10 = scmp.ne.s32.totalorder %s11658_s0, %s9816_s20  ;;  %p9820_p11 = scmp.lt.u32.totalorder %s9816_s20, %s11658_s0 }
  0x3a   :  { %p9822_p12 = pnand %p9820_p11, %p9817_p10 }
  0x3c   :  { %9825 = shalt.err (!%p9822_p12)
}
  0x3d   :  { %s9826_s1 = scalar_lea.vmem %s9988_s29, 64  ;;  %s9830_s5 = scalar_lea.vmem %s9988_s29, 4096 }
  0x3e   :  { %p9827_p13 = scmp.ne.s32.totalorder %s9988_s29, %s9826_s1  ;;  %p9831_p0 = scmp.lt.s32.totalorder %s9988_s29, %s9988_s29 }
  0x3f   :  { %p9832_p1 = scmp.lt.s32.totalorder %s9830_s5, %s9826_s1 }
  0x41   :  { %p9833_p2 = por %p9832_p1, %p9831_p0 }
  0x43   :  { %p9834_p3 = pnand %p9833_p2, %p9827_p13 }
  0x45   :  { %9837 = shalt.err (!%p9834_p3)
}
  0x46   :  { %27 = dma.hbm_to_vmem [thread:$0]  %s11658_s0, 64, %s9988_s29, [#allocation4], %s9918_s11, %s9918_s11, %s9919_s12  }
  0x47   :  { %s9920_s27 = smov [#allocation7]   ;;  %s9921_s30 = smov [#allocation10]  }
  0x48   :  { %s46_s28 = sshll.u32 %s9920_s27, 4  ;;  %s68_s8 = sshll.u32 %s9921_s30, 4  ;;  %s47_s28 = int_to_ptr.vmem [resolvable:$true] %s46_s28  ;;  %s69_s8 = int_to_ptr.vmem [resolvable:$true] %s68_s8 }
  0x49   :  { %s9838_s13 = scalar_lea.hbm %s11660_s2, 128 }
  0x4a   :  { %p9839_p4 = scmp.ne.s32.totalorder %s11660_s2, %s9838_s13  ;;  %p9842_p5 = scmp.lt.u32.totalorder %s9838_s13, %s11660_s2 }
  0x4c   :  { %p9844_p6 = pnand %p9842_p5, %p9839_p4 }
  0x4e   :  { %9847 = shalt.err (!%p9844_p6)
}
  0x4f   :  { %s9848_s0 = scalar_lea.vmem %s47_s28, 128  ;;  %p9853_p8 = scmp.lt.s32.totalorder %s47_s28, %s47_s28 }
  0x50   :  { %p9849_p7 = scmp.ne.s32.totalorder %s47_s28, %s9848_s0  ;;  %p9854_p9 = scmp.lt.s32.totalorder %s9848_s0, %s9848_s0 }
  0x52   :  { %p9855_p10 = por %p9854_p9, %p9853_p8 }
  0x54   :  { %p9856_p11 = pnand %p9855_p10, %p9849_p7 }
  0x56   :  { %9859 = shalt.err (!%p9856_p11)
}
  0x57   :  { %49 = dma.hbm_to_vmem [thread:$0]  %s11660_s2, 128, %s47_s28, [#allocation6]  }
  0x58   :  { %s9860_s18 = scalar_lea.hbm %s11662_s4, 128 }
  0x59   :  { %p9861_p12 = scmp.ne.s32.totalorder %s11662_s4, %s9860_s18  ;;  %p9864_p13 = scmp.lt.u32.totalorder %s9860_s18, %s11662_s4 }
  0x5b   :  { %p9866_p0 = pnand %p9864_p13, %p9861_p12 }
  0x5d   :  { %9869 = shalt.err (!%p9866_p0)
}
  0x5e   :  { %s9870_s23 = scalar_lea.vmem %s69_s8, 128  ;;  %p9875_p2 = scmp.lt.s32.totalorder %s69_s8, %s69_s8 }
  0x5f   :  { %p9871_p1 = scmp.ne.s32.totalorder %s69_s8, %s9870_s23  ;;  %p9876_p3 = scmp.lt.s32.totalorder %s9870_s23, %s9870_s23 }
  0x61   :  { %p9877_p4 = por %p9876_p3, %p9875_p2 }
  0x63   :  { %p9878_p5 = pnand %p9877_p4, %p9871_p1 }
  0x65   :  { %9881 = shalt.err (!%p9878_p5)
}
  0x66   :  { %71 = dma.hbm_to_vmem [thread:$0]  %s11662_s4, 128, %s69_s8, [#allocation9]  }
  0x67   :  { %s9922_s1 = smov [#allocation13]   ;;  %s9882_s27 = scalar_lea.hbm %s11664_s6, 16 }
  0x68   :  { %s90_s5 = sshll.u32 %s9922_s1, 4  ;;  %p9883_p6 = scmp.ne.s32.totalorder %s11664_s6, %s9882_s27  ;;  %s91_s5 = int_to_ptr.vmem [resolvable:$true] %s90_s5 }
  0x69   :  { %p9886_p7 = scmp.lt.u32.totalorder %s9882_s27, %s11664_s6 }
  0x6b   :  { %p9888_p8 = pnand %p9886_p7, %p9883_p6 }
  0x6d   :  { %9891 = shalt.err (!%p9888_p8)
}
  0x6e   :  { %s9892_s13 = scalar_lea.vmem %s91_s5, 16  ;;  %s9896_s4 = scalar_lea.vmem %s91_s5, 32 }
  0x6f   :  { %p9893_p9 = scmp.ne.s32.totalorder %s91_s5, %s9892_s13  ;;  %p9897_p10 = scmp.lt.s32.totalorder %s91_s5, %s91_s5 }
  0x70   :  { %p9898_p11 = scmp.lt.s32.totalorder %s9896_s4, %s9892_s13 }
  0x72   :  { %p9899_p12 = por %p9898_p11, %p9897_p10 }
  0x74   :  { %p9900_p13 = pnand %p9899_p12, %p9893_p9 }
  0x76   :  { %9903 = shalt.err (!%p9900_p13)
}
  0x77   :  { %93 = dma.hbm_to_vmem [thread:$0]  %s11664_s6, 16, %s91_s5, [#allocation12]  }
  0x78   :  { %9904 = dma.done.wait [#allocation4], 4096  }
  0x79   :  { %9905 = vsyncadd [#allocation4], 4294963200 }
  0x7a   :  { %9906 = dma.done.wait [#allocation6], 16512  }
  0x7b   :  { %9907 = vsyncadd [#allocation6], 4294950784 }
  0x7c   :  { %9908 = dma.done.wait [#allocation9], 65664  }
  0x7d   :  { %9909 = vsyncadd [#allocation9], 4294901632 }
  0x7e   :  { %9910 = dma.done.wait [#allocation12], 8208  }
  0x7f   :  { %9911 = vsyncadd [#allocation12], 4294959088  ;;  %v9923_v0 = vmov 0   ;;  %v630_v1 = vld [vmem:[#allocation5] sm:$0xff]  ;;  %v263_v11 = vlaneseq  ;;  %v631_v20 = vld [vmem:[#allocation5 + $0x8] sm:$0xff]  ;;  %vm598_vm0 = vcmask 588800  }
  0x80   :  { %116 = vst [vmem:[#allocation2 + $0x8] sm:$0xff] %v9923_v0  ;;  %117 = vst [vmem:[#allocation2 + $0x18] sm:$0xff] %v9923_v0  ;;  %v634_v2 = vld [vmem:[#allocation5 + $0x20] sm:$0xff]  ;;  %v635_v21 = vld [vmem:[#allocation5 + $0x28] sm:$0xff] }
  0x81   :  { %118 = vst [vmem:[#allocation2 + $0x28] sm:$0xff] %v9923_v0  ;;  %119 = vst [vmem:[#allocation2 + $0x38] sm:$0xff] %v9923_v0  ;;  %v638_v3 = vld [vmem:[#allocation5 + $0x40] sm:$0xff]  ;;  %v8127_v4 = vcombine.high %v630_v1, %v634_v2  ;;  %v8126_v5 = vcombine.low %v630_v1, %v634_v2  ;;  %v10056_v16 = vshrl.u32 %v263_v11, 7  ;;  %v8129_v25 = vcombine.high %v631_v20, %v635_v21  ;;  %v639_v35 = vld [vmem:[#allocation5 + $0x48] sm:$0xff] }
  0x82   :  { %120 = vst [vmem:[#allocation2 + $0x48] sm:$0xff] %v9923_v0  ;;  %121 = vst [vmem:[#allocation2 + $0x58] sm:$0xff] %v9923_v0  ;;  %v642_v6 = vld [vmem:[#allocation5 + $0x60] sm:$0xff]  ;;  %v8128_v26 = vcombine.low %v631_v20, %v635_v21  ;;  %v9719_v29 = vld.sshfl [vmem:[#allocation3 + $0x8] sm:$0xff pattern:$0x76325410] }
  0x83   :  { %122 = vst [vmem:[#allocation2 + $0x68] sm:$0xff] %v9923_v0  ;;  %123 = vst [vmem:[#allocation2 + $0x78] sm:$0xff] %v9923_v0  ;;  %v8135_v7 = vcombine.high %v638_v3, %v642_v6  ;;  %v646_v8 = vld [vmem:[#allocation5 + $0x80] sm:$0xff]  ;;  %1439 = vmatprep.subr.bf16.mxu0 %v8127_v4  ;;  %v8134_v10 = vcombine.low %v638_v3, %v642_v6  ;;  %1552 = vmatprep.subr.bf16.mxu1 %v8129_v25  ;;  %v9720_v30 = vld.sshfl [vmem:[#allocation3 + $0x10] sm:$0xff pattern:$0x76325410] }
  0x84   :  { %v650_v9 = vld [vmem:[#allocation5 + $0xa0] sm:$0xff]  ;;  %1440 = vmatpush1.bf16.msra.mxu0 %v8126_v5  ;;  %11731 = vst [vmem:[#allocation18_spill] sm:$0xff] %v10056_v16  ;;  %1553 = vmatpush1.bf16.msra.mxu1 %v8128_v26  ;;  %v9721_v34 = vld.sshfl [vmem:[#allocation3 + $0x18] sm:$0xff pattern:$0x76325410]  ;;  %v643_v36 = vld [vmem:[#allocation5 + $0x68] sm:$0xff] }
  0x85   :  { %1441 = vmatprep.subr.bf16.mxu0 %v8135_v7  ;;  %v8143_v12 = vcombine.high %v646_v8, %v650_v9  ;;  %v654_v13 = vld [vmem:[#allocation5 + $0xc0] sm:$0xff]  ;;  %v8142_v15 = vcombine.low %v646_v8, %v650_v9  ;;  %v8137_v37 = vcombine.high %v639_v35, %v643_v36  ;;  %v647_v38 = vld [vmem:[#allocation5 + $0x88] sm:$0xff]  ;;  %v8136_v41 = vcombine.low %v639_v35, %v643_v36  ;;  %v9724_v54 = vld.sshfl [vmem:[#allocation3 + $0x30] sm:$0xff pattern:$0x76325410] }
  0x86   :  { %v658_v14 = vld [vmem:[#allocation5 + $0xe0] sm:$0xff]  ;;  %v651_v39 = vld [vmem:[#allocation5 + $0xa8] sm:$0xff]  ;;  %v293_v45 = vcombine.high %v9720_v30, %v9721_v34  ;;  %v292_v46 = vcombine.low %v9720_v30, %v9721_v34  ;;  %v9725_v55 = vld.sshfl [vmem:[#allocation3 + $0x38] sm:$0xff pattern:$0x76325410] }
  0x87   :  { %v8151_v17 = vcombine.high %v654_v13, %v658_v14  ;;  %v662_v18 = vld [vmem:[#allocation5 + $0x100] sm:$0xff]  ;;  %v8150_v22 = vcombine.low %v654_v13, %v658_v14  ;;  %v8145_v42 = vcombine.high %v647_v38, %v651_v39  ;;  %1554 = vmatprep.subr.bf16.mxu1 %v8137_v37  ;;  %v8144_v47 = vcombine.low %v647_v38, %v651_v39  ;;  %v9723_v49 = vld.sshfl [vmem:[#allocation3 + $0x28] sm:$0xff pattern:$0x76325410] }
  0x88   :  { %1442 = vmatpush1.bf16.msra.mxu0 %v8134_v10  ;;  %v666_v19 = vld [vmem:[#allocation5 + $0x120] sm:$0xff]  ;;  %1555 = vmatpush1.bf16.msra.mxu1 %v8136_v41  ;;  %v655_v56 = vld [vmem:[#allocation5 + $0xc8] sm:$0xff]  ;;  %v329_v5 = vcombine.high %v9724_v54, %v9725_v55  ;;  %v328_v6 = vcombine.low %v9724_v54, %v9725_v55  ;;  %v9728_v11 = vld.sshfl [vmem:[#allocation3 + $0x50] sm:$0xff pattern:$0x76325410] }
  0x89   :  { %1443 = vmatprep.subr.bf16.mxu0 %v8143_v12  ;;  %v670_v23 = vld [vmem:[#allocation5 + $0x140] sm:$0xff]  ;;  %v8159_v27 = vcombine.high %v662_v18, %v666_v19  ;;  %v8158_v31 = vcombine.low %v662_v18, %v666_v19  ;;  %1556 = vmatprep.subr.bf16.mxu1 %v8145_v42  ;;  %v659_v59 = vld [vmem:[#allocation5 + $0xe8] sm:$0xff]  ;;  %v9729_v12 = vld.sshfl [vmem:[#allocation3 + $0x58] sm:$0xff pattern:$0x76325410] }
  0x8a   :  { %v674_v24 = vld [vmem:[#allocation5 + $0x160] sm:$0xff]  ;;  %v663_v60 = vld [vmem:[#allocation5 + $0x108] sm:$0xff]  ;;  %v8153_v62 = vcombine.high %v655_v56, %v659_v59  ;;  %v8152_v4 = vcombine.low %v655_v56, %v659_v59  ;;  %v9732_v37 = vld.sshfl [vmem:[#allocation3 + $0x70] sm:$0xff pattern:$0x76325410] }
  0x8b   :  { %v9718_v28 = vld.sshfl [vmem:[#allocation3] sm:$0xff pattern:$0x76325410]  ;;  %v8167_v40 = vcombine.high %v670_v23, %v674_v24  ;;  %v8166_v50 = vcombine.low %v670_v23, %v674_v24  ;;  %v667_v61 = vld [vmem:[#allocation5 + $0x128] sm:$0xff] }
  0x8c   :  { %1444 = vmatpush1.bf16.msra.mxu0 %v8142_v15  ;;  %v10058_v32 = vld [vmem:[#allocation5 + $0x180] sm:$0xff]  ;;  %v275_v43 = vcombine.high %v9718_v28, %v9719_v29  ;;  %v274_v44 = vcombine.low %v9718_v28, %v9719_v29  ;;  %1557 = vmatpush1.bf16.msra.mxu1 %v8144_v47  ;;  %v8161_v7 = vcombine.high %v663_v60, %v667_v61  ;;  %v9727_v10 = vld.sshfl [vmem:[#allocation3 + $0x48] sm:$0xff pattern:$0x76325410] }
  0x8d   :  { %1445 = vmatprep.subr.bf16.mxu0 %v8151_v17  ;;  %v10060_v33 = vld [vmem:[#allocation5 + $0x1a0] sm:$0xff]  ;;  %1558 = vmatprep.subr.bf16.mxu1 %v8153_v62  ;;  %v671_v15 = vld [vmem:[#allocation5 + $0x148] sm:$0xff]  ;;  %v8160_v18 = vcombine.low %v663_v60, %v667_v61  ;;  %v364_v29 = vcombine.low %v9728_v11, %v9729_v12  ;;  %v9733_v38 = vld.sshfl [vmem:[#allocation3 + $0x78] sm:$0xff pattern:$0x76325410] }
  0x8e   :  { %v9722_v48 = vld.sshfl [vmem:[#allocation3 + $0x20] sm:$0xff pattern:$0x76325410]  ;;  %v8175_v51 = vcombine.high %v10058_v32, %v10060_v33  ;;  %v579_v57 = vpack.c.bf16 %v293_v45, %v275_v43  ;;  %v10068_v58 = vpack.c.bf16 %v292_v46, %v274_v44  ;;  %v8174_v63 = vcombine.low %v10058_v32, %v10060_v33  ;;  %v675_v17 = vld [vmem:[#allocation5 + $0x168] sm:$0xff] }
  0x8f   :  { %v10064_v52 = vld [vmem:[#allocation5 + $0x1c0] sm:$0xff]  ;;  %v311_v2 = vcombine.high %v9722_v48, %v9723_v49  ;;  %v310_v3 = vcombine.low %v9722_v48, %v9723_v49  ;;  %v10082_v19 = vld [vmem:[#allocation5 + $0x188] sm:$0xff]  ;;  %v8169_v25 = vcombine.high %v671_v15, %v675_v17  ;;  %v8168_v36 = vcombine.low %v671_v15, %v675_v17  ;;  %v9736_v55 = vld.sshfl [vmem:[#allocation3 + $0x90] sm:$0xff pattern:$0x76325410] }
  0x90   :  { %1446 = vmatpush1.bf16.msra.mxu0 %v8150_v22  ;;  %v10066_v53 = vld [vmem:[#allocation5 + $0x1e0] sm:$0xff]  ;;  %599 = vst.msk [vmem:[#allocation2 + $0x8] sm:$0xff] %vm598_vm0, %v579_v57  ;;  %597 = vst [vmem:[#allocation2] sm:$0xff] %v10068_v58  ;;  %1559 = vmatpush1.bf16.msra.mxu1 %v8152_v4  ;;  %v683_v20 = vld [vmem:[#allocation5 + $0x1a8] sm:$0xff]  ;;  %v401_v48 = vcombine.high %v9732_v37, %v9733_v38  ;;  %v400_v49 = vcombine.low %v9732_v37, %v9733_v38 }
  0x91   :  { %1447 = vmatprep.subr.bf16.mxu0 %v8159_v27  ;;  %v10072_v0 = vld [vmem:[#allocation5 + $0x200] sm:$0xff]  ;;  %v8183_v9 = vcombine.high %v10064_v52, %v10066_v53  ;;  %v581_v13 = vpack.c.bf16 %v329_v5, %v311_v2  ;;  %v10080_v14 = vpack.c.bf16 %v328_v6, %v310_v3  ;;  %v8182_v21 = vcombine.low %v10064_v52, %v10066_v53  ;;  %v9731_v33 = vld.sshfl [vmem:[#allocation3 + $0x68] sm:$0xff pattern:$0x76325410] }
  0x92   :  { %v10074_v1 = vld [vmem:[#allocation5 + $0x220] sm:$0xff]  ;;  %1560 = vmatprep.subr.bf16.mxu1 %v8161_v7  ;;  %v365_v27 = vcombine.high %v9728_v11, %v9729_v12  ;;  %v8177_v41 = vcombine.high %v10082_v19, %v683_v20  ;;  %v687_v42 = vld [vmem:[#allocation5 + $0x1c8] sm:$0xff]  ;;  %v8176_v47 = vcombine.low %v10082_v19, %v683_v20  ;;  %v9737_v62 = vld.sshfl [vmem:[#allocation3 + $0x98] sm:$0xff pattern:$0x76325410] }
  0x93   :  { %v9726_v8 = vld.sshfl [vmem:[#allocation3 + $0x40] sm:$0xff pattern:$0x76325410]  ;;  %v8191_v22 = vcombine.high %v10072_v0, %v10074_v1  ;;  %601 = vst.msk [vmem:[#allocation2 + $0x18] sm:$0xff] %vm598_vm0, %v581_v13  ;;  %600 = vst [vmem:[#allocation2 + $0x10] sm:$0xff] %v10080_v14  ;;  %v8190_v30 = vcombine.low %v10072_v0, %v10074_v1  ;;  %v691_v43 = vld [vmem:[#allocation5 + $0x1e8] sm:$0xff]  ;;  %v436_v11 = vcombine.low %v9736_v55, %v9737_v62 }
  0x94   :  { %1448 = vmatpush1.bf16.msra.mxu0 %v8158_v31  ;;  %v702_v23 = vld [vmem:[#allocation5 + $0x240] sm:$0xff]  ;;  %v347_v26 = vcombine.high %v9726_v8, %v9727_v10  ;;  %v346_v28 = vcombine.low %v9726_v8, %v9727_v10  ;;  %1561 = vmatpush1.bf16.msra.mxu1 %v8160_v18  ;;  %v8185_v52 = vcombine.high %v687_v42, %v691_v43  ;;  %v9735_v54 = vld.sshfl [vmem:[#allocation3 + $0x88] sm:$0xff pattern:$0x76325410] }
  0x95   :  { %1449 = vmatprep.subr.bf16.mxu0 %v8167_v40  ;;  %v706_v24 = vld [vmem:[#allocation5 + $0x260] sm:$0xff]  ;;  %1562 = vmatprep.subr.bf16.mxu1 %v8169_v25  ;;  %v695_v60 = vld [vmem:[#allocation5 + $0x208] sm:$0xff]  ;;  %v8184_v2 = vcombine.low %v687_v42, %v691_v43  ;;  %v437_v10 = vcombine.high %v9736_v55, %v9737_v62  ;;  %v9740_v18 = vld.sshfl [vmem:[#allocation3 + $0xb0] sm:$0xff pattern:$0x76325410] }
  0x96   :  { %v9730_v32 = vld.sshfl [vmem:[#allocation3 + $0x60] sm:$0xff pattern:$0x76325410]  ;;  %v583_v34 = vpack.c.bf16 %v365_v27, %v347_v26  ;;  %v10092_v35 = vpack.c.bf16 %v364_v29, %v346_v28  ;;  %v8199_v44 = vcombine.high %v702_v23, %v706_v24  ;;  %v699_v61 = vld [vmem:[#allocation5 + $0x228] sm:$0xff] }
  0x97   :  { %v615_v31 = vld [vmem:[#allocation2 + $0x8] sm:$0xff]  ;;  %v710_v39 = vld [vmem:[#allocation5 + $0x280] sm:$0xff]  ;;  %v383_v45 = vcombine.high %v9730_v32, %v9731_v33  ;;  %v382_v46 = vcombine.low %v9730_v32, %v9731_v33  ;;  %v8193_v5 = vcombine.high %v695_v60, %v699_v61  ;;  %v8192_v15 = vcombine.low %v695_v60, %v699_v61  ;;  %v9741_v19 = vld.sshfl [vmem:[#allocation3 + $0xb8] sm:$0xff pattern:$0x76325410] }
  0x98   :  { %1450 = vmatpush1.bf16.msra.mxu0 %v8166_v50  ;;  %1471 = vmatprep.mubr.bf16.mxu0 %v615_v31  ;;  %v714_v40 = vld [vmem:[#allocation5 + $0x2a0] sm:$0xff]  ;;  %603 = vst.msk [vmem:[#allocation2 + $0x28] sm:$0xff] %vm598_vm0, %v583_v34  ;;  %602 = vst [vmem:[#allocation2 + $0x20] sm:$0xff] %v10092_v35  ;;  %v8198_v50 = vcombine.low %v702_v23, %v706_v24  ;;  %v10100_v0 = vld [vmem:[#allocation5 + $0x248] sm:$0xff]  ;;  %v473_v29 = vcombine.high %v9740_v18, %v9741_v19 }
  0x99   :  { %1451 = vmatprep.subr.bf16.mxu0 %v8175_v51  ;;  %1584 = vmatprep.mubr.bf16.mxu1 %v615_v31  ;;  %v718_v51 = vld [vmem:[#allocation5 + $0x2c0] sm:$0xff]  ;;  %v8207_v56 = vcombine.high %v710_v39, %v714_v40  ;;  %v585_v57 = vpack.c.bf16 %v401_v48, %v383_v45  ;;  %v10098_v59 = vpack.c.bf16 %v400_v49, %v382_v46  ;;  %v707_v8 = vld [vmem:[#allocation5 + $0x268] sm:$0xff]  ;;  %v9745_v42 = vld.sshfl [vmem:[#allocation3 + $0xd8] sm:$0xff pattern:$0x76325410] }
  0x9a   :  { %1563 = vmatpush1.bf16.msra.mxu1 %v8168_v36  ;;  %v9734_v53 = vld.sshfl [vmem:[#allocation3 + $0x80] sm:$0xff pattern:$0x76325410]  ;;  %v8206_v1 = vcombine.low %v710_v39, %v714_v40  ;;  %v9739_v17 = vld.sshfl [vmem:[#allocation3 + $0xa8] sm:$0xff pattern:$0x76325410]  ;;  %v472_v31 = vcombine.low %v9740_v18, %v9741_v19  ;;  %v8200_v33 = vcombine.low %v10100_v0, %v707_v8 }
  0x9b   :  { %1564 = vmatprep.subr.bf16.mxu1 %v8177_v41  ;;  %605 = vst.msk [vmem:[#allocation2 + $0x38] sm:$0xff] %vm598_vm0, %v585_v57  ;;  %604 = vst [vmem:[#allocation2 + $0x30] sm:$0xff] %v10098_v59  ;;  %v726_v3 = vld [vmem:[#allocation5 + $0x300] sm:$0xff]  ;;  %v419_v6 = vcombine.high %v9734_v53, %v9735_v54  ;;  %v418_v7 = vcombine.low %v9734_v53, %v9735_v54  ;;  %v711_v23 = vld [vmem:[#allocation5 + $0x288] sm:$0xff] }
  0x9c   :  { %1452 = vmatpush1.bf16.msra.mxu0 %v8174_v63  ;;  %v722_v63 = vld [vmem:[#allocation5 + $0x2e0] sm:$0xff]  ;;  %v715_v25 = vld [vmem:[#allocation5 + $0x2a8] sm:$0xff]  ;;  %v9744_v41 = vld.sshfl [vmem:[#allocation3 + $0xd0] sm:$0xff pattern:$0x76325410] }
  0x9d   :  { %1453 = vmatprep.subr.bf16.mxu0 %v8183_v9  ;;  %v730_v4 = vld [vmem:[#allocation5 + $0x320] sm:$0xff]  ;;  %v8215_v9 = vcombine.high %v718_v51, %v722_v63  ;;  %v8214_v13 = vcombine.low %v718_v51, %v722_v63  ;;  %v587_v20 = vpack.c.bf16 %v437_v10, %v419_v6  ;;  %v9743_v36 = vld.sshfl [vmem:[#allocation3 + $0xc8] sm:$0xff pattern:$0x76325410]  ;;  %v8209_v38 = vcombine.high %v711_v23, %v715_v25 }
  0x9e   :  { %1565 = vmatpush1.bf16.msra.mxu1 %v8176_v47  ;;  %v9738_v12 = vld.sshfl [vmem:[#allocation3 + $0xa0] sm:$0xff pattern:$0x76325410]  ;;  %v8223_v26 = vcombine.high %v726_v3, %v730_v4  ;;  %v8222_v32 = vcombine.low %v726_v3, %v730_v4  ;;  %v719_v45 = vld [vmem:[#allocation5 + $0x2c8] sm:$0xff]  ;;  %v8208_v48 = vcombine.low %v711_v23, %v715_v25  ;;  %v509_v54 = vcombine.high %v9744_v41, %v9745_v42 }
  0x9f   :  { %1566 = vmatprep.subr.bf16.mxu1 %v8185_v52  ;;  %v734_v24 = vld [vmem:[#allocation5 + $0x340] sm:$0xff]  ;;  %607 = vst.msk [vmem:[#allocation2 + $0x48] sm:$0xff] %vm598_vm0, %v587_v20  ;;  %v455_v28 = vcombine.high %v9738_v12, %v9739_v17  ;;  %v723_v46 = vld [vmem:[#allocation5 + $0x2e8] sm:$0xff]  ;;  %v508_v55 = vcombine.low %v9744_v41, %v9745_v42  ;;  %v9748_v61 = vld.sshfl [vmem:[#allocation3 + $0xf0] sm:$0xff pattern:$0x76325410] }
  0xa0   :  { %1454 = vmatpush1.bf16.msra.mxu0 %v8182_v21  ;;  %v10104_v21 = vpack.c.bf16 %v436_v11, %v418_v7  ;;  %v738_v27 = vld [vmem:[#allocation5 + $0x360] sm:$0xff]  ;;  %v727_v49 = vld [vmem:[#allocation5 + $0x308] sm:$0xff]  ;;  %v8217_v52 = vcombine.high %v719_v45, %v723_v46  ;;  %v8216_v3 = vcombine.low %v719_v45, %v723_v46  ;;  %v633_v42 = vld [vmem:[#allocation5 + $0x18] sm:$0xff] }
  0xa1   :  { %1455 = vmatprep.subr.bf16.mxu0 %v8191_v22  ;;  %v8201_v22 = vcombine.high %v10100_v0, %v707_v8  ;;  %v9742_v34 = vld.sshfl [vmem:[#allocation3 + $0xc0] sm:$0xff pattern:$0x76325410]  ;;  %v589_v39 = vpack.c.bf16 %v473_v29, %v455_v28  ;;  %v8231_v43 = vcombine.high %v734_v24, %v738_v27  ;;  %v8230_v47 = vcombine.low %v734_v24, %v738_v27  ;;  %v731_v53 = vld [vmem:[#allocation5 + $0x328] sm:$0xff]  ;;  %v640_v27 = vld [vmem:[#allocation5 + $0x50] sm:$0xff] }
  0xa2   :  { %1567 = vmatpush1.bf16.msra.mxu1 %v8184_v2  ;;  %606 = vst [vmem:[#allocation2 + $0x40] sm:$0xff] %v10104_v21  ;;  %v742_v37 = vld [vmem:[#allocation5 + $0x380] sm:$0xff]  ;;  %v490_v51 = vcombine.low %v9742_v34, %v9743_v36  ;;  %v9747_v60 = vld.sshfl [vmem:[#allocation3 + $0xe8] sm:$0xff pattern:$0x76325410]  ;;  %v8224_v18 = vcombine.low %v727_v49, %v731_v53  ;;  %v644_v28 = vld [vmem:[#allocation5 + $0x70] sm:$0xff] }
  0xa3   :  { %1568 = vmatprep.subr.bf16.mxu1 %v8193_v5  ;;  %609 = vst.msk [vmem:[#allocation2 + $0x58] sm:$0xff] %vm598_vm0, %v589_v39  ;;  %v9746_v57 = vld.sshfl [vmem:[#allocation3 + $0xe0] sm:$0xff pattern:$0x76325410]  ;;  %v8225_v5 = vcombine.high %v727_v49, %v731_v53  ;;  %v735_v7 = vld [vmem:[#allocation5 + $0x348] sm:$0xff]  ;;  %v8138_v41 = vcombine.low %v640_v27, %v644_v28  ;;  %v656_v46 = vld [vmem:[#allocation5 + $0xd0] sm:$0xff] }
  0xa4   :  { %1456 = vmatpush1.bf16.msra.mxu0 %v8190_v30  ;;  %v454_v30 = vcombine.low %v9738_v12, %v9739_v17  ;;  %v750_v62 = vld [vmem:[#allocation5 + $0x3c0] sm:$0xff]  ;;  %v9749_v2 = vld.sshfl [vmem:[#allocation3 + $0xf8] sm:$0xff pattern:$0x76325410]  ;;  %v739_v8 = vld [vmem:[#allocation5 + $0x368] sm:$0xff]  ;;  %v526_v10 = vcombine.low %v9746_v57, %v9747_v60 }
  0xa5   :  { %1457 = vmatprep.subr.bf16.mxu0 %v8199_v44  ;;  %v746_v44 = vld [vmem:[#allocation5 + $0x3a0] sm:$0xff]  ;;  %v545_v11 = vcombine.high %v9748_v61, %v9749_v2  ;;  %v544_v12 = vcombine.low %v9748_v61, %v9749_v2  ;;  %v8233_v19 = vcombine.high %v735_v7, %v739_v8  ;;  %v743_v23 = vld [vmem:[#allocation5 + $0x388] sm:$0xff]  ;;  %v649_v61 = vld [vmem:[#allocation5 + $0x98] sm:$0xff] }
  0xa6   :  { %1569 = vmatpush1.bf16.msra.mxu1 %v8192_v15  ;;  %v10110_v40 = vpack.c.bf16 %v472_v31, %v454_v30  ;;  %v754_v63 = vld [vmem:[#allocation5 + $0x3e0] sm:$0xff]  ;;  %v8238_v4 = vcombine.low %v742_v37, %v746_v44  ;;  %v636_v15 = vld [vmem:[#allocation5 + $0x30] sm:$0xff]  ;;  %v747_v24 = vld [vmem:[#allocation5 + $0x3a8] sm:$0xff] }
  0xa7   :  { %1570 = vmatprep.subr.bf16.mxu1 %v8201_v22  ;;  %v8247_v6 = vcombine.high %v750_v62, %v754_v63  ;;  %v8246_v17 = vcombine.low %v750_v62, %v754_v63  ;;  %v10118_v22 = vpack.c.bf16 %v544_v12, %v526_v10  ;;  %v8241_v29 = vcombine.high %v743_v23, %v747_v24  ;;  %v10122_v30 = vld [vmem:[#allocation2 + $0x18] sm:$0xff]  ;;  %v751_v31 = vld [vmem:[#allocation5 + $0x3c8] sm:$0xff]  ;;  %v676_v2 = vld [vmem:[#allocation5 + $0x170] sm:$0xff] }
  0xa8   :  { %1458 = vmatpush1.bf16.msra.mxu0 %v8198_v50  ;;  %608 = vst [vmem:[#allocation2 + $0x50] sm:$0xff] %v10110_v40  ;;  %v491_v50 = vcombine.high %v9742_v34, %v9743_v36  ;;  %v8139_v34 = vcombine.high %v640_v27, %v644_v28  ;;  %v8240_v36 = vcombine.low %v743_v23, %v747_v24  ;;  %v10126_v49 = vld [vmem:[#allocation2 + $0x28] sm:$0xff]  ;;  %v653_v62 = vld [vmem:[#allocation5 + $0xb8] sm:$0xff]  ;;  %v684_v10 = vld [vmem:[#allocation5 + $0x1b0] sm:$0xff] }
  0xa9   :  { %1459 = vmatprep.subr.bf16.mxu0 %v8207_v56  ;;  %v8239_v56 = vcombine.high %v742_v37, %v746_v44  ;;  %612 = vst [vmem:[#allocation2 + $0x70] sm:$0xff] %v10118_v22  ;;  %v648_v37 = vld [vmem:[#allocation5 + $0x90] sm:$0xff]  ;;  %v673_v27 = vld [vmem:[#allocation5 + $0x158] sm:$0xff] }
  0xaa   :  { %1571 = vmatpush1.bf16.msra.mxu1 %v8200_v33  ;;  %v591_v0 = vpack.c.bf16 %v509_v54, %v491_v50  ;;  %v664_v54 = vld [vmem:[#allocation5 + $0x110] sm:$0xff]  ;;  %v677_v28 = vld [vmem:[#allocation5 + $0x178] sm:$0xff] }
  0xab   :  { %1572 = vmatprep.subr.bf16.mxu1 %v8209_v38  ;;  %v652_v38 = vld [vmem:[#allocation5 + $0xb0] sm:$0xff] }
  0xac   :  { %1460 = vmatpush1.bf16.msra.mxu0 %v8206_v1  ;;  %v10114_v1 = vpack.c.bf16 %v508_v55, %v490_v51  ;;  %611 = vst.msk [vmem:[#allocation2 + $0x68] sm:$0xff] %vm598_vm0, %v591_v0  ;;  %v8147_v44 = vcombine.high %v648_v37, %v652_v38  ;;  %v8146_v50 = vcombine.low %v648_v37, %v652_v38  ;;  %v641_v51 = vld [vmem:[#allocation5 + $0x58] sm:$0xff]  ;;  %v668_v55 = vld [vmem:[#allocation5 + $0x130] sm:$0xff] }
  0xad   :  { %1461 = vmatprep.subr.bf16.mxu0 %v8215_v9  ;;  %v527_v9 = vcombine.high %v9746_v57, %v9747_v60  ;;  %v8163_v63 = vcombine.high %v664_v54, %v668_v55  ;;  %v672_v0 = vld [vmem:[#allocation5 + $0x150] sm:$0xff]  ;;  %v685_v37 = vld [vmem:[#allocation5 + $0x1b8] sm:$0xff] }
  0xae   :  { %1573 = vmatpush1.bf16.msra.mxu1 %v8208_v48  ;;  %610 = vst [vmem:[#allocation2 + $0x60] sm:$0xff] %v10114_v1 }
  0xaf   :  { %1574 = vmatprep.subr.bf16.mxu1 %v8217_v52  ;;  %v593_v20 = vpack.c.bf16 %v545_v11, %v527_v9  ;;  %v645_v52 = vld [vmem:[#allocation5 + $0x78] sm:$0xff]  ;;  %v8171_v9 = vcombine.high %v672_v0, %v676_v2  ;;  %v8148_v11 = vcombine.low %v649_v61, %v653_v62 }
  0xb0   :  { %1462 = vmatpush1.bf16.msra.mxu0 %v8214_v13  ;;  %v632_v13 = vld [vmem:[#allocation5 + $0x10] sm:$0xff]  ;;  %v8141_v57 = vcombine.high %v641_v51, %v645_v52 }
  0xb1   :  { %1463 = vmatprep.subr.bf16.mxu0 %v8223_v26  ;;  %v8131_v25 = vcombine.high %v632_v13, %v636_v15  ;;  %613 = vst.msk [vmem:[#allocation2 + $0x78] sm:$0xff] %vm598_vm0, %v593_v20  ;;  %v8232_v26 = vcombine.low %v735_v7, %v739_v8  ;;  %v8130_v33 = vcombine.low %v632_v13, %v636_v15  ;;  %v657_v7 = vld [vmem:[#allocation5 + $0xd8] sm:$0xff]  ;;  %v692_v20 = vld [vmem:[#allocation5 + $0x1f0] sm:$0xff] }
  0xb2   :  { %1575 = vmatpush1.bf16.msra.mxu1 %v8216_v3  ;;  %v8140_v3 = vcombine.low %v641_v51, %v645_v52  ;;  %v661_v8 = vld [vmem:[#allocation5 + $0xf8] sm:$0xff]  ;;  %v8170_v13 = vcombine.low %v672_v0, %v676_v2 }
  0xb3   :  { %1576 = vmatprep.subr.bf16.mxu1 %v8225_v5  ;;  %v10132_v5 = vld [vmem:[#allocation2 + $0x38] sm:$0xff]  ;;  %v8157_v12 = vcombine.high %v657_v7, %v661_v8  ;;  %v8156_v23 = vcombine.low %v657_v7, %v661_v8 }
  0xb4   :  { %1464 = vmatpush1.bf16.msra.mxu0 %v8222_v32  ;;  %v755_v32 = vld [vmem:[#allocation5 + $0x3e8] sm:$0xff]  ;;  %v665_v15 = vld [vmem:[#allocation5 + $0x118] sm:$0xff] }
  0xb5   :  { %1465 = vmatprep.subr.bf16.mxu0 %v8231_v43  ;;  %v8249_v39 = vcombine.high %v751_v31, %v755_v32  ;;  %v637_v43 = vld [vmem:[#allocation5 + $0x38] sm:$0xff]  ;;  %v8248_v45 = vcombine.low %v751_v31, %v755_v32  ;;  %v700_v31 = vld [vmem:[#allocation5 + $0x230] sm:$0xff] }
  0xb6   :  { %1577 = vmatpush1.bf16.msra.mxu1 %v8224_v18  ;;  %v8133_v48 = vcombine.high %v633_v42, %v637_v43  ;;  %v697_v52 = vld [vmem:[#allocation5 + $0x218] sm:$0xff] }
  0xb7   :  { %1578 = vmatprep.subr.bf16.mxu1 %v8233_v19  ;;  %v688_v19 = vld [vmem:[#allocation5 + $0x1d0] sm:$0xff]  ;;  %v709_v0 = vld [vmem:[#allocation5 + $0x278] sm:$0xff] }
  0xb8   :  { %1466 = vmatpush1.bf16.msra.mxu0 %v8230_v47  ;;  %v660_v47 = vld [vmem:[#allocation5 + $0xf0] sm:$0xff]  ;;  %v713_v8 = vld [vmem:[#allocation5 + $0x298] sm:$0xff] }
  0xb9   :  { %1467 = vmatprep.subr.bf16.mxu0 %v8239_v56  ;;  %v8155_v53 = vcombine.high %v656_v46, %v660_v47  ;;  %v8132_v56 = vcombine.low %v633_v42, %v637_v43  ;;  %v8154_v60 = vcombine.low %v656_v46, %v660_v47  ;;  %v708_v42 = vld [vmem:[#allocation5 + $0x270] sm:$0xff]  ;;  %v8172_v43 = vcombine.low %v673_v27, %v677_v28  ;;  %v693_v46 = vld [vmem:[#allocation5 + $0x1f8] sm:$0xff] }
  0xba   :  { %1579 = vmatpush1.bf16.msra.mxu1 %v8232_v26 }
  0xbb   :  { %1580 = vmatprep.subr.bf16.mxu1 %v8241_v29  ;;  %v8187_v29 = vcombine.high %v688_v19, %v692_v20 }
  0xbc   :  { %1468 = vmatpush1.bf16.msra.mxu0 %v8238_v4  ;;  %v8149_v4 = vcombine.high %v649_v61, %v653_v62  ;;  %v10149_v61 = vld [vmem:[#allocation2 + $0x68] sm:$0xff] }
  0xbd   :  { %1469 = vmatprep.subr.bf16.mxu0 %v8247_v6  ;;  %v8162_v6 = vcombine.low %v664_v54, %v668_v55 }
  0xbe   :  { %1581 = vmatpush1.bf16.msra.mxu1 %v8240_v36  ;;  %v681_v36 = vld [vmem:[#allocation5 + $0x198] sm:$0xff] }
  0xbf   :  { %1582 = vmatprep.subr.bf16.mxu1 %v8249_v39  ;;  %v10143_v39 = vld [vmem:[#allocation2 + $0x58] sm:$0xff]  ;;  %v8180_v51 = vcombine.low %v681_v36, %v685_v37 }
  0xc0   :  { %1470 = vmatpush1.bf16.msra.mxu0 %v8246_v17  ;;  %v669_v17 = vld [vmem:[#allocation5 + $0x138] sm:$0xff] }
  0xc1   :  { %1665 = vmatprep.subr.bf16.mxu0 %v8131_v25  ;;  %v8165_v24 = vcombine.high %v665_v15, %v669_v17  ;;  %v10138_v25 = vld [vmem:[#allocation2 + $0x48] sm:$0xff]  ;;  %v8164_v32 = vcombine.low %v665_v15, %v669_v17  ;;  %v10155_v15 = vld [vmem:[#allocation2 + $0x78] sm:$0xff] }
  0xc2   :  { %1583 = vmatpush1.bf16.msra.mxu1 %v8248_v45  ;;  %v8181_v45 = vcombine.high %v681_v36, %v685_v37  ;;  %v737_v37 = vld [vmem:[#allocation5 + $0x358] sm:$0xff] }
  0xc3   :  { %1472 = vmatmul.mubr.bf16.vlgmr.msra.gmra.mrb[0].mxu0 %v10068_v58  ;;  %1778 = vmatprep.subr.bf16.mxu1 %v8133_v48  ;;  %v712_v48 = vld [vmem:[#allocation5 + $0x290] sm:$0xff] }
  0xc4   :  { %1481 = vmatprep.mubr.bf16.mxu0 %v10122_v30  ;;  %1666 = vmatpush1.bf16.msra.mxu0 %v8130_v33  ;;  %v8173_v33 = vcombine.high %v673_v27, %v677_v28  ;;  %v729_v28 = vld [vmem:[#allocation5 + $0x318] sm:$0xff] }
  0xc5   :  { %1667 = vmatprep.subr.bf16.mxu0 %v8139_v34  ;;  %1585 = vmatmul.mubr.bf16.vlgmr.msra.gmra.mrb[0].mxu1 %v10068_v58  ;;  %v680_v58 = vld [vmem:[#allocation5 + $0x190] sm:$0xff]  ;;  %v8186_v34 = vcombine.low %v688_v19, %v692_v20  ;;  %v725_v19 = vld [vmem:[#allocation5 + $0x2f8] sm:$0xff] }
  0xc6   :  { %1594 = vmatprep.mubr.bf16.mxu1 %v10122_v30  ;;  %1779 = vmatpush1.bf16.msra.mxu1 %v8132_v56  ;;  %v8179_v18 = vcombine.high %v680_v58, %v684_v10  ;;  %v8178_v26 = vcombine.low %v680_v58, %v684_v10  ;;  %v720_v56 = vld [vmem:[#allocation5 + $0x2d0] sm:$0xff] }
  0xc7   :  { %1780 = vmatprep.subr.bf16.mxu1 %v8141_v57  ;;  %v724_v57 = vld [vmem:[#allocation5 + $0x2f0] sm:$0xff] }
  0xc8   :  { %1668 = vmatpush1.bf16.msra.mxu0 %v8138_v41  ;;  %v704_v41 = vld [vmem:[#allocation5 + $0x250] sm:$0xff]  ;;  %v8219_v7 = vcombine.high %v720_v56, %v724_v57  ;;  %v8218_v10 = vcombine.low %v720_v56, %v724_v57  ;;  %v757_v56 = vld [vmem:[#allocation5 + $0x3f8] sm:$0xff] }
  0xc9   :  { %1669 = vmatprep.subr.bf16.mxu0 %v8147_v44  ;;  %v689_v44 = vld [vmem:[#allocation5 + $0x1d8] sm:$0xff]  ;;  %v8202_v55 = vcombine.low %v704_v41, %v708_v42 }
  0xca   :  { %1781 = vmatpush1.bf16.msra.mxu1 %v8140_v3  ;;  %v8189_v54 = vcombine.high %v689_v44, %v693_v46  ;;  %v8188_v62 = vcombine.low %v689_v44, %v693_v46  ;;  %v2087_v44 = vld [vmem:[#allocation8 + $0x20] sm:$0xff]  ;;  %v745_v46 = vld [vmem:[#allocation5 + $0x398] sm:$0xff] }
  0xcb   :  { %1482 = vmatmul.mubr.bf16.gmra.mrb[4].mxu0 %v10080_v14  ;;  %1782 = vmatprep.subr.bf16.mxu1 %v8149_v4  ;;  %v728_v4 = vld [vmem:[#allocation5 + $0x310] sm:$0xff] }
  0xcc   :  { %1491 = vmatprep.mubr.bf16.mxu0 %v10126_v49  ;;  %1670 = vmatpush1.bf16.msra.mxu0 %v8146_v50  ;;  %v716_v50 = vld [vmem:[#allocation5 + $0x2b0] sm:$0xff] }
  0xcd   :  { %1671 = vmatprep.subr.bf16.mxu0 %v8155_v53  ;;  %1595 = vmatmul.mubr.bf16.gmra.mrb[4].mxu1 %v10080_v14  ;;  %v696_v14 = vld [vmem:[#allocation5 + $0x210] sm:$0xff]  ;;  %v701_v53 = vld [vmem:[#allocation5 + $0x238] sm:$0xff]  ;;  %v8210_v3 = vcombine.low %v712_v48, %v716_v50 }
  0xce   :  { %1604 = vmatprep.mubr.bf16.mxu1 %v10126_v49  ;;  %1783 = vmatpush1.bf16.msra.mxu1 %v8148_v11  ;;  %v8195_v38 = vcombine.high %v696_v14, %v700_v31  ;;  %v8194_v47 = vcombine.low %v696_v14, %v700_v31  ;;  %v8197_v2 = vcombine.high %v697_v52, %v701_v53  ;;  %v736_v11 = vld [vmem:[#allocation5 + $0x350] sm:$0xff] }
  0xcf   :  { %1784 = vmatprep.subr.bf16.mxu1 %v8157_v12  ;;  %v740_v12 = vld [vmem:[#allocation5 + $0x370] sm:$0xff] }
  0xd0   :  { %1672 = vmatpush1.bf16.msra.mxu0 %v8154_v60  ;;  %v8211_v60 = vcombine.high %v712_v48, %v716_v50  ;;  %v8235_v27 = vcombine.high %v736_v11, %v740_v12  ;;  %v8234_v31 = vcombine.low %v736_v11, %v740_v12  ;;  %v9708_v48 = vld [vmem:[#allocation2 + $0x8] sm:$0xff]  ;;  %v2096_v11 = vld [vmem:[#allocation8 + $0x68] sm:$0xff] }
  0xd1   :  { %1673 = vmatprep.subr.bf16.mxu0 %v8163_v63  ;;  %v705_v63 = vld [vmem:[#allocation5 + $0x258] sm:$0xff] }
  0xd2   :  { %1785 = vmatpush1.bf16.msra.mxu1 %v8156_v23  ;;  %v8205_v58 = vcombine.high %v705_v63, %v709_v0  ;;  %v8204_v17 = vcombine.low %v705_v63, %v709_v0  ;;  %v2103_v63 = vld [vmem:[#allocation8 + $0xa0] sm:$0xff] }
  0xd3   :  { %1492 = vmatmul.mubr.bf16.gmra.mrb[8].mxu0 %v10092_v35  ;;  %1786 = vmatprep.subr.bf16.mxu1 %v8165_v24  ;;  %v744_v24 = vld [vmem:[#allocation5 + $0x390] sm:$0xff] }
  0xd4   :  { %1501 = vmatprep.mubr.bf16.mxu0 %v10132_v5  ;;  %1674 = vmatpush1.bf16.msra.mxu0 %v8162_v6  ;;  %v732_v6 = vld [vmem:[#allocation5 + $0x330] sm:$0xff] }
  0xd5   :  { %1675 = vmatprep.subr.bf16.mxu0 %v8171_v9  ;;  %1605 = vmatmul.mubr.bf16.gmra.mrb[8].mxu1 %v10092_v35  ;;  %v8203_v35 = vcombine.high %v704_v41, %v708_v42  ;;  %v717_v9 = vld [vmem:[#allocation5 + $0x2b8] sm:$0xff]  ;;  %v8226_v23 = vcombine.low %v728_v4, %v732_v6 }
  0xd6   :  { %1614 = vmatprep.mubr.bf16.mxu1 %v10132_v5  ;;  %1787 = vmatpush1.bf16.msra.mxu1 %v8164_v32  ;;  %v8213_v20 = vcombine.high %v713_v8, %v717_v9  ;;  %v752_v32 = vld [vmem:[#allocation5 + $0x3d0] sm:$0xff] }
  0xd7   :  { %1788 = vmatprep.subr.bf16.mxu1 %v8173_v33  ;;  %v756_v33 = vld [vmem:[#allocation5 + $0x3f0] sm:$0xff] }
  0xd8   :  { %1676 = vmatpush1.bf16.msra.mxu0 %v8170_v13  ;;  %v8227_v13 = vcombine.high %v728_v4, %v732_v6  ;;  %v9709_v4 = vld [vmem:[#allocation2] sm:$0xff] }
  0xd9   :  { %1677 = vmatprep.subr.bf16.mxu0 %v8179_v18  ;;  %v721_v18 = vld [vmem:[#allocation5 + $0x2d8] sm:$0xff] }
  0xda   :  { %1789 = vmatpush1.bf16.msra.mxu1 %v8172_v43  ;;  %v8221_v14 = vcombine.high %v721_v18, %v725_v19  ;;  %v8220_v36 = vcombine.low %v721_v18, %v725_v19  ;;  %v2083_v43 = vld [vmem:[#allocation8] sm:$0xff] }
  0xdb   :  { %1502 = vmatmul.mubr.bf16.gmra.mrb[12].mxu0 %v10098_v59  ;;  %1790 = vmatprep.subr.bf16.mxu1 %v8181_v45  ;;  %v8251_v45 = vcombine.high %v752_v32, %v756_v33  ;;  %v2115_v19 = vld [vmem:[#allocation8 + $0x100] sm:$0xff] }
  0xdc   :  { %1511 = vmatprep.mubr.bf16.mxu0 %v10138_v25  ;;  %1678 = vmatpush1.bf16.msra.mxu0 %v8178_v26  ;;  %v748_v26 = vld [vmem:[#allocation5 + $0x3b0] sm:$0xff] }
  0xdd   :  { %1679 = vmatprep.subr.bf16.mxu0 %v8187_v29  ;;  %1615 = vmatmul.mubr.bf16.gmra.mrb[12].mxu1 %v10098_v59  ;;  %v8196_v59 = vcombine.low %v697_v52, %v701_v53  ;;  %v733_v29 = vld [vmem:[#allocation5 + $0x338] sm:$0xff]  ;;  %v8242_v42 = vcombine.low %v744_v24, %v748_v26  ;;  %v2095_v52 = vld [vmem:[#allocation8 + $0x60] sm:$0xff]  ;;  %v8255_v53 = vcombine.high %v2083_v43, %v2087_v44 }
  0xde   :  { %1624 = vmatprep.mubr.bf16.mxu1 %v10138_v25  ;;  %1791 = vmatpush1.bf16.msra.mxu1 %v8180_v51  ;;  %v8229_v41 = vcombine.high %v729_v28, %v733_v29  ;;  %v2091_v51 = vld [vmem:[#allocation8 + $0x40] sm:$0xff] }
  0xdf   :  { %1792 = vmatprep.subr.bf16.mxu1 %v8189_v54  ;;  %v8263_v0 = vcombine.high %v2091_v51, %v2095_v52 }
  0xe0   :  { %1680 = vmatpush1.bf16.msra.mxu0 %v8186_v34  ;;  %v8243_v34 = vcombine.high %v744_v24, %v748_v26  ;;  %v2100_v24 = vld [vmem:[#allocation8 + $0x88] sm:$0xff] }
  0xe1   :  { %1681 = vmatprep.subr.bf16.mxu0 %v8195_v38  ;;  %v741_v38 = vld [vmem:[#allocation5 + $0x378] sm:$0xff]  ;;  %v2104_v26 = vld [vmem:[#allocation8 + $0xa8] sm:$0xff] }
  0xe2   :  { %1793 = vmatpush1.bf16.msra.mxu1 %v8188_v62  ;;  %v8237_v50 = vcombine.high %v737_v37, %v741_v38  ;;  %v8236_v54 = vcombine.low %v737_v37, %v741_v38  ;;  %v2099_v62 = vld [vmem:[#allocation8 + $0x80] sm:$0xff]  ;;  %v8272_v37 = vcombine.low %v2100_v24, %v2104_v26 }
  0xe3   :  { %1512 = vmatmul.mubr.bf16.gmra.mrb[16].mxu0 %v10104_v21  ;;  %1794 = vmatprep.subr.bf16.mxu1 %v8197_v2  ;;  %v2131_v38 = vld [vmem:[#allocation8 + $0x180] sm:$0xff] }
  0xe4   :  { %1521 = vmatprep.mubr.bf16.mxu0 %v10143_v39  ;;  %1682 = vmatpush1.bf16.msra.mxu0 %v8194_v47  ;;  %v749_v47 = vld [vmem:[#allocation5 + $0x3b8] sm:$0xff] }
  0xe5   :  { %1683 = vmatprep.subr.bf16.mxu0 %v8203_v35  ;;  %1625 = vmatmul.mubr.bf16.gmra.mrb[16].mxu1 %v10104_v21  ;;  %v8212_v21 = vcombine.low %v713_v8, %v717_v9  ;;  %v8250_v35 = vcombine.low %v752_v32, %v756_v33  ;;  %v8245_v57 = vcombine.high %v745_v46, %v749_v47  ;;  %v2111_v8 = vld [vmem:[#allocation8 + $0xe0] sm:$0xff]  ;;  %v2108_v32 = vld [vmem:[#allocation8 + $0xc8] sm:$0xff] }
  0xe6   :  { %1634 = vmatprep.mubr.bf16.mxu1 %v10143_v39  ;;  %1795 = vmatpush1.bf16.msra.mxu1 %v8196_v59  ;;  %v8244_v2 = vcombine.low %v745_v46, %v749_v47  ;;  %v2107_v59 = vld [vmem:[#allocation8 + $0xc0] sm:$0xff]  ;;  %v8271_v9 = vcombine.high %v2099_v62, %v2103_v63  ;;  %v2112_v33 = vld [vmem:[#allocation8 + $0xe8] sm:$0xff] }
  0xe7   :  { %1796 = vmatprep.subr.bf16.mxu1 %v8205_v58  ;;  %v8280_v46 = vcombine.low %v2108_v32, %v2112_v33  ;;  %v2139_v47 = vld [vmem:[#allocation8 + $0x1c0] sm:$0xff] }
  0xe8   :  { %1684 = vmatpush1.bf16.msra.mxu0 %v8202_v55  ;;  %v753_v55 = vld [vmem:[#allocation5 + $0x3d8] sm:$0xff] }
  0xe9   :  { %1685 = vmatprep.subr.bf16.mxu0 %v8211_v60  ;;  %v8254_v60 = vcombine.low %v2083_v43, %v2087_v44  ;;  %v8253_v6 = vcombine.high %v753_v55, %v757_v56  ;;  %v8252_v58 = vcombine.low %v753_v55, %v757_v56  ;;  %v8281_v43 = vcombine.high %v2108_v32, %v2112_v33  ;;  %v2120_v44 = vld [vmem:[#allocation8 + $0x128] sm:$0xff]  ;;  %v2147_v55 = vld [vmem:[#allocation8 + $0x200] sm:$0xff] }
  0xea   :  { %1797 = vmatpush1.bf16.msra.mxu1 %v8204_v17  ;;  %v8279_v17 = vcombine.high %v2107_v59, %v2111_v8  ;;  %v2151_v56 = vld [vmem:[#allocation8 + $0x220] sm:$0xff] }
  0xeb   :  { %1522 = vmatmul.mubr.bf16.gmra.mrb[20].mxu0 %v10110_v40  ;;  %1798 = vmatprep.subr.bf16.mxu1 %v8213_v20  ;;  %v2119_v20 = vld [vmem:[#allocation8 + $0x120] sm:$0xff] }
  0xec   :  { %1531 = vmatprep.mubr.bf16.mxu0 %v10149_v61  ;;  %1686 = vmatpush1.bf16.msra.mxu0 %v8210_v3  ;;  %v2084_v3 = vld [vmem:[#allocation8 + $0x8] sm:$0xff] }
  0xed   :  { %1687 = vmatprep.subr.bf16.mxu0 %v8219_v7  ;;  %1635 = vmatmul.mubr.bf16.gmra.mrb[20].mxu1 %v10110_v40  ;;  %v8228_v40 = vcombine.low %v729_v28, %v733_v29  ;;  %v8262_v7 = vcombine.low %v2091_v51, %v2095_v52  ;;  %v2123_v29 = vld [vmem:[#allocation8 + $0x140] sm:$0xff]  ;;  %v2128_v51 = vld [vmem:[#allocation8 + $0x168] sm:$0xff] }
  0xee   :  { %1644 = vmatprep.mubr.bf16.mxu1 %v10149_v61  ;;  %1799 = vmatpush1.bf16.msra.mxu1 %v8212_v21  ;;  %v8287_v21 = vcombine.high %v2115_v19, %v2119_v20 }
  0xef   :  { %1800 = vmatprep.subr.bf16.mxu1 %v8221_v14  ;;  %v2127_v14 = vld [vmem:[#allocation8 + $0x160] sm:$0xff] }
  0xf0   :  { %1688 = vmatpush1.bf16.msra.mxu0 %v8218_v10  ;;  %v2092_v10 = vld [vmem:[#allocation8 + $0x48] sm:$0xff] }
  0xf1   :  { %1689 = vmatprep.subr.bf16.mxu0 %v8227_v13  ;;  %v8270_v13 = vcombine.low %v2099_v62, %v2103_v63  ;;  %v8264_v28 = vcombine.low %v2092_v10, %v2096_v11  ;;  %v2136_v62 = vld [vmem:[#allocation8 + $0x1a8] sm:$0xff] }
  0xf2   :  { %1801 = vmatpush1.bf16.msra.mxu1 %v8220_v36  ;;  %v8295_v36 = vcombine.high %v2123_v29, %v2127_v14 }
  0xf3   :  { %1532 = vmatmul.mubr.bf16.gmra.mrb[24].mxu0 %v10114_v1  ;;  %1802 = vmatprep.subr.bf16.mxu1 %v8229_v41  ;;  %v2135_v41 = vld [vmem:[#allocation8 + $0x1a0] sm:$0xff] }
  0xf4   :  { %1541 = vmatprep.mubr.bf16.mxu0 %v10155_v15  ;;  %1690 = vmatpush1.bf16.msra.mxu0 %v8226_v23  ;;  %v9710_v23 = vld [vmem:[#allocation2 + $0x10] sm:$0xff]  ;;  %v8302_v52 = vcombine.low %v2131_v38, %v2135_v41 }
  0xf5   :  { %1691 = vmatprep.subr.bf16.mxu0 %v8235_v27  ;;  %1645 = vmatmul.mubr.bf16.gmra.mrb[24].mxu1 %v10114_v1  ;;  %v2088_v1 = vld [vmem:[#allocation8 + $0x28] sm:$0xff]  ;;  %v8278_v27 = vcombine.low %v2107_v59, %v2111_v8 }
  0xf6   :  { %1654 = vmatprep.mubr.bf16.mxu1 %v10155_v15  ;;  %1803 = vmatpush1.bf16.msra.mxu1 %v8228_v40  ;;  %v8257_v12 = vcombine.high %v2084_v3, %v2088_v1  ;;  %v8256_v18 = vcombine.low %v2084_v3, %v2088_v1  ;;  %v8303_v40 = vcombine.high %v2131_v38, %v2135_v41  ;;  %v10174_v3 = vld [vmem:[#allocation8 + $0x420] sm:$0xff]  ;;  %v10176_v1 = vld [vmem:[#allocation8 + $0x408] sm:$0xff] }
  0xf7   :  { %1804 = vmatprep.subr.bf16.mxu1 %v8237_v50  ;;  %v10179_v59 = vld [vmem:[#allocation8 + $0x428] sm:$0xff] }
  0xf8   :  { %1692 = vmatpush1.bf16.msra.mxu0 %v8234_v31  ;;  %v8273_v31 = vcombine.high %v2100_v24, %v2104_v26  ;;  %v9714_v38 = vld [vmem:[#allocation2 + $0x50] sm:$0xff] }
  0xf9   :  { %1693 = vmatprep.subr.bf16.mxu0 %v8243_v34  ;;  %v8286_v34 = vcombine.low %v2115_v19, %v2119_v20  ;;  %v9713_v19 = vld [vmem:[#allocation2 + $0x40] sm:$0xff] }
  0xfa   :  { %1805 = vmatpush1.bf16.msra.mxu1 %v8236_v54 }
  0xfb   :  { %1542 = vmatmul.mubr.bf16.gmra.mrb[28].mxu0 %v10118_v22  ;;  %1806 = vmatprep.subr.bf16.mxu1 %v8245_v57  ;;  %v9712_v57 = vld [vmem:[#allocation2 + $0x30] sm:$0xff] }
  0xfc   :  { %1697 = vmatprep.mubr.bf16.mxu0 %v9708_v48  ;;  %1694 = vmatpush1.bf16.msra.mxu0 %v8242_v42  ;;  %v9711_v42 = vld [vmem:[#allocation2 + $0x20] sm:$0xff] }
  0xfd   :  { %1695 = vmatprep.subr.bf16.mxu0 %v8251_v45  ;;  %1655 = vmatmul.mubr.bf16.gmra.mrb[28].mxu1 %v10118_v22  ;;  %v8265_v22 = vcombine.high %v2092_v10, %v2096_v11  ;;  %v8294_v45 = vcombine.low %v2123_v29, %v2127_v14  ;;  %v2140_v10 = vld [vmem:[#allocation8 + $0x1c8] sm:$0xff] }
  0xfe   :  { %1807 = vmatpush1.bf16.msra.mxu1 %v8244_v2  ;;  %1810 = vmatprep.mubr.bf16.mxu1 %v9708_v48  ;;  %v2143_v48 = vld [vmem:[#allocation8 + $0x1e0] sm:$0xff]  ;;  %v2144_v11 = vld [vmem:[#allocation8 + $0x1e8] sm:$0xff] }
  0xff   :  { %1808 = vmatprep.subr.bf16.mxu1 %v8253_v6  ;;  %v8310_v63 = vcombine.low %v2139_v47, %v2143_v48  ;;  %v10172_v2 = vld [vmem:[#allocation8 + $0x400] sm:$0xff]  ;;  %v8313_v20 = vcombine.high %v2140_v10, %v2144_v11  ;;  %v2156_v14 = vld [vmem:[#allocation8 + $0x248] sm:$0xff] }
 0x100   :  { %1696 = vmatpush1.bf16.msra.mxu0 %v8250_v35  ;;  %v2124_v35 = vld [vmem:[#allocation8 + $0x148] sm:$0xff]  ;;  %v2155_v6 = vld [vmem:[#allocation8 + $0x240] sm:$0xff] }
 0x101   :  { %5196 = vmatprep.subr.bf16.mxu0 %v8255_v53  ;;  %v8311_v53 = vcombine.high %v2139_v47, %v2143_v48  ;;  %v2172_v47 = vld [vmem:[#allocation8 + $0x2c8] sm:$0xff] }
 0x102   :  { %1809 = vmatpush1.bf16.msra.mxu1 %v8252_v58  ;;  %v8384_v58 = vcombine.low %v10176_v1, %v10179_v59  ;;  %v2176_v48 = vld [vmem:[#allocation8 + $0x2e8] sm:$0xff] }
 0x103   :  { %1698 = vmatmul.mubr.bf16.vlgmr.msra.gmra.mrb[32].mxu0 %v9709_v4  ;;  %5648 = vmatprep.subr.bf16.mxu1 %v8257_v12  ;;  %v8318_v12 = vcombine.low %v2147_v55, %v2151_v56 }
 0x104   :  { %1707 = vmatprep.mubr.bf16.mxu0 %v10122_v30  ;;  %5197 = vmatpush1.bf16.msra.mxu0 %v8254_v60  ;;  %v8297_v60 = vcombine.high %v2124_v35, %v2128_v51 }
 0x105   :  { %5198 = vmatprep.subr.bf16.mxu0 %v8263_v0  ;;  %1811 = vmatmul.mubr.bf16.vlgmr.msra.gmra.mrb[32].mxu1 %v9709_v4  ;;  %v8319_v0 = vcombine.high %v2147_v55, %v2151_v56  ;;  %v8296_v4 = vcombine.low %v2124_v35, %v2128_v51  ;;  %v8345_v55 = vcombine.high %v2172_v47, %v2176_v48  ;;  %v2184_v56 = vld [vmem:[#allocation8 + $0x328] sm:$0xff] }
 0x106   :  { %5649 = vmatpush1.bf16.msra.mxu1 %v8256_v18  ;;  %1820 = vmatprep.mubr.bf16.mxu1 %v10122_v30  ;;  %v2116_v30 = vld [vmem:[#allocation8 + $0x108] sm:$0xff]  ;;  %v2167_v18 = vld [vmem:[#allocation8 + $0x2a0] sm:$0xff] }
 0x107   :  { %5650 = vmatprep.subr.bf16.mxu1 %v8265_v22  ;;  %v8289_v50 = vcombine.high %v2116_v30, %v2120_v44  ;;  %v8288_v54 = vcombine.low %v2116_v30, %v2120_v44  ;;  %v2152_v22 = vld [vmem:[#allocation8 + $0x228] sm:$0xff] }
 0x108   :  { %5199 = vmatpush1.bf16.msra.mxu0 %v8262_v7  ;;  %v2159_v7 = vld [vmem:[#allocation8 + $0x260] sm:$0xff] }
 0x109   :  { %5200 = vmatprep.subr.bf16.mxu0 %v8271_v9  ;;  %v8382_v9 = vcombine.low %v10172_v2, %v10174_v3  ;;  %v8326_v24 = vcombine.low %v2155_v6, %v2159_v7 }
 0x10a   :  { %5651 = vmatpush1.bf16.msra.mxu1 %v8264_v28  ;;  %v2175_v28 = vld [vmem:[#allocation8 + $0x2e0] sm:$0xff] }
 0x10b   :  { %1708 = vmatmul.mubr.bf16.gmra.mrb[36].mxu0 %v9710_v23  ;;  %5652 = vmatprep.subr.bf16.mxu1 %v8273_v31  ;;  %v2160_v31 = vld [vmem:[#allocation8 + $0x268] sm:$0xff] }
 0x10c   :  { %1717 = vmatprep.mubr.bf16.mxu0 %v10126_v49  ;;  %5201 = vmatpush1.bf16.msra.mxu0 %v8270_v13  ;;  %v8327_v13 = vcombine.high %v2155_v6, %v2159_v7  ;;  %v8329_v41 = vcombine.high %v2156_v14, %v2160_v31  ;;  %v8328_v44 = vcombine.low %v2156_v14, %v2160_v31  ;;  %v2192_v6 = vld [vmem:[#allocation8 + $0x368] sm:$0xff] }
 0x10d   :  { %5202 = vmatprep.subr.bf16.mxu0 %v8279_v17  ;;  %1821 = vmatmul.mubr.bf16.gmra.mrb[36].mxu1 %v9710_v23  ;;  %v2163_v17 = vld [vmem:[#allocation8 + $0x280] sm:$0xff]  ;;  %v2148_v23 = vld [vmem:[#allocation8 + $0x208] sm:$0xff] }
 0x10e   :  { %5653 = vmatpush1.bf16.msra.mxu1 %v8272_v37  ;;  %1830 = vmatprep.mubr.bf16.mxu1 %v10126_v49  ;;  %v2132_v49 = vld [vmem:[#allocation8 + $0x188] sm:$0xff]  ;;  %v8335_v26 = vcombine.high %v2163_v17, %v2167_v18  ;;  %v8321_v29 = vcombine.high %v2148_v23, %v2152_v22  ;;  %v8334_v32 = vcombine.low %v2163_v17, %v2167_v18  ;;  %v2183_v37 = vld [vmem:[#allocation8 + $0x320] sm:$0xff] }
 0x10f   :  { %5654 = vmatprep.subr.bf16.mxu1 %v8281_v43  ;;  %v8305_v8 = vcombine.high %v2132_v49, %v2136_v62  ;;  %v8383_v17 = vcombine.high %v10172_v2, %v10174_v3  ;;  %v10259_v2 = vld [vmem:[#allocation8 + $0x4e0] sm:$0xff] }
 0x110   :  { %5203 = vmatpush1.bf16.msra.mxu0 %v8278_v27  ;;  %v8312_v27 = vcombine.low %v2140_v10, %v2144_v11  ;;  %v9716_v11 = vld [vmem:[#allocation2 + $0x70] sm:$0xff] }
 0x111   :  { %5204 = vmatprep.subr.bf16.mxu0 %v8287_v21  ;;  %v2171_v21 = vld [vmem:[#allocation8 + $0x2c0] sm:$0xff] }
 0x112   :  { %5655 = vmatpush1.bf16.msra.mxu1 %v8280_v46  ;;  %v8343_v33 = vcombine.high %v2171_v21, %v2175_v28  ;;  %v8342_v43 = vcombine.low %v2171_v21, %v2175_v28  ;;  %v10197_v21 = vld [vmem:[#allocation7] sm:$0xff]  ;;  %v11669_v28 = vsub.s32 1, %v10056_v16 }
 0x113   :  { %1718 = vmatmul.mubr.bf16.gmra.mrb[40].mxu0 %v9711_v42  ;;  %5656 = vmatprep.subr.bf16.mxu1 %v8289_v50 }
 0x114   :  { %1727 = vmatprep.mubr.bf16.mxu0 %v10132_v5  ;;  %5205 = vmatpush1.bf16.msra.mxu0 %v8286_v34  ;;  %v8320_v34 = vcombine.low %v2148_v23, %v2152_v22  ;;  %v2208_v23 = vld [vmem:[#allocation8 + $0x3e8] sm:$0xff]  ;;  %v10208_v14 = vrot.slane %v10197_v21, %v11669_v28 }
 0x115   :  { %5206 = vmatprep.subr.bf16.mxu0 %v8295_v36  ;;  %1831 = vmatmul.mubr.bf16.gmra.mrb[40].mxu1 %v9711_v42  ;;  %v2179_v36 = vld [vmem:[#allocation8 + $0x300] sm:$0xff]  ;;  %v2168_v42 = vld [vmem:[#allocation8 + $0x2a8] sm:$0xff] }
 0x116   :  { %5657 = vmatpush1.bf16.msra.mxu1 %v8288_v54  ;;  %1840 = vmatprep.mubr.bf16.mxu1 %v10132_v5  ;;  %v8304_v5 = vcombine.low %v2132_v49, %v2136_v62  ;;  %v8351_v30 = vcombine.high %v2179_v36, %v2183_v37  ;;  %v8350_v50 = vcombine.low %v2179_v36, %v2183_v37  ;;  %v9715_v54 = vld [vmem:[#allocation2 + $0x60] sm:$0xff]  ;;  %v2203_v62 = vld [vmem:[#allocation8 + $0x3c0] sm:$0xff] }
 0x117   :  { %5658 = vmatprep.subr.bf16.mxu1 %v8297_v60  ;;  %v8344_v49 = vcombine.low %v2172_v47, %v2176_v48  ;;  %v2220_v47 = vld [vmem:[#allocation8 + $0x448] sm:$0xff] }
 0x118   :  { %5207 = vmatpush1.bf16.msra.mxu0 %v8294_v45  ;;  %v2187_v45 = vld [vmem:[#allocation8 + $0x340] sm:$0xff]  ;;  %v2224_v48 = vld [vmem:[#allocation8 + $0x468] sm:$0xff] }
 0x119   :  { %5208 = vmatprep.subr.bf16.mxu0 %v8303_v40  ;;  %v2191_v40 = vld [vmem:[#allocation8 + $0x360] sm:$0xff] }
 0x11a   :  { %5659 = vmatpush1.bf16.msra.mxu1 %v8296_v4  ;;  %v8359_v35 = vcombine.high %v2187_v45, %v2191_v40  ;;  %v2188_v4 = vld [vmem:[#allocation8 + $0x348] sm:$0xff] }
 0x11b   :  { %1728 = vmatmul.mubr.bf16.gmra.mrb[44].mxu0 %v9712_v57  ;;  %5660 = vmatprep.subr.bf16.mxu1 %v8305_v8  ;;  %v8360_v18 = vcombine.low %v2188_v4, %v2192_v6 }
 0x11c   :  { %1737 = vmatprep.mubr.bf16.mxu0 %v10138_v25  ;;  %5209 = vmatpush1.bf16.msra.mxu0 %v8302_v52  ;;  %v2195_v52 = vld [vmem:[#allocation8 + $0x380] sm:$0xff] }
 0x11d   :  { %5210 = vmatprep.subr.bf16.mxu0 %v8311_v53  ;;  %1841 = vmatmul.mubr.bf16.gmra.mrb[44].mxu1 %v9712_v57  ;;  %v2199_v53 = vld [vmem:[#allocation8 + $0x3a0] sm:$0xff]  ;;  %v8358_v57 = vcombine.low %v2187_v45, %v2191_v40 }
 0x11e   :  { %5661 = vmatpush1.bf16.msra.mxu1 %v8304_v5  ;;  %1850 = vmatprep.mubr.bf16.mxu1 %v10138_v25  ;;  %v2164_v25 = vld [vmem:[#allocation8 + $0x288] sm:$0xff]  ;;  %v8367_v60 = vcombine.high %v2195_v52, %v2199_v53  ;;  %v8366_v7 = vcombine.low %v2195_v52, %v2199_v53 }
 0x11f   :  { %5662 = vmatprep.subr.bf16.mxu1 %v8313_v20  ;;  %v8337_v46 = vcombine.high %v2164_v25, %v2168_v42  ;;  %v8336_v51 = vcombine.low %v2164_v25, %v2168_v42  ;;  %v2200_v5 = vld [vmem:[#allocation8 + $0x3a8] sm:$0xff]  ;;  %v11670_v25 = vsub.s32 2, %v10056_v16 }
 0x120   :  { %5211 = vmatpush1.bf16.msra.mxu0 %v8310_v63  ;;  %v2207_v63 = vld [vmem:[#allocation8 + $0x3e0] sm:$0xff]  ;;  %v2204_v20 = vld [vmem:[#allocation8 + $0x3c8] sm:$0xff] }
 0x121   :  { %5212 = vmatprep.subr.bf16.mxu0 %v8319_v0  ;;  %v8375_v8 = vcombine.high %v2203_v62, %v2207_v63  ;;  %v10223_v52 = vrot.slane %v10197_v21, %v11670_v25 }
 0x122   :  { %5663 = vmatpush1.bf16.msra.mxu1 %v8312_v27  ;;  %v8385_v27 = vcombine.high %v10176_v1, %v10179_v59 }
 0x123   :  { %1738 = vmatmul.mubr.bf16.gmra.mrb[48].mxu0 %v9713_v19  ;;  %5664 = vmatprep.subr.bf16.mxu1 %v8321_v29 }
 0x124   :  { %1747 = vmatprep.mubr.bf16.mxu0 %v10143_v39  ;;  %5213 = vmatpush1.bf16.msra.mxu0 %v8318_v12  ;;  %v8361_v12 = vcombine.high %v2188_v4, %v2192_v6 }
 0x125   :  { %5214 = vmatprep.subr.bf16.mxu0 %v8327_v13  ;;  %1851 = vmatmul.mubr.bf16.gmra.mrb[48].mxu1 %v9713_v19  ;;  %v2196_v13 = vld [vmem:[#allocation8 + $0x388] sm:$0xff] }
 0x126   :  { %5665 = vmatpush1.bf16.msra.mxu1 %v8320_v34  ;;  %1860 = vmatprep.mubr.bf16.mxu1 %v10143_v39  ;;  %v2180_v39 = vld [vmem:[#allocation8 + $0x308] sm:$0xff]  ;;  %v8369_v19 = vcombine.high %v2196_v13, %v2200_v5  ;;  %v8368_v22 = vcombine.low %v2196_v13, %v2200_v5 }
 0x127   :  { %5666 = vmatprep.subr.bf16.mxu1 %v8329_v41  ;;  %v8353_v0 = vcombine.high %v2180_v39, %v2184_v56  ;;  %v8352_v10 = vcombine.low %v2180_v39, %v2184_v56  ;;  %v8393_v39 = vcombine.high %v2220_v47, %v2224_v48  ;;  %v10226_v56 = vld [vmem:[#allocation8 + $0x480] sm:$0xff] }
 0x128   :  { %5215 = vmatpush1.bf16.msra.mxu0 %v8326_v24  ;;  %v8377_v24 = vcombine.high %v2204_v20, %v2208_v23 }
 0x129   :  { %5216 = vmatprep.subr.bf16.mxu0 %v8335_v26  ;;  %v8376_v26 = vcombine.low %v2204_v20, %v2208_v23  ;;  %v10264_v20 = vld [vmem:[#allocation8 + $0x4e8] sm:$0xff] }
 0x12a   :  { %5667 = vmatpush1.bf16.msra.mxu1 %v8328_v44  ;;  %v11668_v44 = vsub.s32 3, %v10056_v16 }
 0x12b   :  { %1748 = vmatmul.mubr.bf16.gmra.mrb[52].mxu0 %v9714_v38  ;;  %5668 = vmatprep.subr.bf16.mxu1 %v8337_v46  ;;  %v2223_v46 = vld [vmem:[#allocation8 + $0x460] sm:$0xff] }
 0x12c   :  { %1757 = vmatprep.mubr.bf16.mxu0 %v10149_v61  ;;  %5217 = vmatpush1.bf16.msra.mxu0 %v8334_v32 }
 0x12d   :  { %5218 = vmatprep.subr.bf16.mxu0 %v8343_v33  ;;  %1861 = vmatmul.mubr.bf16.gmra.mrb[52].mxu1 %v9714_v38 }
 0x12e   :  { %5669 = vmatpush1.bf16.msra.mxu1 %v8336_v51  ;;  %1870 = vmatprep.mubr.bf16.mxu1 %v10149_v61  ;;  %v8374_v61 = vcombine.low %v2203_v62, %v2207_v63  ;;  %v10238_v63 = vld [vmem:[#allocation8 + $0x488] sm:$0xff] }
 0x12f   :  { %5670 = vmatprep.subr.bf16.mxu1 %v8345_v55 }
 0x130   :  { %5219 = vmatpush1.bf16.msra.mxu0 %v8342_v43 }
 0x131   :  { %5220 = vmatprep.subr.bf16.mxu0 %v8351_v30  ;;  %v2219_v30 = vld [vmem:[#allocation8 + $0x440] sm:$0xff] }
 0x132   :  { %5671 = vmatpush1.bf16.msra.mxu1 %v8344_v49  ;;  %v8391_v55 = vcombine.high %v2219_v30, %v2223_v46 }
 0x133   :  { %1758 = vmatmul.mubr.bf16.gmra.mrb[56].mxu0 %v9715_v54  ;;  %5672 = vmatprep.subr.bf16.mxu1 %v8353_v0  ;;  %v10240_v0 = vld [vmem:[#allocation8 + $0x4a8] sm:$0xff] }
 0x134   :  { %1767 = vmatprep.mubr.bf16.mxu0 %v10155_v15  ;;  %5221 = vmatpush1.bf16.msra.mxu0 %v8350_v50 }
 0x135   :  { %5222 = vmatprep.subr.bf16.mxu0 %v8359_v35  ;;  %1871 = vmatmul.mubr.bf16.gmra.mrb[56].mxu1 %v9715_v54 }
 0x136   :  { %5673 = vmatpush1.bf16.msra.mxu1 %v8352_v10  ;;  %1880 = vmatprep.mubr.bf16.mxu1 %v10155_v15  ;;  %v11671_v15 = vsub.s32 0, %v10056_v16 }
 0x137   :  { %5674 = vmatprep.subr.bf16.mxu1 %v8361_v12 }
 0x138   :  { %5223 = vmatpush1.bf16.msra.mxu0 %v8358_v57  ;;  %v10203_v29 = vrot.slane %v10197_v21, %v11671_v15  ;;  %v10228_v57 = vld [vmem:[#allocation8 + $0x4a0] sm:$0xff] }
 0x139   :  { %5224 = vmatprep.subr.bf16.mxu0 %v8367_v60  ;;  %v10233_v60 = vrot.slane %v10197_v21, %v11668_v44  ;;  %v8399_v12 = vcombine.high %v10226_v56, %v10228_v57 }
 0x13a   :  { %5675 = vmatpush1.bf16.msra.mxu1 %v8360_v18  ;;  %v8401_v18 = vcombine.high %v10238_v63, %v10240_v0 }
 0x13b   :  { %1768 = vmatmul.mubr.bf16.gmra.mrb[60].mxu0 %v9716_v11  ;;  %5676 = vmatprep.subr.bf16.mxu1 %v8369_v19  ;;  %v10257_v19 = vld [vmem:[#allocation8 + $0x4c0] sm:$0xff] }
 0x13c   :  { %5225 = vmatpush1.bf16.msra.mxu0 %v8366_v7  ;;  %v8390_v7 = vcombine.low %v2219_v30, %v2223_v46  ;;  %v10281_v30 = vld [vmem:[#allocation8 + $0x500] sm:$0xff] }
 0x13d   :  { %5226 = vmatprep.subr.bf16.mxu0 %v8375_v8  ;;  %1881 = vmatmul.mubr.bf16.gmra.mrb[60].mxu1 %v9716_v11  ;;  %v8392_v8 = vcombine.low %v2220_v47, %v2224_v48  ;;  %v8406_v48 = vcombine.low %v10257_v19, %v10259_v2 }
 0x13e   :  { %5677 = vmatpush1.bf16.msra.mxu1 %v8368_v22 }
 0x13f   :  { %5678 = vmatprep.subr.bf16.mxu1 %v8377_v24 }
 0x140   :  { %5227 = vmatpush1.bf16.msra.mxu0 %v8374_v61 }
 0x141   :  { %5309 = vmatprep.subr.bf16.mxu0 %v8383_v17 }
 0x142   :  { %5679 = vmatpush1.bf16.msra.mxu1 %v8376_v26 }
 0x143   :  { %5761 = vmatprep.subr.bf16.mxu1 %v8385_v27 }
 0x196   :  { %v1473_v31 = vpop.f32.mrb[0].mxu0 }
 0x197   :  { %v1474_v32 = vadd.f32 %v1473_v31, %v10203_v29  ;;  %v1475_v33 = vpop.f32.mrb[1].mxu0 }
 0x198   :  { %v1476_v34 = vadd.f32 %v1475_v33, %v10208_v14  ;;  %v1477_v36 = vpop.f32.mrb[2].mxu0  ;;  %v1586_v10 = vpop.f32.mrb[0].mxu1 }
 0x199   :  { %v1478_v37 = vadd.f32 %v1477_v36, %v10203_v29  ;;  %v1479_v38 = vpop.f32.mrb[3].mxu0  ;;  %v1891_v42 = vmax.f32 %v1474_v32, 0.0  ;;  %v1587_v13 = vadd.f32 %v1586_v10, %v10223_v52  ;;  %v1588_v5 = vpop.f32.mrb[1].mxu1  ;;  %v8400_v36 = vcombine.low %v10238_v63, %v10240_v0  ;;  %v10309_v10 = vld [vmem:[#allocation8 + $0x540] sm:$0xff] }
 0x19a   :  { %v1480_v41 = vadd.f32 %v1479_v38, %v10208_v14  ;;  %v1892_v45 = vmax.f32 %v1476_v34, 0.0  ;;  %v1589_v3 = vadd.f32 %v1588_v5, %v10233_v60  ;;  %v1590_v1 = vpop.f32.mrb[2].mxu1  ;;  %v8398_v34 = vcombine.low %v10226_v56, %v10228_v57 }
 0x19b   :  { %v1899_v43 = vmax.f32 %v1478_v37, 0.0  ;;  %v1893_v23 = vmax.f32 %v1587_v13, 0.0  ;;  %v1591_v22 = vadd.f32 %v1590_v1, %v10223_v52  ;;  %v1592_v24 = vpop.f32.mrb[3].mxu1 }
 0x19c   :  { %v1900_v40 = vmax.f32 %v1480_v41, 0.0  ;;  %v1894_v27 = vmax.f32 %v1589_v3, 0.0  ;;  %v1593_v31 = vadd.f32 %v1592_v24, %v10233_v60 }
 0x19d   :  { %v10216_v50 = vpack.c.bf16 %v1899_v43, %v1891_v42  ;;  %v1901_v37 = vmax.f32 %v1591_v22, 0.0  ;;  %v8407_v42 = vcombine.high %v10257_v19, %v10259_v2 }
 0x19e   :  { %v10218_v35 = vpack.c.bf16 %v1900_v40, %v1892_v45  ;;  %v1483_v51 = vpop.f32.mrb[4].mxu0  ;;  %v10283_v45 = vld [vmem:[#allocation8 + $0x520] sm:$0xff]  ;;  %v1902_v40 = vmax.f32 %v1593_v31, 0.0 }
 0x19f   :  { %v1484_v53 = vadd.f32 %v1483_v51, %v10203_v29  ;;  %v1485_v54 = vpop.f32.mrb[5].mxu0  ;;  %v10290_v51 = vld [vmem:[#allocation8 + $0x508] sm:$0xff]  ;;  %v8415_v63 = vcombine.high %v10281_v30, %v10283_v45 }
 0x1a0   :  { %v1486_v49 = vadd.f32 %v1485_v54, %v10208_v14  ;;  %v1487_v62 = vpop.f32.mrb[6].mxu0  ;;  %5228 = vmatprep.mubr.bf16.mxu0 %v10218_v35  ;;  %5680 = vmatprep.mubr.bf16.mxu1 %v10218_v35  ;;  %v10294_v54 = vpack.c.bf16 %v1901_v37, %v1893_v23  ;;  %v10301_v57 = vpack.c.bf16 %v1902_v40, %v1894_v27  ;;  %v10335_v37 = vld [vmem:[#allocation8 + $0x5a0] sm:$0xff] }
 0x1a1   :  { %v1488_v4 = vadd.f32 %v1487_v62, %v10203_v29  ;;  %v1489_v6 = vpop.f32.mrb[7].mxu0  ;;  %5229 = vmatmul.mubr.bf16.vlgmr.msra.gmra.mrb[64].mxu0 %v10216_v50  ;;  %5681 = vmatmul.mubr.bf16.vlgmr.msra.gmra.mrb[64].mxu1 %v10216_v50  ;;  %v1907_v61 = vmax.f32 %v1484_v53, 0.0  ;;  %v10292_v53 = vld [vmem:[#allocation8 + $0x528] sm:$0xff]  ;;  %v8414_v23 = vcombine.low %v10281_v30, %v10283_v45 }
 0x1a2   :  { %v1490_v11 = vadd.f32 %v1489_v6, %v10208_v14  ;;  %5310 = vmatpush1.bf16.msra.mxu0 %v8382_v9  ;;  %5762 = vmatpush1.bf16.msra.mxu1 %v8384_v58  ;;  %v1908_v59 = vmax.f32 %v1486_v49, 0.0  ;;  %v10262_v58 = vld [vmem:[#allocation8 + $0x4c8] sm:$0xff]  ;;  %11733 = vst [vmem:[#allocation20_spill] sm:$0xff] %v10294_v54  ;;  %11734 = vst [vmem:[#allocation21_spill] sm:$0xff] %v10301_v57  ;;  %v1596_v49 = vpop.f32.mrb[4].mxu1  ;;  %v8416_v22 = vcombine.low %v10290_v51, %v10292_v53 }
 0x1a3   :  { %v1915_v17 = vmax.f32 %v1488_v4, 0.0  ;;  %5311 = vmatprep.subr.bf16.mxu0 %v8391_v55  ;;  %5763 = vmatprep.subr.bf16.mxu1 %v8393_v39  ;;  %v8409_v43 = vcombine.high %v10262_v58, %v10264_v20  ;;  %v8408_v56 = vcombine.low %v10262_v58, %v10264_v20  ;;  %v1597_v0 = vadd.f32 %v1596_v49, %v10223_v52  ;;  %v1598_v4 = vpop.f32.mrb[5].mxu1  ;;  %v10342_v30 = vld [vmem:[#allocation8 + $0x588] sm:$0xff] }
 0x1a4   :  { %v1916_v9 = vmax.f32 %v1490_v11, 0.0  ;;  %v10311_v11 = vld [vmem:[#allocation8 + $0x560] sm:$0xff]  ;;  %v1600_v13 = vpop.f32.mrb[6].mxu1  ;;  %v10344_v45 = vld [vmem:[#allocation8 + $0x5a8] sm:$0xff] }
 0x1a5   :  { %v10267_v26 = vpack.c.bf16 %v1915_v17, %v1907_v61  ;;  %v10314_v17 = vld [vmem:[#allocation8 + $0x548] sm:$0xff]  ;;  %v1909_v19 = vmax.f32 %v1597_v0, 0.0  ;;  %v1601_v2 = vadd.f32 %v1600_v13, %v10223_v52  ;;  %v1602_v3 = vpop.f32.mrb[7].mxu1  ;;  %v8433_v0 = vcombine.high %v10342_v30, %v10344_v45 }
 0x1a6   :  { %v10270_v32 = vpack.c.bf16 %v1916_v9, %v1908_v59  ;;  %5312 = vmatpush1.bf16.msra.mxu0 %v8390_v7  ;;  %v1493_v33 = vpop.f32.mrb[8].mxu0  ;;  %5764 = vmatpush1.bf16.msra.mxu1 %v8392_v8  ;;  %v8417_v8 = vcombine.high %v10290_v51, %v10292_v53  ;;  %v1603_v9 = vadd.f32 %v1602_v3, %v10233_v60  ;;  %v10368_v13 = vld [vmem:[#allocation8 + $0x5e8] sm:$0xff] }
 0x1a7   :  { %11732 = vst [vmem:[#allocation19_spill] sm:$0xff] %v10267_v26  ;;  %v1494_v38 = vadd.f32 %v1493_v33, %v10203_v29  ;;  %v1495_v41 = vpop.f32.mrb[9].mxu0  ;;  %5313 = vmatprep.subr.bf16.mxu0 %v8399_v12  ;;  %5765 = vmatprep.subr.bf16.mxu1 %v8401_v18  ;;  %v1599_v12 = vadd.f32 %v1598_v4, %v10233_v60  ;;  %v10316_v18 = vld [vmem:[#allocation8 + $0x568] sm:$0xff]  ;;  %v1917_v24 = vmax.f32 %v1601_v2, 0.0  ;;  %v10361_v4 = vld [vmem:[#allocation8 + $0x5c0] sm:$0xff] }
 0x1a8   :  { %v1496_v46 = vadd.f32 %v1495_v41, %v10208_v14  ;;  %v1497_v47 = vpop.f32.mrb[10].mxu0  ;;  %5238 = vmatprep.mubr.bf16.mxu0 %v10270_v32  ;;  %5690 = vmatprep.mubr.bf16.mxu1 %v10270_v32  ;;  %v8423_v33 = vcombine.high %v10309_v10, %v10311_v11  ;;  %v1606_v53 = vpop.f32.mrb[8].mxu1 }
 0x1a9   :  { %v1498_v55 = vadd.f32 %v1497_v47, %v10203_v29  ;;  %v1499_v39 = vpop.f32.mrb[11].mxu0  ;;  %5239 = vmatmul.mubr.bf16.gmra.mrb[68].mxu0 %v10267_v26  ;;  %5691 = vmatmul.mubr.bf16.gmra.mrb[68].mxu1 %v10267_v26  ;;  %v1923_v6 = vmax.f32 %v1494_v38, 0.0  ;;  %v1910_v59 = vmax.f32 %v1599_v12, 0.0  ;;  %v1918_v38 = vmax.f32 %v1603_v9, 0.0  ;;  %v1608_v49 = vpop.f32.mrb[9].mxu1  ;;  %v10366_v12 = vld [vmem:[#allocation8 + $0x5c8] sm:$0xff] }
 0x1aa   :  { %v1500_v62 = vadd.f32 %v1499_v39, %v10208_v14  ;;  %5314 = vmatpush1.bf16.msra.mxu0 %v8398_v34  ;;  %5766 = vmatpush1.bf16.msra.mxu1 %v8400_v36  ;;  %v1924_v5 = vmax.f32 %v1496_v46, 0.0  ;;  %v8425_v34 = vcombine.high %v10314_v17, %v10316_v18  ;;  %v10333_v36 = vld [vmem:[#allocation8 + $0x580] sm:$0xff]  ;;  %v10346_v40 = vpack.c.bf16 %v1917_v24, %v1909_v19  ;;  %v2468_v26 = vld [vmem:[#allocation8 + $0xc08] sm:$0xff] }
 0x1ab   :  { %v1931_v7 = vmax.f32 %v1498_v55, 0.0  ;;  %5315 = vmatprep.subr.bf16.mxu0 %v8407_v42  ;;  %5767 = vmatprep.subr.bf16.mxu1 %v8409_v43  ;;  %v8422_v43 = vcombine.low %v10309_v10, %v10311_v11  ;;  %v10353_v51 = vpack.c.bf16 %v1918_v38, %v1910_v59  ;;  %v8431_v39 = vcombine.high %v10333_v36, %v10335_v37 }
 0x1ac   :  { %v1932_v61 = vmax.f32 %v1500_v62, 0.0  ;;  %11737 = vst [vmem:[#allocation24_spill] sm:$0xff] %v10346_v40  ;;  %v8430_v9 = vcombine.low %v10333_v36, %v10335_v37 }
 0x1ad   :  { %v10319_v1 = vpack.c.bf16 %v1931_v7, %v1923_v6  ;;  %11738 = vst [vmem:[#allocation25_spill] sm:$0xff] %v10353_v51  ;;  %v10363_v6 = vld [vmem:[#allocation8 + $0x5e0] sm:$0xff]  ;;  %v1609_v7 = vadd.f32 %v1608_v49, %v10233_v60 }
 0x1ae   :  { %v10322_v58 = vpack.c.bf16 %v1932_v61, %v1924_v5  ;;  %5316 = vmatpush1.bf16.msra.mxu0 %v8406_v48  ;;  %v1503_v20 = vpop.f32.mrb[12].mxu0  ;;  %5768 = vmatpush1.bf16.msra.mxu1 %v8408_v56  ;;  %v8424_v48 = vcombine.low %v10314_v17, %v10316_v18  ;;  %v1607_v56 = vadd.f32 %v1606_v53, %v10223_v52 }
 0x1af   :  { %11735 = vst [vmem:[#allocation22_spill] sm:$0xff] %v10319_v1  ;;  %v1504_v27 = vadd.f32 %v1503_v20, %v10203_v29  ;;  %v1505_v31 = vpop.f32.mrb[13].mxu0  ;;  %5317 = vmatprep.subr.bf16.mxu0 %v8415_v63  ;;  %5769 = vmatprep.subr.bf16.mxu1 %v8417_v8  ;;  %v1610_v8 = vpop.f32.mrb[10].mxu1  ;;  %v1926_v19 = vmax.f32 %v1609_v7, 0.0  ;;  %v8432_v20 = vcombine.low %v10342_v30, %v10344_v45 }
 0x1b0   :  { %11736 = vst [vmem:[#allocation23_spill] sm:$0xff] %v10322_v58  ;;  %v1506_v41 = vadd.f32 %v1505_v31, %v10208_v14  ;;  %v1507_v42 = vpop.f32.mrb[14].mxu0  ;;  %5248 = vmatprep.mubr.bf16.mxu0 %v10322_v58  ;;  %5700 = vmatprep.mubr.bf16.mxu1 %v10322_v58  ;;  %v1925_v5 = vmax.f32 %v1607_v56, 0.0  ;;  %v1611_v61 = vadd.f32 %v1610_v8, %v10223_v52  ;;  %v1612_v17 = vpop.f32.mrb[11].mxu1 }
 0x1b1   :  { %v1508_v46 = vadd.f32 %v1507_v42, %v10203_v29  ;;  %v1509_v47 = vpop.f32.mrb[15].mxu0  ;;  %5249 = vmatmul.mubr.bf16.gmra.mrb[72].mxu0 %v10319_v1  ;;  %5701 = vmatmul.mubr.bf16.gmra.mrb[72].mxu1 %v10319_v1  ;;  %v1939_v62 = vmax.f32 %v1504_v27, 0.0  ;;  %v1613_v2 = vadd.f32 %v1612_v17, %v10233_v60  ;;  %v8439_v27 = vcombine.high %v10361_v4, %v10363_v6  ;;  %v10394_v42 = vld [vmem:[#allocation8 + $0x608] sm:$0xff]  ;;  %v1616_v53 = vpop.f32.mrb[12].mxu1 }
 0x1b2   :  { %v1510_v55 = vadd.f32 %v1509_v47, %v10208_v14  ;;  %5318 = vmatpush1.bf16.msra.mxu0 %v8414_v23  ;;  %5770 = vmatpush1.bf16.msra.mxu1 %v8416_v22  ;;  %v1940_v10 = vmax.f32 %v1506_v41, 0.0  ;;  %v1933_v23 = vmax.f32 %v1611_v61, 0.0  ;;  %v8441_v31 = vcombine.high %v10366_v12, %v10368_v13  ;;  %v1618_v49 = vpop.f32.mrb[13].mxu1 }
 0x1b3   :  { %v1947_v63 = vmax.f32 %v1508_v46, 0.0  ;;  %5319 = vmatprep.subr.bf16.mxu0 %v8423_v33  ;;  %5771 = vmatprep.subr.bf16.mxu1 %v8425_v34  ;;  %v10385_v33 = vld [vmem:[#allocation8 + $0x600] sm:$0xff]  ;;  %v1934_v36 = vmax.f32 %v1613_v2, 0.0  ;;  %v8438_v41 = vcombine.low %v10361_v4, %v10363_v6  ;;  %v8440_v47 = vcombine.low %v10366_v12, %v10368_v13  ;;  %v1620_v8 = vpop.f32.mrb[14].mxu1  ;;  %v10418_v12 = vld [vmem:[#allocation8 + $0x648] sm:$0xff] }
 0x1b4   :  { %v1948_v11 = vmax.f32 %v1510_v55, 0.0  ;;  %v10387_v34 = vld [vmem:[#allocation8 + $0x620] sm:$0xff]  ;;  %v10398_v30 = vpack.c.bf16 %v1933_v23, %v1925_v5  ;;  %v1617_v56 = vadd.f32 %v1616_v53, %v10223_v52  ;;  %v1619_v7 = vadd.f32 %v1618_v49, %v10233_v60  ;;  %v10420_v13 = vld [vmem:[#allocation8 + $0x668] sm:$0xff]  ;;  %v1622_v17 = vpop.f32.mrb[15].mxu1 }
 0x1b5   :  { %v10371_v18 = vpack.c.bf16 %v1947_v63, %v1939_v62  ;;  %v10413_v4 = vld [vmem:[#allocation8 + $0x640] sm:$0xff]  ;;  %v1621_v61 = vadd.f32 %v1620_v8, %v10223_v52  ;;  %v8446_v2 = vcombine.low %v10385_v33, %v10387_v34 }
 0x1b6   :  { %v10374_v3 = vpack.c.bf16 %v1948_v11, %v1940_v10  ;;  %5320 = vmatpush1.bf16.msra.mxu0 %v8422_v43  ;;  %v1513_v59 = vpop.f32.mrb[16].mxu0  ;;  %5772 = vmatpush1.bf16.msra.mxu1 %v8424_v48  ;;  %v10396_v43 = vld [vmem:[#allocation8 + $0x628] sm:$0xff]  ;;  %11741 = vst [vmem:[#allocation28_spill] sm:$0xff] %v10398_v30  ;;  %v10405_v48 = vpack.c.bf16 %v1934_v36, %v1926_v19  ;;  %v10415_v6 = vld [vmem:[#allocation8 + $0x660] sm:$0xff]  ;;  %v1941_v5 = vmax.f32 %v1617_v56, 0.0 }
 0x1b7   :  { %11739 = vst [vmem:[#allocation26_spill] sm:$0xff] %v10371_v18  ;;  %v1514_v22 = vadd.f32 %v1513_v59, %v10203_v29  ;;  %v1515_v24 = vpop.f32.mrb[17].mxu0  ;;  %5321 = vmatprep.subr.bf16.mxu0 %v8431_v39  ;;  %5773 = vmatprep.subr.bf16.mxu1 %v8433_v0  ;;  %v8447_v39 = vcombine.high %v10385_v33, %v10387_v34  ;;  %v1942_v59 = vmax.f32 %v1619_v7, 0.0  ;;  %v1949_v36 = vmax.f32 %v1621_v61, 0.0 }
 0x1b8   :  { %11740 = vst [vmem:[#allocation27_spill] sm:$0xff] %v10374_v3  ;;  %v1516_v37 = vadd.f32 %v1515_v24, %v10208_v14  ;;  %v1517_v38 = vpop.f32.mrb[18].mxu0  ;;  %5258 = vmatprep.mubr.bf16.mxu0 %v10374_v3  ;;  %5710 = vmatprep.mubr.bf16.mxu1 %v10374_v3  ;;  %11742 = vst [vmem:[#allocation29_spill] sm:$0xff] %v10405_v48  ;;  %v8449_v0 = vcombine.high %v10394_v42, %v10396_v43 }
 0x1b9   :  { %v1518_v45 = vadd.f32 %v1517_v38, %v10203_v29  ;;  %v1519_v46 = vpop.f32.mrb[19].mxu0  ;;  %5259 = vmatmul.mubr.bf16.gmra.mrb[76].mxu0 %v10371_v18  ;;  %5711 = vmatmul.mubr.bf16.gmra.mrb[76].mxu1 %v10371_v18  ;;  %v1955_v62 = vmax.f32 %v1514_v22, 0.0  ;;  %v8448_v22 = vcombine.low %v10394_v42, %v10396_v43  ;;  %v8455_v24 = vcombine.high %v10413_v4, %v10415_v6  ;;  %v2448_v18 = vld [vmem:[#allocation8 + $0xb68] sm:$0xff] }
 0x1ba   :  { %v1520_v55 = vadd.f32 %v1519_v46, %v10208_v14  ;;  %5322 = vmatpush1.bf16.msra.mxu0 %v8430_v9  ;;  %5774 = vmatpush1.bf16.msra.mxu1 %v8432_v20  ;;  %v1956_v10 = vmax.f32 %v1516_v37, 0.0  ;;  %v1623_v9 = vadd.f32 %v1622_v17, %v10233_v60  ;;  %v8454_v37 = vcombine.low %v10413_v4, %v10415_v6  ;;  %v10448_v46 = vld [vmem:[#allocation8 + $0x688] sm:$0xff] }
 0x1bb   :  { %v1963_v63 = vmax.f32 %v1518_v45, 0.0  ;;  %5323 = vmatprep.subr.bf16.mxu0 %v8439_v27  ;;  %5775 = vmatprep.subr.bf16.mxu1 %v8441_v31  ;;  %v10434_v27 = vld [vmem:[#allocation8 + $0x680] sm:$0xff]  ;;  %v8457_v38 = vcombine.high %v10418_v12, %v10420_v13  ;;  %v8456_v45 = vcombine.low %v10418_v12, %v10420_v13  ;;  %v10452_v53 = vpack.c.bf16 %v1949_v36, %v1941_v5 }
 0x1bc   :  { %v1964_v11 = vmax.f32 %v1520_v55, 0.0  ;;  %v10436_v31 = vld [vmem:[#allocation8 + $0x6a0] sm:$0xff] }
 0x1bd   :  { %v10423_v19 = vpack.c.bf16 %v1963_v63, %v1955_v62  ;;  %11745 = vst [vmem:[#allocation32_spill] sm:$0xff] %v10452_v53  ;;  %v8463_v56 = vcombine.high %v10434_v27, %v10436_v31  ;;  %v1626_v62 = vpop.f32.mrb[16].mxu1  ;;  %v10469_v12 = vld [vmem:[#allocation8 + $0x6e0] sm:$0xff] }
 0x1be   :  { %v10428_v20 = vpack.c.bf16 %v1964_v11, %v1956_v10  ;;  %5324 = vmatpush1.bf16.msra.mxu0 %v8438_v41  ;;  %v1523_v23 = vpop.f32.mrb[20].mxu0  ;;  %5776 = vmatpush1.bf16.msra.mxu1 %v8440_v47  ;;  %v1950_v41 = vmax.f32 %v1623_v9, 0.0  ;;  %v10450_v47 = vld [vmem:[#allocation8 + $0x6a8] sm:$0xff]  ;;  %v1627_v4 = vadd.f32 %v1626_v62, %v10223_v52  ;;  %v1628_v6 = vpop.f32.mrb[17].mxu1  ;;  %v10467_v11 = vld [vmem:[#allocation8 + $0x6c0] sm:$0xff] }
 0x1bf   :  { %11743 = vst [vmem:[#allocation30_spill] sm:$0xff] %v10423_v19  ;;  %v1524_v33 = vadd.f32 %v1523_v23, %v10203_v29  ;;  %v1525_v34 = vpop.f32.mrb[21].mxu0  ;;  %5325 = vmatprep.subr.bf16.mxu0 %v8447_v39  ;;  %5777 = vmatprep.subr.bf16.mxu1 %v8449_v0  ;;  %v8462_v0 = vcombine.low %v10434_v27, %v10436_v31  ;;  %v1630_v5 = vpop.f32.mrb[18].mxu1  ;;  %v10481_v31 = vld [vmem:[#allocation8 + $0x700] sm:$0xff]  ;;  %v10497_v62 = vld [vmem:[#allocation8 + $0x708] sm:$0xff] }
 0x1c0   :  { %11744 = vst [vmem:[#allocation31_spill] sm:$0xff] %v10428_v20  ;;  %v1526_v42 = vadd.f32 %v1525_v34, %v10208_v14  ;;  %v1527_v43 = vpop.f32.mrb[22].mxu0  ;;  %5268 = vmatprep.mubr.bf16.mxu0 %v10428_v20  ;;  %5720 = vmatprep.mubr.bf16.mxu1 %v10428_v20  ;;  %v10459_v49 = vpack.c.bf16 %v1950_v41, %v1942_v59  ;;  %v10474_v59 = vld [vmem:[#allocation8 + $0x6e8] sm:$0xff]  ;;  %v1957_v9 = vmax.f32 %v1627_v4, 0.0  ;;  %v10483_v36 = vld [vmem:[#allocation8 + $0x720] sm:$0xff] }
 0x1c1   :  { %v1528_v55 = vadd.f32 %v1527_v43, %v10203_v29  ;;  %v1529_v39 = vpop.f32.mrb[23].mxu0  ;;  %5269 = vmatmul.mubr.bf16.gmra.mrb[80].mxu0 %v10423_v19  ;;  %5721 = vmatmul.mubr.bf16.gmra.mrb[80].mxu1 %v10423_v19  ;;  %v1971_v7 = vmax.f32 %v1524_v33, 0.0  ;;  %v8465_v10 = vcombine.high %v10448_v46, %v10450_v47  ;;  %v1629_v13 = vadd.f32 %v1628_v6, %v10233_v60  ;;  %v2432_v19 = vld [vmem:[#allocation8 + $0xae8] sm:$0xff] }
 0x1c2   :  { %11746 = vst [vmem:[#allocation33_spill] sm:$0xff] %v10459_v49  ;;  %v1530_v63 = vadd.f32 %v1529_v39, %v10208_v14  ;;  %5326 = vmatpush1.bf16.msra.mxu0 %v8446_v2  ;;  %5778 = vmatpush1.bf16.msra.mxu1 %v8448_v22  ;;  %v1972_v61 = vmax.f32 %v1526_v42, 0.0  ;;  %v10472_v2 = vld [vmem:[#allocation8 + $0x6c8] sm:$0xff]  ;;  %v1631_v23 = vadd.f32 %v1630_v5, %v10223_v52  ;;  %v1632_v22 = vpop.f32.mrb[19].mxu1 }
 0x1c3   :  { %v1979_v8 = vmax.f32 %v1528_v55, 0.0  ;;  %5327 = vmatprep.subr.bf16.mxu0 %v8455_v24  ;;  %5779 = vmatprep.subr.bf16.mxu1 %v8457_v38  ;;  %v8464_v27 = vcombine.low %v10448_v46, %v10450_v47  ;;  %v1958_v33 = vmax.f32 %v1629_v13, 0.0  ;;  %v1633_v34 = vadd.f32 %v1632_v22, %v10233_v60  ;;  %v1636_v13 = vpop.f32.mrb[20].mxu1 }
 0x1c4   :  { %v1980_v17 = vmax.f32 %v1530_v63, 0.0  ;;  %v8470_v42 = vcombine.low %v10467_v11, %v10469_v12  ;;  %v8471_v43 = vcombine.high %v10467_v11, %v10469_v12  ;;  %v1965_v55 = vmax.f32 %v1631_v23, 0.0 }
 0x1c5   :  { %v10477_v24 = vpack.c.bf16 %v1979_v8, %v1971_v7  ;;  %v8472_v39 = vcombine.low %v10472_v2, %v10474_v59  ;;  %v1966_v63 = vmax.f32 %v1633_v34, 0.0  ;;  %v8478_v11 = vcombine.low %v10481_v31, %v10483_v36 }
 0x1c6   :  { %v10486_v38 = vpack.c.bf16 %v1980_v17, %v1972_v61  ;;  %5328 = vmatpush1.bf16.msra.mxu0 %v8454_v37  ;;  %v1533_v41 = vpop.f32.mrb[24].mxu0  ;;  %5780 = vmatpush1.bf16.msra.mxu1 %v8456_v45  ;;  %v8473_v37 = vcombine.high %v10472_v2, %v10474_v59  ;;  %v10499_v45 = vld [vmem:[#allocation8 + $0x728] sm:$0xff]  ;;  %v10506_v7 = vpack.c.bf16 %v1965_v55, %v1957_v9  ;;  %v10518_v17 = vld [vmem:[#allocation8 + $0x740] sm:$0xff]  ;;  %v1638_v9 = vpop.f32.mrb[21].mxu1 }
 0x1c7   :  { %11747 = vst [vmem:[#allocation34_spill] sm:$0xff] %v10477_v24  ;;  %v1534_v46 = vadd.f32 %v1533_v41, %v10203_v29  ;;  %v1535_v47 = vpop.f32.mrb[25].mxu0  ;;  %5329 = vmatprep.subr.bf16.mxu0 %v8463_v56  ;;  %5781 = vmatprep.subr.bf16.mxu1 %v8465_v10  ;;  %v8479_v56 = vcombine.high %v10481_v31, %v10483_v36  ;;  %v10520_v2 = vld [vmem:[#allocation8 + $0x760] sm:$0xff]  ;;  %v10525_v36 = vld [vmem:[#allocation8 + $0x748] sm:$0xff] }
 0x1c8   :  { %11748 = vst [vmem:[#allocation35_spill] sm:$0xff] %v10486_v38  ;;  %v1536_v4 = vadd.f32 %v1535_v47, %v10208_v14  ;;  %v1537_v6 = vpop.f32.mrb[26].mxu0  ;;  %5278 = vmatprep.mubr.bf16.mxu0 %v10486_v38  ;;  %5730 = vmatprep.mubr.bf16.mxu1 %v10486_v38  ;;  %11749 = vst [vmem:[#allocation36_spill] sm:$0xff] %v10506_v7  ;;  %v10513_v12 = vpack.c.bf16 %v1966_v63, %v1958_v33  ;;  %v1640_v33 = vpop.f32.mrb[22].mxu1 }
 0x1c9   :  { %v1538_v8 = vadd.f32 %v1537_v6, %v10203_v29  ;;  %v1539_v10 = vpop.f32.mrb[27].mxu0  ;;  %5279 = vmatmul.mubr.bf16.gmra.mrb[84].mxu0 %v10477_v24  ;;  %5731 = vmatmul.mubr.bf16.gmra.mrb[84].mxu1 %v10477_v24  ;;  %v8480_v61 = vcombine.low %v10497_v62, %v10499_v45  ;;  %v1637_v59 = vadd.f32 %v1636_v13, %v10223_v52  ;;  %v1987_v23 = vmax.f32 %v1534_v46, 0.0  ;;  %v1642_v63 = vpop.f32.mrb[23].mxu1  ;;  %v2416_v24 = vld [vmem:[#allocation8 + $0xa68] sm:$0xff] }
 0x1ca   :  { %11750 = vst [vmem:[#allocation37_spill] sm:$0xff] %v10513_v12  ;;  %v1540_v5 = vadd.f32 %v1539_v10, %v10208_v14  ;;  %5330 = vmatpush1.bf16.msra.mxu0 %v8462_v0  ;;  %5782 = vmatpush1.bf16.msra.mxu1 %v8464_v27  ;;  %v8481_v31 = vcombine.high %v10497_v62, %v10499_v45  ;;  %v10527_v0 = vld [vmem:[#allocation8 + $0x768] sm:$0xff]  ;;  %v1988_v34 = vmax.f32 %v1536_v4, 0.0  ;;  %v10537_v62 = vld [vmem:[#allocation8 + $0x7a0] sm:$0xff] }
 0x1cb   :  { %v1995_v22 = vmax.f32 %v1538_v8, 0.0  ;;  %5331 = vmatprep.subr.bf16.mxu0 %v8471_v43  ;;  %5783 = vmatprep.subr.bf16.mxu1 %v8473_v37  ;;  %v1639_v27 = vadd.f32 %v1638_v9, %v10233_v60  ;;  %v1973_v55 = vmax.f32 %v1637_v59, 0.0  ;;  %v1641_v47 = vadd.f32 %v1640_v33, %v10223_v52  ;;  %v10535_v37 = vld [vmem:[#allocation8 + $0x780] sm:$0xff] }
 0x1cc   :  { %v1996_v41 = vmax.f32 %v1540_v5, 0.0  ;;  %v8487_v43 = vcombine.high %v10518_v17, %v10520_v2  ;;  %v1643_v6 = vadd.f32 %v1642_v63, %v10233_v60  ;;  %v8486_v10 = vcombine.low %v10518_v17, %v10520_v2 }
 0x1cd   :  { %v10531_v46 = vpack.c.bf16 %v1995_v22, %v1987_v23  ;;  %v1974_v45 = vmax.f32 %v1639_v27, 0.0  ;;  %v8488_v13 = vcombine.low %v10525_v36, %v10527_v0  ;;  %v1981_v5 = vmax.f32 %v1641_v47, 0.0  ;;  %v10549_v22 = vld [vmem:[#allocation8 + $0x788] sm:$0xff] }
 0x1ce   :  { %v10540_v8 = vpack.c.bf16 %v1996_v41, %v1988_v34  ;;  %5332 = vmatpush1.bf16.msra.mxu0 %v8470_v42  ;;  %v1543_v4 = vpop.f32.mrb[28].mxu0  ;;  %5784 = vmatpush1.bf16.msra.mxu1 %v8472_v39  ;;  %v8489_v23 = vcombine.high %v10525_v36, %v10527_v0  ;;  %v10551_v42 = vld [vmem:[#allocation8 + $0x7a8] sm:$0xff]  ;;  %v1982_v39 = vmax.f32 %v1643_v6, 0.0  ;;  %v11666_v27 = vsub.s32 4, %v10056_v16  ;;  %v1646_v41 = vpop.f32.mrb[24].mxu1 }
 0x1cf   :  { %11751 = vst [vmem:[#allocation38_spill] sm:$0xff] %v10531_v46  ;;  %v1544_v59 = vadd.f32 %v1543_v4, %v10203_v29  ;;  %v1545_v9 = vpop.f32.mrb[29].mxu0  ;;  %5333 = vmatprep.subr.bf16.mxu0 %v8479_v56  ;;  %5785 = vmatprep.subr.bf16.mxu1 %v8481_v31  ;;  %v8495_v56 = vcombine.high %v10535_v37, %v10537_v62  ;;  %v11667_v47 = vsub.s32 5, %v10056_v16  ;;  %v1648_v6 = vpop.f32.mrb[25].mxu1 }
 0x1d0   :  { %11752 = vst [vmem:[#allocation39_spill] sm:$0xff] %v10540_v8  ;;  %v1546_v17 = vadd.f32 %v1545_v9, %v10208_v14  ;;  %v1547_v2 = vpop.f32.mrb[30].mxu0  ;;  %5288 = vmatprep.mubr.bf16.mxu0 %v10540_v8  ;;  %5740 = vmatprep.mubr.bf16.mxu1 %v10540_v8  ;;  %v10559_v31 = vpack.c.bf16 %v1981_v5, %v1973_v55  ;;  %v1650_v9 = vpop.f32.mrb[26].mxu1 }
 0x1d1   :  { %v1548_v36 = vadd.f32 %v1547_v2, %v10203_v29  ;;  %v1549_v0 = vpop.f32.mrb[31].mxu0  ;;  %5289 = vmatmul.mubr.bf16.gmra.mrb[88].mxu0 %v10531_v46  ;;  %5741 = vmatmul.mubr.bf16.gmra.mrb[88].mxu1 %v10531_v46  ;;  %v8494_v33 = vcombine.low %v10535_v37, %v10537_v62  ;;  %v10566_v34 = vpack.c.bf16 %v1982_v39, %v1974_v45  ;;  %v2003_v4 = vmax.f32 %v1544_v59, 0.0  ;;  %v10573_v37 = vld [vmem:[#allocation8 + $0x7c0] sm:$0xff]  ;;  %v10583_v39 = vld [vmem:[#allocation8 + $0x7c8] sm:$0xff]  ;;  %v1652_v2 = vpop.f32.mrb[27].mxu1 }
 0x1d2   :  { %11753 = vst [vmem:[#allocation40_spill] sm:$0xff] %v10559_v31  ;;  %v1550_v63 = vadd.f32 %v1549_v0, %v10208_v14  ;;  %5334 = vmatpush1.bf16.msra.mxu0 %v8478_v11  ;;  %5786 = vmatpush1.bf16.msra.mxu1 %v8480_v61  ;;  %v8497_v29 = vcombine.high %v10549_v22, %v10551_v42  ;;  %v10575_v62 = vld [vmem:[#allocation8 + $0x7e0] sm:$0xff]  ;;  %v2004_v11 = vmax.f32 %v1546_v17, 0.0  ;;  %v10585_v59 = vld [vmem:[#allocation8 + $0x7e8] sm:$0xff] }
 0x1d3   :  { %11754 = vst [vmem:[#allocation41_spill] sm:$0xff] %v10566_v34  ;;  %v1647_v55 = vadd.f32 %v1646_v41, %v10223_v52  ;;  %v2011_v5 = vmax.f32 %v1548_v36, 0.0  ;;  %5335 = vmatprep.subr.bf16.mxu0 %v8487_v43  ;;  %5787 = vmatprep.subr.bf16.mxu1 %v8489_v23  ;;  %v1649_v45 = vadd.f32 %v1648_v6, %v10233_v60  ;;  %v10590_v0 = vld [vmem:[#allocation8 + $0x800] sm:$0xff]  ;;  %v2400_v46 = vld [vmem:[#allocation8 + $0x9e8] sm:$0xff] }
 0x1d4   :  { %v10581_v14 = vrot.slane %v10197_v21, %v11666_v27  ;;  %v2012_v61 = vmax.f32 %v1550_v63, 0.0  ;;  %v1651_v23 = vadd.f32 %v1650_v9, %v10223_v52  ;;  %v10592_v41 = vld [vmem:[#allocation8 + $0x820] sm:$0xff]  ;;  %v1653_v27 = vadd.f32 %v1652_v2, %v10233_v60 }
 0x1d5   :  { %v1989_v43 = vmax.f32 %v1647_v55, 0.0  ;;  %v10588_v36 = vpack.c.bf16 %v2011_v5, %v2003_v4  ;;  %v1990_v6 = vmax.f32 %v1649_v45, 0.0  ;;  %v10598_v17 = vrot.slane %v10197_v21, %v11667_v47  ;;  %v10606_v5 = vld [vmem:[#allocation8 + $0x808] sm:$0xff] }
 0x1d6   :  { %v10600_v63 = vpack.c.bf16 %v2012_v61, %v2004_v11  ;;  %5336 = vmatpush1.bf16.msra.mxu0 %v8486_v10  ;;  %5788 = vmatpush1.bf16.msra.mxu1 %v8488_v13  ;;  %v8496_v55 = vcombine.low %v10549_v22, %v10551_v42  ;;  %v8502_v4 = vcombine.low %v10573_v37, %v10575_v62  ;;  %v10608_v45 = vld [vmem:[#allocation8 + $0x828] sm:$0xff]  ;;  %v1997_v9 = vmax.f32 %v1651_v23, 0.0  ;;  %v1699_v42 = vpop.f32.mrb[32].mxu0  ;;  %v1656_v61 = vpop.f32.mrb[28].mxu1 }
 0x1d7   :  { %11755 = vst [vmem:[#allocation42_spill] sm:$0xff] %v10588_v36  ;;  %5337 = vmatprep.subr.bf16.mxu0 %v8495_v56  ;;  %5789 = vmatprep.subr.bf16.mxu1 %v8497_v29  ;;  %v8503_v2 = vcombine.high %v10573_v37, %v10575_v62  ;;  %v8504_v10 = vcombine.low %v10583_v39, %v10585_v59  ;;  %v1998_v22 = vmax.f32 %v1653_v27, 0.0  ;;  %v1701_v37 = vpop.f32.mrb[33].mxu0  ;;  %v1658_v23 = vpop.f32.mrb[29].mxu1 }
 0x1d8   :  { %11756 = vst [vmem:[#allocation43_spill] sm:$0xff] %v10600_v63  ;;  %v8505_v13 = vcombine.high %v10583_v39, %v10585_v59  ;;  %5298 = vmatprep.mubr.bf16.mxu0 %v10600_v63  ;;  %5750 = vmatprep.mubr.bf16.mxu1 %v10600_v63  ;;  %v8511_v11 = vcombine.high %v10590_v0, %v10592_v41  ;;  %v1703_v59 = vpop.f32.mrb[34].mxu0 }
 0x1d9   :  { %v10620_v56 = vpack.c.bf16 %v1997_v9, %v1989_v43  ;;  %v1700_v29 = vadd.f32 %v1699_v42, %v10581_v14  ;;  %5299 = vmatmul.mubr.bf16.gmra.mrb[92].mxu0 %v10588_v36  ;;  %5751 = vmatmul.mubr.bf16.gmra.mrb[92].mxu1 %v10588_v36  ;;  %v8513_v27 = vcombine.high %v10606_v5, %v10608_v45  ;;  %v1705_v47 = vpop.f32.mrb[35].mxu0  ;;  %v2384_v36 = vld [vmem:[#allocation8 + $0x968] sm:$0xff] }
 0x1da   :  { %v10627_v62 = vpack.c.bf16 %v1998_v22, %v1990_v6  ;;  %v1702_v39 = vadd.f32 %v1701_v37, %v10598_v17  ;;  %5338 = vmatpush1.bf16.msra.mxu0 %v8494_v33  ;;  %5790 = vmatpush1.bf16.msra.mxu1 %v8496_v55  ;;  %v1657_v43 = vadd.f32 %v1656_v61, %v10223_v52  ;;  %v1660_v22 = vpop.f32.mrb[30].mxu1  ;;  %v10638_v55 = vld [vmem:[#allocation8 + $0x840] sm:$0xff] }
 0x1db   :  { %11757 = vst [vmem:[#allocation44_spill] sm:$0xff] %v10620_v56  ;;  %v1895_v9 = vmax.f32 %v1700_v29, 0.0  ;;  %v1704_v42 = vadd.f32 %v1703_v59, %v10581_v14  ;;  %5339 = vmatprep.subr.bf16.mxu0 %v8503_v2  ;;  %5341 = vmatprep.mubr.bf16.mxu0 %v10301_v57  ;;  %v1659_v6 = vadd.f32 %v1658_v23, %v10233_v60  ;;  %v10640_v29 = vld [vmem:[#allocation8 + $0x860] sm:$0xff]  ;;  %v1662_v59 = vpop.f32.mrb[31].mxu1 }
 0x1dc   :  { %11758 = vst [vmem:[#allocation45_spill] sm:$0xff] %v10627_v62  ;;  %v1896_v28 = vmax.f32 %v1702_v39, 0.0  ;;  %v1706_v37 = vadd.f32 %v1705_v47, %v10598_v17  ;;  %5791 = vmatprep.subr.bf16.mxu1 %v8505_v13  ;;  %5793 = vmatprep.mubr.bf16.mxu1 %v10301_v57  ;;  %v2005_v61 = vmax.f32 %v1657_v43, 0.0  ;;  %v1661_v2 = vadd.f32 %v1660_v22, %v10223_v52  ;;  %v10645_v39 = vld [vmem:[#allocation8 + $0x848] sm:$0xff] }
 0x1dd   :  { %v1903_v25 = vmax.f32 %v1704_v42, 0.0  ;;  %v8510_v23 = vcombine.low %v10590_v0, %v10592_v41  ;;  %v2352_v47 = vld [vmem:[#allocation8 + $0x868] sm:$0xff]  ;;  %v2006_v15 = vmax.f32 %v1659_v6, 0.0  ;;  %v1663_v13 = vadd.f32 %v1662_v59, %v10233_v60  ;;  %v10659_v60 = vld [vmem:[#allocation8 + $0x880] sm:$0xff] }
 0x1de   :  { %v1904_v33 = vmax.f32 %v1706_v37, 0.0  ;;  %5340 = vmatpush1.bf16.msra.mxu0 %v8502_v4  ;;  %5792 = vmatpush1.bf16.msra.mxu1 %v8504_v10  ;;  %v8512_v44 = vcombine.low %v10606_v5, %v10608_v45  ;;  %v2013_v43 = vmax.f32 %v1661_v2, 0.0  ;;  %v11759_v52 = vsub.s32 6, %v10056_v16  ;;  %v10661_v41 = vld [vmem:[#allocation8 + $0x8a0] sm:$0xff]  ;;  %v1709_v5 = vpop.f32.mrb[36].mxu0  ;;  %v10675_v6 = vld [vmem:[#allocation8 + $0x8a8] sm:$0xff] }
 0x1df   :  { %v10650_v57 = vpack.c.bf16 %v1903_v25, %v1895_v9  ;;  %5422 = vmatprep.subr.bf16.mxu0 %v8511_v11  ;;  %5874 = vmatprep.subr.bf16.mxu1 %v8513_v27  ;;  %v8519_v0 = vcombine.high %v10638_v55, %v10640_v29  ;;  %v2014_v4 = vmax.f32 %v1663_v13, 0.0  ;;  %v11760_v25 = vsub.s32 7, %v10056_v16  ;;  %v10673_v9 = vld [vmem:[#allocation8 + $0x888] sm:$0xff]  ;;  %v1711_v37 = vpop.f32.mrb[37].mxu0  ;;  %v1812_v2 = vpop.f32.mrb[32].mxu1 }
 0x1e0   :  { %v10655_v42 = vrot.slane %v10197_v21, %v11759_v52  ;;  %v10663_v10 = vpack.c.bf16 %v1904_v33, %v1896_v28  ;;  %v8518_v11 = vcombine.low %v10638_v55, %v10640_v29  ;;  %v8521_v27 = vcombine.high %v10645_v39, %v2352_v47  ;;  %v1713_v29 = vpop.f32.mrb[38].mxu0  ;;  %v2368_v16 = vld [vmem:[#allocation8 + $0x8e8] sm:$0xff] }
 0x1e1   :  { %v10668_v45 = vrot.slane %v10197_v21, %v11760_v25  ;;  %v10677_v22 = vpack.c.bf16 %v2013_v43, %v2005_v61  ;;  %v1710_v28 = vadd.f32 %v1709_v5, %v10581_v14  ;;  %5342 = vmatmul.mubr.bf16.vlgmr.msra.gmra.mrb[64].mxu0 %v10294_v54  ;;  %5794 = vmatmul.mubr.bf16.vlgmr.msra.gmra.mrb[64].mxu1 %v10294_v54  ;;  %v1715_v43 = vpop.f32.mrb[39].mxu0  ;;  %v1814_v5 = vpop.f32.mrb[33].mxu1  ;;  %v10698_v25 = vld [vmem:[#allocation8 + $0x8e0] sm:$0xff] }
 0x1e2   :  { %v8520_v21 = vcombine.low %v10645_v39, %v2352_v47  ;;  %v10683_v33 = vpack.c.bf16 %v2014_v4, %v2006_v15  ;;  %v1712_v55 = vadd.f32 %v1711_v37, %v10598_v17  ;;  %5423 = vmatpush1.bf16.msra.mxu0 %v8510_v23  ;;  %5875 = vmatpush1.bf16.msra.mxu1 %v8512_v44  ;;  %v1816_v47 = vpop.f32.mrb[34].mxu1  ;;  %v10696_v4 = vld [vmem:[#allocation8 + $0x8c0] sm:$0xff] }
 0x1e3   :  { %v8527_v61 = vcombine.high %v10659_v60, %v10661_v41  ;;  %v1911_v59 = vmax.f32 %v1710_v28, 0.0  ;;  %v1714_v13 = vadd.f32 %v1713_v29, %v10581_v14  ;;  %v1813_v52 = vadd.f32 %v1812_v2, %v10655_v42  ;;  %5424 = vmatprep.subr.bf16.mxu0 %v8519_v0  ;;  %5351 = vmatprep.mubr.bf16.mxu0 %v10353_v51  ;;  %v1818_v29 = vpop.f32.mrb[35].mxu1  ;;  %v2364_v2 = vld [vmem:[#allocation8 + $0x8c8] sm:$0xff] }
 0x1e4   :  { %11761 = vst [vmem:[#allocation46_spill] sm:$0xff] %v10683_v33  ;;  %v8529_v15 = vcombine.high %v10673_v9, %v10675_v6  ;;  %v1912_v39 = vmax.f32 %v1712_v55, 0.0  ;;  %v1716_v23 = vadd.f32 %v1715_v43, %v10598_v17  ;;  %v1815_v44 = vadd.f32 %v1814_v5, %v10668_v45  ;;  %5803 = vmatprep.mubr.bf16.mxu1 %v10353_v51 }
 0x1e5   :  { %5876 = vmatprep.subr.bf16.mxu1 %v8521_v27  ;;  %v1919_v28 = vmax.f32 %v1714_v13, 0.0  ;;  %v1897_v0 = vmax.f32 %v1813_v52, 0.0  ;;  %v1817_v37 = vadd.f32 %v1816_v47, %v10655_v42  ;;  %v1819_v43 = vadd.f32 %v1818_v29, %v10668_v45 }
 0x1e6   :  { %v1920_v55 = vmax.f32 %v1716_v23, 0.0  ;;  %v1898_v54 = vmax.f32 %v1815_v44, 0.0  ;;  %5425 = vmatpush1.bf16.msra.mxu0 %v8518_v11  ;;  %5877 = vmatpush1.bf16.msra.mxu1 %v8520_v21  ;;  %v8526_v27 = vcombine.low %v10659_v60, %v10661_v41  ;;  %v8528_v5 = vcombine.low %v10673_v9, %v10675_v6  ;;  %v10710_v23 = vld [vmem:[#allocation8 + $0x900] sm:$0xff]  ;;  %v1719_v21 = vpop.f32.mrb[40].mxu0  ;;  %v10718_v9 = vld [vmem:[#allocation8 + $0x908] sm:$0xff] }
 0x1e7   :  { %v10706_v51 = vpack.c.bf16 %v1919_v28, %v1911_v59  ;;  %v1905_v13 = vmax.f32 %v1817_v37, 0.0  ;;  %5426 = vmatprep.subr.bf16.mxu0 %v8527_v61  ;;  %5878 = vmatprep.subr.bf16.mxu1 %v8529_v15  ;;  %v8535_v52 = vcombine.high %v10696_v4, %v10698_v25  ;;  %v10712_v44 = vld [vmem:[#allocation8 + $0x920] sm:$0xff]  ;;  %v1906_v47 = vmax.f32 %v1819_v43, 0.0  ;;  %v10720_v6 = vld [vmem:[#allocation8 + $0x928] sm:$0xff]  ;;  %v1721_v59 = vpop.f32.mrb[41].mxu0 }
 0x1e8   :  { %v10714_v11 = vpack.c.bf16 %v1920_v55, %v1912_v39  ;;  %v8534_v60 = vcombine.low %v10696_v4, %v10698_v25  ;;  %v8537_v41 = vcombine.high %v2364_v2, %v2368_v16  ;;  %v1720_v61 = vadd.f32 %v1719_v21, %v10581_v14  ;;  %v1723_v37 = vpop.f32.mrb[42].mxu0  ;;  %v1822_v4 = vpop.f32.mrb[36].mxu1 }
 0x1e9   :  { %v10723_v15 = vpack.c.bf16 %v1905_v13, %v1897_v0  ;;  %5352 = vmatmul.mubr.bf16.gmra.mrb[68].mxu0 %v10346_v40  ;;  %5804 = vmatmul.mubr.bf16.gmra.mrb[68].mxu1 %v10346_v40  ;;  %v8536_v39 = vcombine.low %v2364_v2, %v2368_v16  ;;  %v1722_v28 = vadd.f32 %v1721_v59, %v10598_v17  ;;  %v1725_v43 = vpop.f32.mrb[43].mxu0  ;;  %v1824_v21 = vpop.f32.mrb[37].mxu1  ;;  %v2380_v40 = vld [vmem:[#allocation8 + $0x948] sm:$0xff] }
 0x1ea   :  { %v10728_v29 = vpack.c.bf16 %v1906_v47, %v1898_v54  ;;  %5427 = vmatpush1.bf16.msra.mxu0 %v8526_v27  ;;  %5879 = vmatpush1.bf16.msra.mxu1 %v8528_v5  ;;  %v8543_v25 = vcombine.high %v10710_v23, %v10712_v44  ;;  %v1927_v55 = vmax.f32 %v1720_v61, 0.0  ;;  %v1724_v0 = vadd.f32 %v1723_v37, %v10581_v14  ;;  %v1826_v5 = vpop.f32.mrb[38].mxu1  ;;  %v10740_v47 = vld [vmem:[#allocation8 + $0x940] sm:$0xff] }
 0x1eb   :  { %v1823_v13 = vadd.f32 %v1822_v4, %v10655_v42  ;;  %5428 = vmatprep.subr.bf16.mxu0 %v8535_v52  ;;  %5361 = vmatprep.mubr.bf16.mxu0 %v10405_v48  ;;  %v8545_v16 = vcombine.high %v10718_v9, %v10720_v6  ;;  %v1928_v54 = vmax.f32 %v1722_v28, 0.0  ;;  %v1726_v2 = vadd.f32 %v1725_v43, %v10598_v17  ;;  %v10742_v61 = vld [vmem:[#allocation8 + $0x960] sm:$0xff]  ;;  %v1828_v4 = vpop.f32.mrb[39].mxu1 }
 0x1ec   :  { %v1825_v27 = vadd.f32 %v1824_v21, %v10668_v45  ;;  %5813 = vmatprep.mubr.bf16.mxu1 %v10405_v48  ;;  %5880 = vmatprep.subr.bf16.mxu1 %v8537_v41  ;;  %v1935_v59 = vmax.f32 %v1724_v0, 0.0  ;;  %v1827_v37 = vadd.f32 %v1826_v5, %v10655_v42  ;;  %v1829_v43 = vadd.f32 %v1828_v4, %v10668_v45 }
 0x1ed   :  { %v1913_v52 = vmax.f32 %v1823_v13, 0.0  ;;  %v1936_v28 = vmax.f32 %v1726_v2, 0.0  ;;  %v8542_v41 = vcombine.low %v10710_v23, %v10712_v44  ;;  %v8544_v21 = vcombine.low %v10718_v9, %v10720_v6  ;;  %v10754_v2 = vld [vmem:[#allocation8 + $0x980] sm:$0xff]  ;;  %v10762_v9 = vld [vmem:[#allocation8 + $0x988] sm:$0xff] }
 0x1ee   :  { %v1914_v63 = vmax.f32 %v1825_v27, 0.0  ;;  %5429 = vmatpush1.bf16.msra.mxu0 %v8534_v60  ;;  %5881 = vmatpush1.bf16.msra.mxu1 %v8536_v39  ;;  %v10750_v48 = vpack.c.bf16 %v1935_v59, %v1927_v55  ;;  %v1921_v0 = vmax.f32 %v1827_v37, 0.0  ;;  %v8551_v13 = vcombine.high %v10740_v47, %v10742_v61  ;;  %v10756_v27 = vld [vmem:[#allocation8 + $0x9a0] sm:$0xff]  ;;  %v1729_v39 = vpop.f32.mrb[44].mxu0  ;;  %v10764_v6 = vld [vmem:[#allocation8 + $0x9a8] sm:$0xff] }
 0x1ef   :  { %5430 = vmatprep.subr.bf16.mxu0 %v8543_v25  ;;  %5882 = vmatprep.subr.bf16.mxu1 %v8545_v16  ;;  %v10758_v60 = vpack.c.bf16 %v1936_v28, %v1928_v54  ;;  %v1922_v5 = vmax.f32 %v1829_v43, 0.0  ;;  %v8550_v23 = vcombine.low %v10740_v47, %v10742_v61  ;;  %v8553_v44 = vcombine.high %v2380_v40, %v2384_v36  ;;  %v1731_v55 = vpop.f32.mrb[45].mxu0  ;;  %v1832_v47 = vpop.f32.mrb[40].mxu1 }
 0x1f0   :  { %v1730_v25 = vadd.f32 %v1729_v39, %v10581_v14  ;;  %v10767_v16 = vpack.c.bf16 %v1921_v0, %v1913_v52  ;;  %v8552_v54 = vcombine.low %v2380_v40, %v2384_v36  ;;  %v1732_v59 = vadd.f32 %v1731_v55, %v10598_v17  ;;  %v1733_v37 = vpop.f32.mrb[46].mxu0  ;;  %v1834_v39 = vpop.f32.mrb[41].mxu1 }
 0x1f1   :  { %5362 = vmatmul.mubr.bf16.gmra.mrb[72].mxu0 %v10398_v30  ;;  %5814 = vmatmul.mubr.bf16.gmra.mrb[72].mxu1 %v10398_v30  ;;  %v10772_v4 = vpack.c.bf16 %v1922_v5, %v1914_v63  ;;  %v8559_v61 = vcombine.high %v10754_v2, %v10756_v27  ;;  %v1734_v52 = vadd.f32 %v1733_v37, %v10581_v14  ;;  %v1735_v43 = vpop.f32.mrb[47].mxu0  ;;  %v10784_v5 = vld [vmem:[#allocation8 + $0x9c0] sm:$0xff]  ;;  %v2396_v30 = vld [vmem:[#allocation8 + $0x9c8] sm:$0xff] }
 0x1f2   :  { %5431 = vmatpush1.bf16.msra.mxu0 %v8542_v41  ;;  %5883 = vmatpush1.bf16.msra.mxu1 %v8544_v21  ;;  %v1943_v28 = vmax.f32 %v1730_v25, 0.0  ;;  %v1833_v0 = vadd.f32 %v1832_v47, %v10655_v42  ;;  %v8561_v40 = vcombine.high %v10762_v9, %v10764_v6  ;;  %v1944_v36 = vmax.f32 %v1732_v59, 0.0  ;;  %v1836_v21 = vpop.f32.mrb[42].mxu1  ;;  %v10786_v25 = vld [vmem:[#allocation8 + $0x9e0] sm:$0xff] }
 0x1f3   :  { %5432 = vmatprep.subr.bf16.mxu0 %v8551_v13  ;;  %5371 = vmatprep.mubr.bf16.mxu0 %v10459_v49  ;;  %v1736_v63 = vadd.f32 %v1735_v43, %v10598_v17  ;;  %v1835_v41 = vadd.f32 %v1834_v39, %v10668_v45  ;;  %v1951_v55 = vmax.f32 %v1734_v52, 0.0  ;;  %v1837_v37 = vadd.f32 %v1836_v21, %v10655_v42  ;;  %v1838_v47 = vpop.f32.mrb[43].mxu1 }
 0x1f4   :  { %5823 = vmatprep.mubr.bf16.mxu1 %v10459_v49  ;;  %5884 = vmatprep.subr.bf16.mxu1 %v8553_v44  ;;  %v1929_v13 = vmax.f32 %v1833_v0, 0.0  ;;  %v1839_v43 = vadd.f32 %v1838_v47, %v10668_v45  ;;  %v8558_v44 = vcombine.low %v10754_v2, %v10756_v27  ;;  %v8560_v39 = vcombine.low %v10762_v9, %v10764_v6  ;;  %v10806_v9 = vld [vmem:[#allocation8 + $0xa08] sm:$0xff] }
 0x1f5   :  { %v1952_v59 = vmax.f32 %v1736_v63, 0.0  ;;  %v1930_v8 = vmax.f32 %v1835_v41, 0.0  ;;  %v10794_v49 = vpack.c.bf16 %v1951_v55, %v1943_v28  ;;  %v1937_v52 = vmax.f32 %v1837_v37, 0.0  ;;  %v10798_v63 = vld [vmem:[#allocation8 + $0xa00] sm:$0xff]  ;;  %v10808_v6 = vld [vmem:[#allocation8 + $0xa28] sm:$0xff] }
 0x1f6   :  { %5433 = vmatpush1.bf16.msra.mxu0 %v8550_v23  ;;  %5885 = vmatpush1.bf16.msra.mxu1 %v8552_v54  ;;  %v8567_v0 = vcombine.high %v10784_v5, %v10786_v25  ;;  %v10800_v41 = vld [vmem:[#allocation8 + $0xa20] sm:$0xff]  ;;  %v1739_v54 = vpop.f32.mrb[48].mxu0  ;;  %v1938_v21 = vmax.f32 %v1839_v43, 0.0  ;;  %v8566_v2 = vcombine.low %v10784_v5, %v10786_v25  ;;  %v8569_v27 = vcombine.high %v2396_v30, %v2400_v46  ;;  %v1842_v5 = vpop.f32.mrb[44].mxu1 }
 0x1f7   :  { %5434 = vmatprep.subr.bf16.mxu0 %v8559_v61  ;;  %5886 = vmatprep.subr.bf16.mxu1 %v8561_v40  ;;  %v10802_v23 = vpack.c.bf16 %v1952_v59, %v1944_v36  ;;  %v1740_v61 = vadd.f32 %v1739_v54, %v10581_v14  ;;  %v1741_v28 = vpop.f32.mrb[49].mxu0  ;;  %v10811_v40 = vpack.c.bf16 %v1937_v52, %v1929_v13  ;;  %v1844_v54 = vpop.f32.mrb[45].mxu1 }
 0x1f8   :  { %v8568_v36 = vcombine.low %v2396_v30, %v2400_v46  ;;  %v1742_v55 = vadd.f32 %v1741_v28, %v10598_v17  ;;  %v1743_v37 = vpop.f32.mrb[50].mxu0  ;;  %v10816_v47 = vpack.c.bf16 %v1938_v21, %v1930_v8  ;;  %v8575_v25 = vcombine.high %v10798_v63, %v10800_v41  ;;  %v10828_v21 = vld [vmem:[#allocation8 + $0xa40] sm:$0xff] }
 0x1f9   :  { %5372 = vmatmul.mubr.bf16.gmra.mrb[76].mxu0 %v10452_v53  ;;  %5824 = vmatmul.mubr.bf16.gmra.mrb[76].mxu1 %v10452_v53  ;;  %v1959_v59 = vmax.f32 %v1740_v61, 0.0  ;;  %v1744_v13 = vadd.f32 %v1743_v37, %v10581_v14  ;;  %v1745_v43 = vpop.f32.mrb[51].mxu0  ;;  %v1843_v52 = vadd.f32 %v1842_v5, %v10655_v42  ;;  %v8577_v30 = vcombine.high %v10806_v9, %v10808_v6  ;;  %v10830_v61 = vld [vmem:[#allocation8 + $0xa60] sm:$0xff]  ;;  %v2412_v53 = vld [vmem:[#allocation8 + $0xa48] sm:$0xff] }
 0x1fa   :  { %5435 = vmatpush1.bf16.msra.mxu0 %v8558_v44  ;;  %5887 = vmatpush1.bf16.msra.mxu1 %v8560_v39  ;;  %v1960_v46 = vmax.f32 %v1742_v55, 0.0  ;;  %v1746_v8 = vadd.f32 %v1745_v43, %v10598_v17  ;;  %v1845_v44 = vadd.f32 %v1844_v54, %v10668_v45  ;;  %v1846_v39 = vpop.f32.mrb[46].mxu1  ;;  %v8576_v54 = vcombine.low %v10806_v9, %v10808_v6  ;;  %v10850_v9 = vld [vmem:[#allocation8 + $0xa88] sm:$0xff] }
 0x1fb   :  { %5436 = vmatprep.subr.bf16.mxu0 %v8567_v0  ;;  %5381 = vmatprep.mubr.bf16.mxu0 %v10513_v12  ;;  %v1967_v28 = vmax.f32 %v1744_v13, 0.0  ;;  %v1945_v0 = vmax.f32 %v1843_v52, 0.0  ;;  %v1847_v37 = vadd.f32 %v1846_v39, %v10655_v42  ;;  %v1848_v5 = vpop.f32.mrb[47].mxu1  ;;  %v8583_v52 = vcombine.high %v10828_v21, %v10830_v61  ;;  %v10852_v6 = vld [vmem:[#allocation8 + $0xaa8] sm:$0xff] }
 0x1fc   :  { %5833 = vmatprep.mubr.bf16.mxu1 %v10513_v12  ;;  %5888 = vmatprep.subr.bf16.mxu1 %v8569_v27  ;;  %v1968_v55 = vmax.f32 %v1746_v8, 0.0  ;;  %v1946_v38 = vmax.f32 %v1845_v44, 0.0  ;;  %v1849_v43 = vadd.f32 %v1848_v5, %v10668_v45  ;;  %v8574_v27 = vcombine.low %v10798_v63, %v10800_v41  ;;  %v10842_v8 = vld [vmem:[#allocation8 + $0xa80] sm:$0xff] }
 0x1fd   :  { %v10838_v12 = vpack.c.bf16 %v1967_v28, %v1959_v59  ;;  %v1953_v13 = vmax.f32 %v1847_v37, 0.0  ;;  %v10844_v44 = vld [vmem:[#allocation8 + $0xaa0] sm:$0xff]  ;;  %v8582_v63 = vcombine.low %v10828_v21, %v10830_v61  ;;  %v8585_v41 = vcombine.high %v2412_v53, %v2416_v24  ;;  %v1852_v21 = vpop.f32.mrb[48].mxu1 }
 0x1fe   :  { %5437 = vmatpush1.bf16.msra.mxu0 %v8566_v2  ;;  %5889 = vmatpush1.bf16.msra.mxu1 %v8568_v36  ;;  %v10846_v2 = vpack.c.bf16 %v1968_v55, %v1960_v46  ;;  %v1749_v36 = vpop.f32.mrb[52].mxu0  ;;  %v1954_v39 = vmax.f32 %v1849_v43, 0.0  ;;  %v8584_v46 = vcombine.low %v2412_v53, %v2416_v24  ;;  %v8591_v61 = vcombine.high %v10842_v8, %v10844_v44 }
 0x1ff   :  { %5438 = vmatprep.subr.bf16.mxu0 %v8575_v25  ;;  %5890 = vmatprep.subr.bf16.mxu1 %v8577_v30  ;;  %v1750_v25 = vadd.f32 %v1749_v36, %v10581_v14  ;;  %v1751_v59 = vpop.f32.mrb[53].mxu0  ;;  %v10855_v30 = vpack.c.bf16 %v1953_v13, %v1945_v0  ;;  %v1853_v13 = vadd.f32 %v1852_v21, %v10655_v42  ;;  %v1854_v36 = vpop.f32.mrb[49].mxu1 }
 0x200   :  { %v1752_v28 = vadd.f32 %v1751_v59, %v10598_v17  ;;  %v1753_v37 = vpop.f32.mrb[54].mxu0  ;;  %v10860_v5 = vpack.c.bf16 %v1954_v39, %v1946_v38  ;;  %v8593_v53 = vcombine.high %v10850_v9, %v10852_v6  ;;  %v10872_v39 = vld [vmem:[#allocation8 + $0xac0] sm:$0xff] }
 0x201   :  { %5382 = vmatmul.mubr.bf16.gmra.mrb[80].mxu0 %v10506_v7  ;;  %5834 = vmatmul.mubr.bf16.gmra.mrb[80].mxu1 %v10506_v7  ;;  %v1975_v55 = vmax.f32 %v1750_v25, 0.0  ;;  %v1754_v0 = vadd.f32 %v1753_v37, %v10581_v14  ;;  %v1755_v43 = vpop.f32.mrb[55].mxu0  ;;  %v10874_v25 = vld [vmem:[#allocation8 + $0xae0] sm:$0xff]  ;;  %v2428_v7 = vld [vmem:[#allocation8 + $0xac8] sm:$0xff] }
 0x202   :  { %5439 = vmatpush1.bf16.msra.mxu0 %v8574_v27  ;;  %5891 = vmatpush1.bf16.msra.mxu1 %v8576_v54  ;;  %v1976_v24 = vmax.f32 %v1752_v28, 0.0  ;;  %v1756_v38 = vadd.f32 %v1755_v43, %v10598_v17  ;;  %v1855_v27 = vadd.f32 %v1854_v36, %v10668_v45  ;;  %v1856_v54 = vpop.f32.mrb[50].mxu1  ;;  %v8592_v36 = vcombine.low %v10850_v9, %v10852_v6  ;;  %v10894_v9 = vld [vmem:[#allocation8 + $0xb08] sm:$0xff] }
 0x203   :  { %5440 = vmatprep.subr.bf16.mxu0 %v8583_v52  ;;  %5391 = vmatprep.mubr.bf16.mxu0 %v10566_v34  ;;  %v1983_v59 = vmax.f32 %v1754_v0, 0.0  ;;  %v1961_v52 = vmax.f32 %v1853_v13, 0.0  ;;  %v1857_v37 = vadd.f32 %v1856_v54, %v10655_v42  ;;  %v1858_v21 = vpop.f32.mrb[51].mxu1  ;;  %v8599_v13 = vcombine.high %v10872_v39, %v10874_v25  ;;  %v10896_v6 = vld [vmem:[#allocation8 + $0xb28] sm:$0xff] }
 0x204   :  { %5843 = vmatprep.mubr.bf16.mxu1 %v10566_v34  ;;  %5892 = vmatprep.subr.bf16.mxu1 %v8585_v41  ;;  %v1984_v28 = vmax.f32 %v1756_v38, 0.0  ;;  %v1962_v20 = vmax.f32 %v1855_v27, 0.0  ;;  %v1859_v43 = vadd.f32 %v1858_v21, %v10668_v45  ;;  %v8590_v41 = vcombine.low %v10842_v8, %v10844_v44  ;;  %v10886_v38 = vld [vmem:[#allocation8 + $0xb00] sm:$0xff] }
 0x205   :  { %v10882_v34 = vpack.c.bf16 %v1983_v59, %v1975_v55  ;;  %v1969_v0 = vmax.f32 %v1857_v37, 0.0  ;;  %v10888_v27 = vld [vmem:[#allocation8 + $0xb20] sm:$0xff]  ;;  %v8598_v8 = vcombine.low %v10872_v39, %v10874_v25  ;;  %v8601_v44 = vcombine.high %v2428_v7, %v2432_v19  ;;  %v1862_v39 = vpop.f32.mrb[52].mxu1 }
 0x206   :  { %5441 = vmatpush1.bf16.msra.mxu0 %v8582_v63  ;;  %5893 = vmatpush1.bf16.msra.mxu1 %v8584_v46  ;;  %v10890_v63 = vpack.c.bf16 %v1984_v28, %v1976_v24  ;;  %v1759_v46 = vpop.f32.mrb[56].mxu0  ;;  %v1970_v54 = vmax.f32 %v1859_v43, 0.0  ;;  %v8600_v24 = vcombine.low %v2428_v7, %v2432_v19  ;;  %v8607_v25 = vcombine.high %v10886_v38, %v10888_v27 }
 0x207   :  { %5442 = vmatprep.subr.bf16.mxu0 %v8591_v61  ;;  %5894 = vmatprep.subr.bf16.mxu1 %v8593_v53  ;;  %v1760_v61 = vadd.f32 %v1759_v46, %v10581_v14  ;;  %v1761_v55 = vpop.f32.mrb[57].mxu0  ;;  %v10899_v53 = vpack.c.bf16 %v1969_v0, %v1961_v52  ;;  %v1863_v0 = vadd.f32 %v1862_v39, %v10655_v42  ;;  %v1864_v46 = vpop.f32.mrb[53].mxu1 }
 0x208   :  { %v1762_v59 = vadd.f32 %v1761_v55, %v10598_v17  ;;  %v1763_v37 = vpop.f32.mrb[58].mxu0  ;;  %v10904_v21 = vpack.c.bf16 %v1970_v54, %v1962_v20  ;;  %v8609_v19 = vcombine.high %v10894_v9, %v10896_v6  ;;  %v10916_v54 = vld [vmem:[#allocation8 + $0xb40] sm:$0xff] }
 0x209   :  { %5392 = vmatmul.mubr.bf16.gmra.mrb[84].mxu0 %v10559_v31  ;;  %5844 = vmatmul.mubr.bf16.gmra.mrb[84].mxu1 %v10559_v31  ;;  %v1991_v28 = vmax.f32 %v1760_v61, 0.0  ;;  %v1764_v52 = vadd.f32 %v1763_v37, %v10581_v14  ;;  %v1765_v43 = vpop.f32.mrb[59].mxu0  ;;  %v10918_v61 = vld [vmem:[#allocation8 + $0xb60] sm:$0xff]  ;;  %v2444_v31 = vld [vmem:[#allocation8 + $0xb48] sm:$0xff] }
 0x20a   :  { %5443 = vmatpush1.bf16.msra.mxu0 %v8590_v41  ;;  %5895 = vmatpush1.bf16.msra.mxu1 %v8592_v36  ;;  %v1992_v20 = vmax.f32 %v1762_v59, 0.0  ;;  %v1766_v7 = vadd.f32 %v1765_v43, %v10598_v17  ;;  %v1865_v41 = vadd.f32 %v1864_v46, %v10668_v45  ;;  %v1866_v36 = vpop.f32.mrb[54].mxu1  ;;  %v8608_v46 = vcombine.low %v10894_v9, %v10896_v6  ;;  %v2452_v9 = vld [vmem:[#allocation8 + $0xb88] sm:$0xff] }
 0x20b   :  { %5444 = vmatprep.subr.bf16.mxu0 %v8599_v13  ;;  %5401 = vmatprep.mubr.bf16.mxu0 %v10627_v62  ;;  %v1999_v55 = vmax.f32 %v1764_v52, 0.0  ;;  %v1977_v13 = vmax.f32 %v1863_v0, 0.0  ;;  %v1867_v37 = vadd.f32 %v1866_v36, %v10655_v42  ;;  %v1868_v39 = vpop.f32.mrb[55].mxu1  ;;  %v8615_v0 = vcombine.high %v10916_v54, %v10918_v61  ;;  %v2456_v6 = vld [vmem:[#allocation8 + $0xba8] sm:$0xff] }
 0x20c   :  { %5853 = vmatprep.mubr.bf16.mxu1 %v10627_v62  ;;  %5896 = vmatprep.subr.bf16.mxu1 %v8601_v44  ;;  %v2000_v59 = vmax.f32 %v1766_v7, 0.0  ;;  %v1978_v3 = vmax.f32 %v1865_v41, 0.0  ;;  %v1869_v43 = vadd.f32 %v1868_v39, %v10668_v45  ;;  %v8606_v44 = vcombine.low %v10886_v38, %v10888_v27  ;;  %v10930_v7 = vld [vmem:[#allocation8 + $0xb80] sm:$0xff] }
 0x20d   :  { %v10926_v62 = vpack.c.bf16 %v1999_v55, %v1991_v28  ;;  %v1985_v52 = vmax.f32 %v1867_v37, 0.0  ;;  %v10932_v41 = vld [vmem:[#allocation8 + $0xba0] sm:$0xff]  ;;  %v8614_v38 = vcombine.low %v10916_v54, %v10918_v61  ;;  %v8617_v27 = vcombine.high %v2444_v31, %v2448_v18 }
 0x20e   :  { %5445 = vmatpush1.bf16.msra.mxu0 %v8598_v8  ;;  %5897 = vmatpush1.bf16.msra.mxu1 %v8600_v24  ;;  %v10934_v8 = vpack.c.bf16 %v2000_v59, %v1992_v20  ;;  %v1769_v24 = vpop.f32.mrb[60].mxu0  ;;  %v1986_v36 = vmax.f32 %v1869_v43, 0.0  ;;  %v8616_v55 = vcombine.low %v2444_v31, %v2448_v18  ;;  %v1872_v59 = vpop.f32.mrb[56].mxu1  ;;  %v8623_v54 = vcombine.high %v10930_v7, %v10932_v41 }
 0x20f   :  { %5446 = vmatprep.subr.bf16.mxu0 %v8607_v25  ;;  %5898 = vmatprep.subr.bf16.mxu1 %v8609_v19  ;;  %v1770_v25 = vadd.f32 %v1769_v24, %v10581_v14  ;;  %v1771_v28 = vpop.f32.mrb[61].mxu0  ;;  %v10939_v19 = vpack.c.bf16 %v1985_v52, %v1977_v13  ;;  %v1873_v52 = vadd.f32 %v1872_v59, %v10655_v42  ;;  %v1874_v24 = vpop.f32.mrb[57].mxu1 }
 0x210   :  { %v1772_v20 = vadd.f32 %v1771_v28, %v10598_v17  ;;  %v1773_v37 = vpop.f32.mrb[62].mxu0  ;;  %v10944_v39 = vpack.c.bf16 %v1986_v36, %v1978_v3  ;;  %v8625_v18 = vcombine.high %v2452_v9, %v2456_v6  ;;  %v2459_v36 = vld [vmem:[#allocation8 + $0xbc0] sm:$0xff] }
 0x211   :  { %5402 = vmatmul.mubr.bf16.gmra.mrb[88].mxu0 %v10620_v56  ;;  %5854 = vmatmul.mubr.bf16.gmra.mrb[88].mxu1 %v10620_v56  ;;  %v2007_v61 = vmax.f32 %v1770_v25, 0.0  ;;  %v1774_v13 = vadd.f32 %v1773_v37, %v10581_v14  ;;  %v1775_v43 = vpop.f32.mrb[63].mxu0  ;;  %v2463_v25 = vld [vmem:[#allocation8 + $0xbe0] sm:$0xff]  ;;  %v1993_v28 = vmax.f32 %v1873_v52, 0.0  ;;  %v2464_v56 = vld [vmem:[#allocation8 + $0xbe8] sm:$0xff] }
 0x212   :  { %5447 = vmatpush1.bf16.msra.mxu0 %v8606_v44  ;;  %5899 = vmatpush1.bf16.msra.mxu1 %v8608_v46  ;;  %v2008_v31 = vmax.f32 %v1772_v20, 0.0  ;;  %v1776_v3 = vadd.f32 %v1775_v43, %v10598_v17  ;;  %v1875_v44 = vadd.f32 %v1874_v24, %v10668_v45  ;;  %v1876_v46 = vpop.f32.mrb[58].mxu1  ;;  %v8622_v17 = vcombine.low %v10930_v7, %v10932_v41  ;;  %v2467_v52 = vld [vmem:[#allocation8 + $0xc00] sm:$0xff] }
 0x213   :  { %5448 = vmatprep.subr.bf16.mxu0 %v8615_v0  ;;  %5411 = vmatprep.mubr.bf16.mxu0 %v10683_v33  ;;  %v2015_v14 = vmax.f32 %v1774_v13, 0.0  ;;  %v1877_v37 = vadd.f32 %v1876_v46, %v10655_v42  ;;  %v1878_v59 = vpop.f32.mrb[59].mxu1  ;;  %v2460_v0 = vld [vmem:[#allocation8 + $0xbc8] sm:$0xff]  ;;  %v8624_v43 = vcombine.low %v2452_v9, %v2456_v6  ;;  %v8631_v13 = vcombine.high %v2459_v36, %v2463_v25 }
 0x214   :  { %5863 = vmatprep.mubr.bf16.mxu1 %v10683_v33  ;;  %5900 = vmatprep.subr.bf16.mxu1 %v8617_v27  ;;  %v2016_v1 = vmax.f32 %v1776_v3, 0.0  ;;  %v1994_v58 = vmax.f32 %v1875_v44, 0.0  ;;  %v1879_v20 = vadd.f32 %v1878_v59, %v10668_v45  ;;  %v8633_v3 = vcombine.high %v2460_v0, %v2464_v56  ;;  %v2471_v44 = vld [vmem:[#allocation8 + $0xc20] sm:$0xff]  ;;  %v2472_v59 = vld [vmem:[#allocation8 + $0xc28] sm:$0xff]  ;;  %v1882_v41 = vpop.f32.mrb[60].mxu1 }
 0x215   :  { %v10958_v27 = vpack.c.bf16 %v2015_v14, %v2007_v61  ;;  %v2001_v24 = vmax.f32 %v1877_v37, 0.0  ;;  %v8630_v9 = vcombine.low %v2459_v36, %v2463_v25  ;;  %v8632_v6 = vcombine.low %v2460_v0, %v2464_v56  ;;  %v2476_v25 = vld [vmem:[#allocation8 + $0xc48] sm:$0xff] }
 0x216   :  { %5449 = vmatpush1.bf16.msra.mxu0 %v8614_v38  ;;  %5901 = vmatpush1.bf16.msra.mxu1 %v8616_v55  ;;  %v10960_v46 = vpack.c.bf16 %v2016_v1, %v2008_v31  ;;  %v2002_v33 = vmax.f32 %v1879_v20, 0.0  ;;  %v1883_v1 = vadd.f32 %v1882_v41, %v10655_v42  ;;  %v1884_v55 = vpop.f32.mrb[61].mxu1  ;;  %v8641_v61 = vcombine.high %v2468_v26, %v2472_v59 }
 0x217   :  { %5450 = vmatprep.subr.bf16.mxu0 %v8623_v54  ;;  %5902 = vmatprep.subr.bf16.mxu1 %v8625_v18  ;;  %v10962_v38 = vpack.c.bf16 %v2001_v24, %v1993_v28  ;;  %v8639_v54 = vcombine.high %v2467_v52, %v2471_v44  ;;  %v1885_v18 = vadd.f32 %v1884_v55, %v10668_v45  ;;  %v1886_v31 = vpop.f32.mrb[62].mxu1  ;;  %v2480_v28 = vld [vmem:[#allocation8 + $0xc68] sm:$0xff] }
 0x218   :  { %v10966_v7 = vpack.c.bf16 %v2002_v33, %v1994_v58  ;;  %v2475_v58 = vld [vmem:[#allocation8 + $0xc40] sm:$0xff]  ;;  %v2009_v14 = vmax.f32 %v1883_v1, 0.0  ;;  %v1887_v36 = vadd.f32 %v1886_v31, %v10655_v42  ;;  %v1888_v56 = vpop.f32.mrb[63].mxu1  ;;  %v8638_v20 = vcombine.low %v2467_v52, %v2471_v44  ;;  %v2484_v55 = vld [vmem:[#allocation8 + $0xc88] sm:$0xff] }
 0x219   :  { %5412 = vmatmul.mubr.bf16.gmra.mrb[92].mxu0 %v10677_v22  ;;  %5864 = vmatmul.mubr.bf16.gmra.mrb[92].mxu1 %v10677_v22  ;;  %v2479_v33 = vld [vmem:[#allocation8 + $0xc60] sm:$0xff]  ;;  %v2010_v37 = vmax.f32 %v1885_v18, 0.0  ;;  %v1889_v0 = vadd.f32 %v1888_v56, %v10668_v45  ;;  %v8649_v41 = vcombine.high %v2476_v25, %v2480_v28  ;;  %v2488_v42 = vld [vmem:[#allocation8 + $0xca8] sm:$0xff]  ;;  %v8648_v52 = vcombine.low %v2476_v25, %v2480_v28 }
 0x21a   :  { %5451 = vmatpush1.bf16.msra.mxu0 %v8622_v17  ;;  %5903 = vmatpush1.bf16.msra.mxu1 %v8624_v43  ;;  %v8640_v17 = vcombine.low %v2468_v26, %v2472_v59  ;;  %v2017_v43 = vmax.f32 %v1887_v36, 0.0  ;;  %v8647_v24 = vcombine.high %v2475_v58, %v2479_v33  ;;  %v2487_v1 = vld [vmem:[#allocation8 + $0xca0] sm:$0xff]  ;;  %v8646_v26 = vcombine.low %v2475_v58, %v2479_v33  ;;  %v2500_v25 = vld [vmem:[#allocation8 + $0xd08] sm:$0xff] }
 0x21b   :  { %5452 = vmatprep.subr.bf16.mxu0 %v8631_v13  ;;  %5454 = vmatprep.mubr.bf16.mxu0 %v10663_v10  ;;  %v2483_v13 = vld [vmem:[#allocation8 + $0xc80] sm:$0xff]  ;;  %v8657_v59 = vcombine.high %v2484_v55, %v2488_v42  ;;  %v2504_v28 = vld [vmem:[#allocation8 + $0xd28] sm:$0xff] }
 0x21c   :  { %5904 = vmatprep.subr.bf16.mxu1 %v8633_v3  ;;  %5906 = vmatprep.mubr.bf16.mxu1 %v10663_v10  ;;  %v2018_v3 = vmax.f32 %v1889_v0, 0.0  ;;  %v10974_v31 = vpack.c.bf16 %v2017_v43, %v2009_v14  ;;  %v8655_v44 = vcombine.high %v2483_v13, %v2487_v1  ;;  %v8654_v18 = vcombine.low %v2483_v13, %v2487_v1  ;;  %v2499_v33 = vld [vmem:[#allocation8 + $0xd00] sm:$0xff]  ;;  %v2508_v13 = vld [vmem:[#allocation8 + $0xd48] sm:$0xff] }
 0x21d   :  { %v8656_v14 = vcombine.low %v2484_v55, %v2488_v42  ;;  %v2503_v56 = vld [vmem:[#allocation8 + $0xd20] sm:$0xff]  ;;  %v8672_v1 = vcombine.low %v2500_v25, %v2504_v28 }
 0x21e   :  { %5453 = vmatpush1.bf16.msra.mxu0 %v8630_v9  ;;  %5905 = vmatpush1.bf16.msra.mxu1 %v8632_v6  ;;  %v10978_v45 = vpack.c.bf16 %v2018_v3, %v2010_v37  ;;  %v2491_v9 = vld [vmem:[#allocation8 + $0xcc0] sm:$0xff]  ;;  %v2512_v3 = vld [vmem:[#allocation8 + $0xd68] sm:$0xff] }
 0x21f   :  { %5535 = vmatprep.subr.bf16.mxu0 %v8639_v54  ;;  %5987 = vmatprep.subr.bf16.mxu1 %v8641_v61  ;;  %v2495_v6 = vld [vmem:[#allocation8 + $0xce0] sm:$0xff]  ;;  %v2492_v54 = vld [vmem:[#allocation8 + $0xcc8] sm:$0xff] }
 0x220   :  { %v2496_v61 = vld [vmem:[#allocation8 + $0xce8] sm:$0xff]  ;;  %v8663_v58 = vcombine.high %v2491_v9, %v2495_v6  ;;  %v8662_v37 = vcombine.low %v2491_v9, %v2495_v6  ;;  %v2507_v43 = vld [vmem:[#allocation8 + $0xd40] sm:$0xff]  ;;  %v8680_v6 = vcombine.low %v2508_v13, %v2512_v3 }
 0x221   :  { %5455 = vmatmul.mubr.bf16.vlgmr.msra.gmra.mrb[64].mxu0 %v10650_v57  ;;  %5907 = vmatmul.mubr.bf16.vlgmr.msra.gmra.mrb[64].mxu1 %v10650_v57  ;;  %v8665_v36 = vcombine.high %v2492_v54, %v2496_v61  ;;  %v8664_v0 = vcombine.low %v2492_v54, %v2496_v61  ;;  %v2515_v42 = vld [vmem:[#allocation8 + $0xd80] sm:$0xff] }
 0x222   :  { %5536 = vmatpush1.bf16.msra.mxu0 %v8638_v20  ;;  %5988 = vmatpush1.bf16.msra.mxu1 %v8640_v17  ;;  %v8671_v20 = vcombine.high %v2499_v33, %v2503_v56  ;;  %v8673_v17 = vcombine.high %v2500_v25, %v2504_v28  ;;  %v2531_v28 = vld [vmem:[#allocation8 + $0xe00] sm:$0xff] }
 0x223   :  { %5537 = vmatprep.subr.bf16.mxu0 %v8647_v24  ;;  %5464 = vmatprep.mubr.bf16.mxu0 %v10714_v11  ;;  %v2511_v24 = vld [vmem:[#allocation8 + $0xd60] sm:$0xff] }
 0x224   :  { %5916 = vmatprep.mubr.bf16.mxu1 %v10714_v11  ;;  %5989 = vmatprep.subr.bf16.mxu1 %v8649_v41  ;;  %v8670_v41 = vcombine.low %v2499_v33, %v2503_v56  ;;  %v8679_v55 = vcombine.high %v2507_v43, %v2511_v24  ;;  %v8678_v9 = vcombine.low %v2507_v43, %v2511_v24  ;;  %v2528_v33 = vld [vmem:[#allocation8 + $0xde8] sm:$0xff] }
 0x226   :  { %5538 = vmatpush1.bf16.msra.mxu0 %v8646_v26  ;;  %5990 = vmatpush1.bf16.msra.mxu1 %v8648_v52  ;;  %v8681_v26 = vcombine.high %v2508_v13, %v2512_v3  ;;  %v2519_v52 = vld [vmem:[#allocation8 + $0xda0] sm:$0xff] }
 0x227   :  { %5539 = vmatprep.subr.bf16.mxu0 %v8655_v44  ;;  %5991 = vmatprep.subr.bf16.mxu1 %v8657_v59  ;;  %v2516_v44 = vld [vmem:[#allocation8 + $0xd88] sm:$0xff]  ;;  %v8687_v54 = vcombine.high %v2515_v42, %v2519_v52 }
 0x228   :  { %v2520_v59 = vld [vmem:[#allocation8 + $0xda8] sm:$0xff] }
 0x229   :  { %5465 = vmatmul.mubr.bf16.gmra.mrb[68].mxu0 %v10706_v51  ;;  %5917 = vmatmul.mubr.bf16.gmra.mrb[68].mxu1 %v10706_v51  ;;  %v8689_v61 = vcombine.high %v2516_v44, %v2520_v59  ;;  %v8688_v56 = vcombine.low %v2516_v44, %v2520_v59  ;;  %v2547_v59 = vld [vmem:[#allocation8 + $0xe80] sm:$0xff] }
 0x22a   :  { %5540 = vmatpush1.bf16.msra.mxu0 %v8654_v18  ;;  %5992 = vmatpush1.bf16.msra.mxu1 %v8656_v14  ;;  %v2523_v18 = vld [vmem:[#allocation8 + $0xdc0] sm:$0xff] }
 0x22b   :  { %5541 = vmatprep.subr.bf16.mxu0 %v8663_v58  ;;  %5474 = vmatprep.mubr.bf16.mxu0 %v10758_v60  ;;  %v2527_v14 = vld [vmem:[#allocation8 + $0xde0] sm:$0xff]  ;;  %v2524_v58 = vld [vmem:[#allocation8 + $0xdc8] sm:$0xff] }
 0x22c   :  { %5926 = vmatprep.mubr.bf16.mxu1 %v10758_v60  ;;  %5993 = vmatprep.subr.bf16.mxu1 %v8665_v36  ;;  %v8686_v36 = vcombine.low %v2515_v42, %v2519_v52  ;;  %v8695_v25 = vcombine.high %v2523_v18, %v2527_v14  ;;  %v8694_v43 = vcombine.low %v2523_v18, %v2527_v14  ;;  %v2544_v42 = vld [vmem:[#allocation8 + $0xe68] sm:$0xff] }
 0x22d   :  { %v8696_v24 = vcombine.low %v2524_v58, %v2528_v33 }
 0x22e   :  { %5542 = vmatpush1.bf16.msra.mxu0 %v8662_v37  ;;  %5994 = vmatpush1.bf16.msra.mxu1 %v8664_v0  ;;  %v8697_v37 = vcombine.high %v2524_v58, %v2528_v33  ;;  %v2535_v0 = vld [vmem:[#allocation8 + $0xe20] sm:$0xff] }
 0x22f   :  { %5543 = vmatprep.subr.bf16.mxu0 %v8671_v20  ;;  %5995 = vmatprep.subr.bf16.mxu1 %v8673_v17  ;;  %v2532_v20 = vld [vmem:[#allocation8 + $0xe08] sm:$0xff]  ;;  %v8703_v13 = vcombine.high %v2531_v28, %v2535_v0 }
 0x230   :  { %v2536_v17 = vld [vmem:[#allocation8 + $0xe28] sm:$0xff] }
 0x231   :  { %5475 = vmatmul.mubr.bf16.gmra.mrb[72].mxu0 %v10750_v48  ;;  %5927 = vmatmul.mubr.bf16.gmra.mrb[72].mxu1 %v10750_v48  ;;  %v8705_v3 = vcombine.high %v2532_v20, %v2536_v17  ;;  %v8704_v52 = vcombine.low %v2532_v20, %v2536_v17  ;;  %v2563_v17 = vld [vmem:[#allocation8 + $0xf00] sm:$0xff] }
 0x232   :  { %5544 = vmatpush1.bf16.msra.mxu0 %v8670_v41  ;;  %5996 = vmatpush1.bf16.msra.mxu1 %v8672_v1  ;;  %v2539_v41 = vld [vmem:[#allocation8 + $0xe40] sm:$0xff] }
 0x233   :  { %5545 = vmatprep.subr.bf16.mxu0 %v8679_v55  ;;  %5484 = vmatprep.mubr.bf16.mxu0 %v10802_v23  ;;  %v2543_v1 = vld [vmem:[#allocation8 + $0xe60] sm:$0xff]  ;;  %v2540_v55 = vld [vmem:[#allocation8 + $0xe48] sm:$0xff] }
 0x234   :  { %5936 = vmatprep.mubr.bf16.mxu1 %v10802_v23  ;;  %5997 = vmatprep.subr.bf16.mxu1 %v8681_v26  ;;  %v8702_v26 = vcombine.low %v2531_v28, %v2535_v0  ;;  %v8711_v44 = vcombine.high %v2539_v41, %v2543_v1  ;;  %v8710_v18 = vcombine.low %v2539_v41, %v2543_v1  ;;  %v2560_v28 = vld [vmem:[#allocation8 + $0xee8] sm:$0xff] }
 0x235   :  { %v8712_v14 = vcombine.low %v2540_v55, %v2544_v42 }
 0x236   :  { %5546 = vmatpush1.bf16.msra.mxu0 %v8678_v9  ;;  %5998 = vmatpush1.bf16.msra.mxu1 %v8680_v6  ;;  %v8713_v9 = vcombine.high %v2540_v55, %v2544_v42  ;;  %v2551_v6 = vld [vmem:[#allocation8 + $0xea0] sm:$0xff] }
 0x237   :  { %5547 = vmatprep.subr.bf16.mxu0 %v8687_v54  ;;  %5999 = vmatprep.subr.bf16.mxu1 %v8689_v61  ;;  %v2548_v54 = vld [vmem:[#allocation8 + $0xe88] sm:$0xff]  ;;  %v8719_v58 = vcombine.high %v2547_v59, %v2551_v6 }
 0x238   :  { %v2552_v61 = vld [vmem:[#allocation8 + $0xea8] sm:$0xff] }
 0x239   :  { %5485 = vmatmul.mubr.bf16.gmra.mrb[76].mxu0 %v10794_v49  ;;  %5937 = vmatmul.mubr.bf16.gmra.mrb[76].mxu1 %v10794_v49  ;;  %v8721_v33 = vcombine.high %v2548_v54, %v2552_v61  ;;  %v8720_v0 = vcombine.low %v2548_v54, %v2552_v61  ;;  %v2579_v61 = vld [vmem:[#allocation8 + $0xf80] sm:$0xff] }
 0x23a   :  { %5548 = vmatpush1.bf16.msra.mxu0 %v8686_v36  ;;  %6000 = vmatpush1.bf16.msra.mxu1 %v8688_v56  ;;  %v2555_v36 = vld [vmem:[#allocation8 + $0xec0] sm:$0xff] }
 0x23b   :  { %5549 = vmatprep.subr.bf16.mxu0 %v8695_v25  ;;  %5494 = vmatprep.mubr.bf16.mxu0 %v10846_v2  ;;  %v2559_v56 = vld [vmem:[#allocation8 + $0xee0] sm:$0xff]  ;;  %v2556_v25 = vld [vmem:[#allocation8 + $0xec8] sm:$0xff] }
 0x23c   :  { %5946 = vmatprep.mubr.bf16.mxu1 %v10846_v2  ;;  %6001 = vmatprep.subr.bf16.mxu1 %v8697_v37  ;;  %v8718_v37 = vcombine.low %v2547_v59, %v2551_v6  ;;  %v8727_v20 = vcombine.high %v2555_v36, %v2559_v56  ;;  %v8726_v41 = vcombine.low %v2555_v36, %v2559_v56  ;;  %v2576_v59 = vld [vmem:[#allocation8 + $0xf68] sm:$0xff] }
 0x23d   :  { %v8728_v1 = vcombine.low %v2556_v25, %v2560_v28 }
 0x23e   :  { %5550 = vmatpush1.bf16.msra.mxu0 %v8694_v43  ;;  %6002 = vmatpush1.bf16.msra.mxu1 %v8696_v24  ;;  %v8729_v43 = vcombine.high %v2556_v25, %v2560_v28  ;;  %v2567_v24 = vld [vmem:[#allocation8 + $0xf20] sm:$0xff] }
 0x23f   :  { %5551 = vmatprep.subr.bf16.mxu0 %v8703_v13  ;;  %6003 = vmatprep.subr.bf16.mxu1 %v8705_v3  ;;  %v2564_v13 = vld [vmem:[#allocation8 + $0xf08] sm:$0xff]  ;;  %v8735_v55 = vcombine.high %v2563_v17, %v2567_v24 }
 0x240   :  { %v2568_v3 = vld [vmem:[#allocation8 + $0xf28] sm:$0xff] }
 0x241   :  { %5495 = vmatmul.mubr.bf16.gmra.mrb[80].mxu0 %v10838_v12  ;;  %5947 = vmatmul.mubr.bf16.gmra.mrb[80].mxu1 %v10838_v12  ;;  %v8737_v42 = vcombine.high %v2564_v13, %v2568_v3  ;;  %v8736_v6 = vcombine.low %v2564_v13, %v2568_v3 }
 0x242   :  { %5552 = vmatpush1.bf16.msra.mxu0 %v8702_v26  ;;  %6004 = vmatpush1.bf16.msra.mxu1 %v8704_v52  ;;  %v2571_v26 = vld [vmem:[#allocation8 + $0xf40] sm:$0xff] }
 0x243   :  { %5553 = vmatprep.subr.bf16.mxu0 %v8711_v44  ;;  %5504 = vmatprep.mubr.bf16.mxu0 %v10890_v63  ;;  %v2575_v52 = vld [vmem:[#allocation8 + $0xf60] sm:$0xff]  ;;  %v2572_v44 = vld [vmem:[#allocation8 + $0xf48] sm:$0xff] }
 0x244   :  { %5956 = vmatprep.mubr.bf16.mxu1 %v10890_v63  ;;  %6005 = vmatprep.subr.bf16.mxu1 %v8713_v9  ;;  %v8734_v9 = vcombine.low %v2563_v17, %v2567_v24  ;;  %v8743_v54 = vcombine.high %v2571_v26, %v2575_v52  ;;  %v8742_v36 = vcombine.low %v2571_v26, %v2575_v52  ;;  %v2592_v17 = vld [vmem:[#allocation8 + $0xfe8] sm:$0xff] }
 0x245   :  { %v8744_v56 = vcombine.low %v2572_v44, %v2576_v59 }
 0x246   :  { %5554 = vmatpush1.bf16.msra.mxu0 %v8710_v18  ;;  %6006 = vmatpush1.bf16.msra.mxu1 %v8712_v14  ;;  %v8745_v18 = vcombine.high %v2572_v44, %v2576_v59  ;;  %v2583_v14 = vld [vmem:[#allocation8 + $0xfa0] sm:$0xff] }
 0x247   :  { %5555 = vmatprep.subr.bf16.mxu0 %v8719_v58  ;;  %6007 = vmatprep.subr.bf16.mxu1 %v8721_v33  ;;  %v2580_v58 = vld [vmem:[#allocation8 + $0xf88] sm:$0xff]  ;;  %v8751_v25 = vcombine.high %v2579_v61, %v2583_v14 }
 0x248   :  { %v2584_v33 = vld [vmem:[#allocation8 + $0xfa8] sm:$0xff] }
 0x249   :  { %5505 = vmatmul.mubr.bf16.gmra.mrb[84].mxu0 %v10882_v34  ;;  %5957 = vmatmul.mubr.bf16.gmra.mrb[84].mxu1 %v10882_v34  ;;  %v8753_v28 = vcombine.high %v2580_v58, %v2584_v33  ;;  %v8752_v24 = vcombine.low %v2580_v58, %v2584_v33  ;;  %v2101_v33 = vld [vmem:[#allocation8 + $0x90] sm:$0xff] }
 0x24a   :  { %5556 = vmatpush1.bf16.msra.mxu0 %v8718_v37  ;;  %6008 = vmatpush1.bf16.msra.mxu1 %v8720_v0  ;;  %v2587_v37 = vld [vmem:[#allocation8 + $0xfc0] sm:$0xff] }
 0x24b   :  { %5557 = vmatprep.subr.bf16.mxu0 %v8727_v20  ;;  %5514 = vmatprep.mubr.bf16.mxu0 %v10934_v8  ;;  %v2591_v0 = vld [vmem:[#allocation8 + $0xfe0] sm:$0xff]  ;;  %v2588_v20 = vld [vmem:[#allocation8 + $0xfc8] sm:$0xff] }
 0x24c   :  { %5966 = vmatprep.mubr.bf16.mxu1 %v10934_v8  ;;  %6009 = vmatprep.subr.bf16.mxu1 %v8729_v43  ;;  %v8750_v43 = vcombine.low %v2579_v61, %v2583_v14  ;;  %v8759_v13 = vcombine.high %v2587_v37, %v2591_v0  ;;  %v8761_v3 = vcombine.high %v2588_v20, %v2592_v17  ;;  %v2094_v61 = vld [vmem:[#allocation8 + $0x58] sm:$0xff] }
 0x24d   :  { %v8758_v26 = vcombine.low %v2587_v37, %v2591_v0  ;;  %v8760_v52 = vcombine.low %v2588_v20, %v2592_v17  ;;  %v2106_v37 = vld [vmem:[#allocation8 + $0xb8] sm:$0xff] }
 0x24e   :  { %5558 = vmatpush1.bf16.msra.mxu0 %v8726_v41  ;;  %6010 = vmatpush1.bf16.msra.mxu1 %v8728_v1  ;;  %v2085_v41 = vld [vmem:[#allocation8 + $0x10] sm:$0xff] }
 0x24f   :  { %5559 = vmatprep.subr.bf16.mxu0 %v8735_v55  ;;  %6011 = vmatprep.subr.bf16.mxu1 %v8737_v42  ;;  %v2089_v1 = vld [vmem:[#allocation8 + $0x30] sm:$0xff]  ;;  %v2086_v55 = vld [vmem:[#allocation8 + $0x18] sm:$0xff] }
 0x250   :  { %v2090_v42 = vld [vmem:[#allocation8 + $0x38] sm:$0xff]  ;;  %v8259_v44 = vcombine.high %v2085_v41, %v2089_v1 }
 0x251   :  { %5515 = vmatmul.mubr.bf16.gmra.mrb[88].mxu0 %v10926_v62  ;;  %5967 = vmatmul.mubr.bf16.gmra.mrb[88].mxu1 %v10926_v62  ;;  %v8261_v59 = vcombine.high %v2086_v55, %v2090_v42  ;;  %v8260_v14 = vcombine.low %v2086_v55, %v2090_v42  ;;  %v2117_v42 = vld [vmem:[#allocation8 + $0x110] sm:$0xff] }
 0x252   :  { %5560 = vmatpush1.bf16.msra.mxu0 %v8734_v9  ;;  %6012 = vmatpush1.bf16.msra.mxu1 %v8736_v6  ;;  %v2093_v9 = vld [vmem:[#allocation8 + $0x50] sm:$0xff] }
 0x253   :  { %5561 = vmatprep.subr.bf16.mxu0 %v8743_v54  ;;  %5524 = vmatprep.mubr.bf16.mxu0 %v10960_v46  ;;  %v2097_v6 = vld [vmem:[#allocation8 + $0x70] sm:$0xff]  ;;  %v8258_v54 = vcombine.low %v2085_v41, %v2089_v1  ;;  %v2114_v41 = vld [vmem:[#allocation8 + $0xf8] sm:$0xff] }
 0x254   :  { %5976 = vmatprep.mubr.bf16.mxu1 %v10960_v46  ;;  %6013 = vmatprep.subr.bf16.mxu1 %v8745_v18  ;;  %v2098_v18 = vld [vmem:[#allocation8 + $0x78] sm:$0xff]  ;;  %v8267_v58 = vcombine.high %v2093_v9, %v2097_v6 }
 0x255   :  { %v8268_v20 = vcombine.low %v2094_v61, %v2098_v18 }
 0x256   :  { %5562 = vmatpush1.bf16.msra.mxu0 %v8742_v36  ;;  %6014 = vmatpush1.bf16.msra.mxu1 %v8744_v56  ;;  %v2105_v36 = vld [vmem:[#allocation8 + $0xb0] sm:$0xff]  ;;  %v8269_v56 = vcombine.high %v2094_v61, %v2098_v18 }
 0x257   :  { %5563 = vmatprep.subr.bf16.mxu0 %v8751_v25  ;;  %6015 = vmatprep.subr.bf16.mxu1 %v8753_v28  ;;  %v8266_v25 = vcombine.low %v2093_v9, %v2097_v6  ;;  %v2102_v28 = vld [vmem:[#allocation8 + $0x98] sm:$0xff]  ;;  %v8275_v0 = vcombine.high %v2101_v33, %v2105_v36  ;;  %v2125_v18 = vld [vmem:[#allocation8 + $0x150] sm:$0xff] }
 0x258   :  { %v8277_v17 = vcombine.high %v2102_v28, %v2106_v37  ;;  %v8276_v1 = vcombine.low %v2102_v28, %v2106_v37  ;;  %v2122_v9 = vld [vmem:[#allocation8 + $0x138] sm:$0xff]  ;;  %v2133_v28 = vld [vmem:[#allocation8 + $0x190] sm:$0xff] }
 0x259   :  { %5525 = vmatmul.mubr.bf16.gmra.mrb[92].mxu0 %v10958_v27  ;;  %5977 = vmatmul.mubr.bf16.gmra.mrb[92].mxu1 %v10958_v27  ;;  %v2137_v37 = vld [vmem:[#allocation8 + $0x1b0] sm:$0xff] }
 0x25a   :  { %5564 = vmatpush1.bf16.msra.mxu0 %v8750_v43  ;;  %5567 = vmatprep.mubr.bf16.mxu0 %v10728_v29  ;;  %v2109_v43 = vld [vmem:[#allocation8 + $0xd0] sm:$0xff] }
 0x25b   :  { %6016 = vmatpush1.bf16.msra.mxu1 %v8752_v24  ;;  %6019 = vmatprep.mubr.bf16.mxu1 %v10728_v29  ;;  %v2113_v24 = vld [vmem:[#allocation8 + $0xf0] sm:$0xff] }
 0x25c   :  { %5565 = vmatprep.subr.bf16.mxu0 %v8759_v13  ;;  %6017 = vmatprep.subr.bf16.mxu1 %v8761_v3  ;;  %v8274_v13 = vcombine.low %v2101_v33, %v2105_v36  ;;  %v2110_v3 = vld [vmem:[#allocation8 + $0xd8] sm:$0xff]  ;;  %v8283_v55 = vcombine.high %v2109_v43, %v2113_v24 }
 0x25d   :  { %v2126_v33 = vld [vmem:[#allocation8 + $0x158] sm:$0xff] }
 0x25e   :  { %5566 = vmatpush1.bf16.msra.mxu0 %v8758_v26  ;;  %v2121_v26 = vld [vmem:[#allocation8 + $0x130] sm:$0xff]  ;;  %v2130_v36 = vld [vmem:[#allocation8 + $0x178] sm:$0xff] }
 0x25f   :  { %6018 = vmatpush1.bf16.msra.mxu1 %v8760_v52  ;;  %6100 = vmatprep.subr.bf16.mxu0 %v8259_v44  ;;  %v8285_v52 = vcombine.high %v2110_v3, %v2114_v41  ;;  %v8282_v44 = vcombine.low %v2109_v43, %v2113_v24  ;;  %v8291_v6 = vcombine.high %v2117_v42, %v2121_v26  ;;  %v2138_v43 = vld [vmem:[#allocation8 + $0x1b8] sm:$0xff] }
 0x260   :  { %6552 = vmatprep.subr.bf16.mxu1 %v8261_v59  ;;  %v2118_v59 = vld [vmem:[#allocation8 + $0x118] sm:$0xff]  ;;  %v8307_v24 = vcombine.high %v2133_v28, %v2137_v37 }
 0x261   :  { %5568 = vmatmul.mubr.bf16.vlgmr.msra.gmra.mrb[64].mxu0 %v10723_v15  ;;  %v8293_v61 = vcombine.high %v2118_v59, %v2122_v9 }
 0x262   :  { %6020 = vmatmul.mubr.bf16.vlgmr.msra.gmra.mrb[64].mxu1 %v10723_v15  ;;  %6101 = vmatpush1.bf16.msra.mxu0 %v8258_v54  ;;  %v8284_v54 = vcombine.low %v2110_v3, %v2114_v41  ;;  %v2141_v41 = vld [vmem:[#allocation8 + $0x1d0] sm:$0xff] }
 0x263   :  { %5577 = vmatprep.mubr.bf16.mxu0 %v10772_v4  ;;  %6029 = vmatprep.mubr.bf16.mxu1 %v10772_v4 }
 0x264   :  { %6553 = vmatpush1.bf16.msra.mxu1 %v8260_v14  ;;  %6102 = vmatprep.subr.bf16.mxu0 %v8267_v58  ;;  %v2129_v14 = vld [vmem:[#allocation8 + $0x170] sm:$0xff]  ;;  %v8290_v58 = vcombine.low %v2117_v42, %v2121_v26  ;;  %v2142_v42 = vld [vmem:[#allocation8 + $0x1d8] sm:$0xff] }
 0x265   :  { %6554 = vmatprep.subr.bf16.mxu1 %v8269_v56  ;;  %v8292_v56 = vcombine.low %v2118_v59, %v2122_v9  ;;  %v2146_v26 = vld [vmem:[#allocation8 + $0x1f8] sm:$0xff]  ;;  %v2149_v59 = vld [vmem:[#allocation8 + $0x210] sm:$0xff] }
 0x266   :  { %6103 = vmatpush1.bf16.msra.mxu0 %v8266_v25  ;;  %v8299_v25 = vcombine.high %v2125_v18, %v2129_v14  ;;  %v2153_v9 = vld [vmem:[#allocation8 + $0x230] sm:$0xff] }
 0x267   :  { %6104 = vmatprep.subr.bf16.mxu0 %v8275_v0  ;;  %v8301_v0 = vcombine.high %v2126_v33, %v2130_v36 }
 0x268   :  { %6555 = vmatpush1.bf16.msra.mxu1 %v8268_v20  ;;  %v8298_v20 = vcombine.low %v2125_v18, %v2129_v14  ;;  %v2154_v18 = vld [vmem:[#allocation8 + $0x238] sm:$0xff]  ;;  %v8323_v14 = vcombine.high %v2149_v59, %v2153_v9 }
 0x269   :  { %5578 = vmatmul.mubr.bf16.gmra.mrb[68].mxu0 %v10767_v16  ;;  %6556 = vmatprep.subr.bf16.mxu1 %v8277_v17  ;;  %v2134_v17 = vld [vmem:[#allocation8 + $0x198] sm:$0xff] }
 0x26a   :  { %6030 = vmatmul.mubr.bf16.gmra.mrb[68].mxu1 %v10767_v16  ;;  %6105 = vmatpush1.bf16.msra.mxu0 %v8274_v13  ;;  %v8300_v13 = vcombine.low %v2126_v33, %v2130_v36  ;;  %v8309_v3 = vcombine.high %v2134_v17, %v2138_v43  ;;  %v2157_v36 = vld [vmem:[#allocation8 + $0x250] sm:$0xff] }
 0x26b   :  { %5587 = vmatprep.mubr.bf16.mxu0 %v10816_v47  ;;  %6039 = vmatprep.mubr.bf16.mxu1 %v10816_v47 }
 0x26c   :  { %6557 = vmatpush1.bf16.msra.mxu1 %v8276_v1  ;;  %6106 = vmatprep.subr.bf16.mxu0 %v8283_v55  ;;  %v2145_v1 = vld [vmem:[#allocation8 + $0x1f0] sm:$0xff]  ;;  %v8306_v55 = vcombine.low %v2133_v28, %v2137_v37  ;;  %v2158_v28 = vld [vmem:[#allocation8 + $0x258] sm:$0xff] }
 0x26d   :  { %6558 = vmatprep.subr.bf16.mxu1 %v8285_v52  ;;  %v8308_v52 = vcombine.low %v2134_v17, %v2138_v43  ;;  %v2162_v37 = vld [vmem:[#allocation8 + $0x278] sm:$0xff]  ;;  %v2165_v17 = vld [vmem:[#allocation8 + $0x290] sm:$0xff] }
 0x26e   :  { %6107 = vmatpush1.bf16.msra.mxu0 %v8282_v44  ;;  %v8315_v44 = vcombine.high %v2141_v41, %v2145_v1  ;;  %v2169_v43 = vld [vmem:[#allocation8 + $0x2b0] sm:$0xff] }
 0x26f   :  { %6108 = vmatprep.subr.bf16.mxu0 %v8291_v6  ;;  %v8317_v6 = vcombine.high %v2142_v42, %v2146_v26 }
 0x270   :  { %6559 = vmatpush1.bf16.msra.mxu1 %v8284_v54  ;;  %v8314_v54 = vcombine.low %v2141_v41, %v2145_v1  ;;  %v2170_v41 = vld [vmem:[#allocation8 + $0x2b8] sm:$0xff]  ;;  %v8339_v1 = vcombine.high %v2165_v17, %v2169_v43 }
 0x271   :  { %5588 = vmatmul.mubr.bf16.gmra.mrb[72].mxu0 %v10811_v40  ;;  %6560 = vmatprep.subr.bf16.mxu1 %v8293_v61  ;;  %v2150_v61 = vld [vmem:[#allocation8 + $0x218] sm:$0xff] }
 0x272   :  { %6040 = vmatmul.mubr.bf16.gmra.mrb[72].mxu1 %v10811_v40  ;;  %6109 = vmatpush1.bf16.msra.mxu0 %v8290_v58  ;;  %v8316_v58 = vcombine.low %v2142_v42, %v2146_v26  ;;  %v8325_v33 = vcombine.high %v2150_v61, %v2154_v18  ;;  %v2173_v26 = vld [vmem:[#allocation8 + $0x2d0] sm:$0xff] }
 0x273   :  { %5597 = vmatprep.mubr.bf16.mxu0 %v10860_v5  ;;  %6049 = vmatprep.mubr.bf16.mxu1 %v10860_v5 }
 0x274   :  { %6561 = vmatpush1.bf16.msra.mxu1 %v8292_v56  ;;  %6110 = vmatprep.subr.bf16.mxu0 %v8299_v25  ;;  %v2161_v56 = vld [vmem:[#allocation8 + $0x270] sm:$0xff]  ;;  %v8322_v25 = vcombine.low %v2149_v59, %v2153_v9  ;;  %v2174_v59 = vld [vmem:[#allocation8 + $0x2d8] sm:$0xff] }
 0x275   :  { %6562 = vmatprep.subr.bf16.mxu1 %v8301_v0  ;;  %v8324_v0 = vcombine.low %v2150_v61, %v2154_v18  ;;  %v2178_v9 = vld [vmem:[#allocation8 + $0x2f8] sm:$0xff]  ;;  %v2181_v61 = vld [vmem:[#allocation8 + $0x310] sm:$0xff] }
 0x276   :  { %6111 = vmatpush1.bf16.msra.mxu0 %v8298_v20  ;;  %v8331_v20 = vcombine.high %v2157_v36, %v2161_v56  ;;  %v2185_v18 = vld [vmem:[#allocation8 + $0x330] sm:$0xff] }
 0x277   :  { %6112 = vmatprep.subr.bf16.mxu0 %v8307_v24  ;;  %v8333_v24 = vcombine.high %v2158_v28, %v2162_v37 }
 0x278   :  { %6563 = vmatpush1.bf16.msra.mxu1 %v8300_v13  ;;  %v8330_v13 = vcombine.low %v2157_v36, %v2161_v56  ;;  %v2186_v36 = vld [vmem:[#allocation8 + $0x338] sm:$0xff]  ;;  %v8355_v56 = vcombine.high %v2181_v61, %v2185_v18 }
 0x279   :  { %5598 = vmatmul.mubr.bf16.gmra.mrb[76].mxu0 %v10855_v30  ;;  %6564 = vmatprep.subr.bf16.mxu1 %v8309_v3  ;;  %v2166_v3 = vld [vmem:[#allocation8 + $0x298] sm:$0xff] }
 0x27a   :  { %6050 = vmatmul.mubr.bf16.gmra.mrb[76].mxu1 %v10855_v30  ;;  %6113 = vmatpush1.bf16.msra.mxu0 %v8306_v55  ;;  %v8332_v55 = vcombine.low %v2158_v28, %v2162_v37  ;;  %v8341_v42 = vcombine.high %v2166_v3, %v2170_v41  ;;  %v2189_v37 = vld [vmem:[#allocation8 + $0x350] sm:$0xff] }
 0x27b   :  { %5607 = vmatprep.mubr.bf16.mxu0 %v10904_v21  ;;  %6059 = vmatprep.mubr.bf16.mxu1 %v10904_v21 }
 0x27c   :  { %6565 = vmatpush1.bf16.msra.mxu1 %v8308_v52  ;;  %6114 = vmatprep.subr.bf16.mxu0 %v8315_v44  ;;  %v2177_v52 = vld [vmem:[#allocation8 + $0x2f0] sm:$0xff]  ;;  %v8338_v44 = vcombine.low %v2165_v17, %v2169_v43  ;;  %v2190_v17 = vld [vmem:[#allocation8 + $0x358] sm:$0xff] }
 0x27d   :  { %6566 = vmatprep.subr.bf16.mxu1 %v8317_v6  ;;  %v8340_v6 = vcombine.low %v2166_v3, %v2170_v41  ;;  %v2194_v43 = vld [vmem:[#allocation8 + $0x378] sm:$0xff]  ;;  %v2197_v3 = vld [vmem:[#allocation8 + $0x390] sm:$0xff] }
 0x27e   :  { %6115 = vmatpush1.bf16.msra.mxu0 %v8314_v54  ;;  %v8347_v54 = vcombine.high %v2173_v26, %v2177_v52  ;;  %v2201_v41 = vld [vmem:[#allocation8 + $0x3b0] sm:$0xff] }
 0x27f   :  { %6116 = vmatprep.subr.bf16.mxu0 %v8323_v14  ;;  %v8349_v14 = vcombine.high %v2174_v59, %v2178_v9 }
 0x280   :  { %6567 = vmatpush1.bf16.msra.mxu1 %v8316_v58  ;;  %v8346_v58 = vcombine.low %v2173_v26, %v2177_v52  ;;  %v2202_v26 = vld [vmem:[#allocation8 + $0x3b8] sm:$0xff]  ;;  %v8371_v52 = vcombine.high %v2197_v3, %v2201_v41 }
 0x281   :  { %5608 = vmatmul.mubr.bf16.gmra.mrb[80].mxu0 %v10899_v53  ;;  %6568 = vmatprep.subr.bf16.mxu1 %v8325_v33  ;;  %v2182_v33 = vld [vmem:[#allocation8 + $0x318] sm:$0xff] }
 0x282   :  { %6060 = vmatmul.mubr.bf16.gmra.mrb[80].mxu1 %v10899_v53  ;;  %6117 = vmatpush1.bf16.msra.mxu0 %v8322_v25  ;;  %v8348_v25 = vcombine.low %v2174_v59, %v2178_v9  ;;  %v8357_v28 = vcombine.high %v2182_v33, %v2186_v36  ;;  %v2205_v9 = vld [vmem:[#allocation8 + $0x3d0] sm:$0xff] }
 0x283   :  { %5617 = vmatprep.mubr.bf16.mxu0 %v10944_v39  ;;  %6069 = vmatprep.mubr.bf16.mxu1 %v10944_v39 }
 0x284   :  { %6569 = vmatpush1.bf16.msra.mxu1 %v8324_v0  ;;  %6118 = vmatprep.subr.bf16.mxu0 %v8331_v20  ;;  %v2193_v0 = vld [vmem:[#allocation8 + $0x370] sm:$0xff]  ;;  %v8354_v20 = vcombine.low %v2181_v61, %v2185_v18  ;;  %v2206_v61 = vld [vmem:[#allocation8 + $0x3d8] sm:$0xff] }
 0x285   :  { %6570 = vmatprep.subr.bf16.mxu1 %v8333_v24  ;;  %v8356_v24 = vcombine.low %v2182_v33, %v2186_v36  ;;  %v2210_v18 = vld [vmem:[#allocation8 + $0x3f8] sm:$0xff]  ;;  %v2213_v33 = vld [vmem:[#allocation8 + $0x410] sm:$0xff] }
 0x286   :  { %6119 = vmatpush1.bf16.msra.mxu0 %v8330_v13  ;;  %v8363_v13 = vcombine.high %v2189_v37, %v2193_v0  ;;  %v2217_v36 = vld [vmem:[#allocation8 + $0x430] sm:$0xff] }
 0x287   :  { %6120 = vmatprep.subr.bf16.mxu0 %v8339_v1  ;;  %v8365_v1 = vcombine.high %v2190_v17, %v2194_v43 }
 0x288   :  { %6571 = vmatpush1.bf16.msra.mxu1 %v8332_v55  ;;  %v8362_v55 = vcombine.low %v2189_v37, %v2193_v0  ;;  %v2218_v37 = vld [vmem:[#allocation8 + $0x438] sm:$0xff]  ;;  %v8387_v0 = vcombine.high %v2213_v33, %v2217_v36 }
 0x289   :  { %5618 = vmatmul.mubr.bf16.gmra.mrb[84].mxu0 %v10939_v19  ;;  %6572 = vmatprep.subr.bf16.mxu1 %v8341_v42  ;;  %v2198_v42 = vld [vmem:[#allocation8 + $0x398] sm:$0xff] }
 0x28a   :  { %6070 = vmatmul.mubr.bf16.gmra.mrb[84].mxu1 %v10939_v19  ;;  %6121 = vmatpush1.bf16.msra.mxu0 %v8338_v44  ;;  %v8364_v44 = vcombine.low %v2190_v17, %v2194_v43  ;;  %v8373_v59 = vcombine.high %v2198_v42, %v2202_v26  ;;  %v2221_v17 = vld [vmem:[#allocation8 + $0x450] sm:$0xff] }
 0x28b   :  { %5627 = vmatprep.mubr.bf16.mxu0 %v10966_v7  ;;  %6079 = vmatprep.mubr.bf16.mxu1 %v10966_v7  ;;  %v2225_v43 = vld [vmem:[#allocation8 + $0x470] sm:$0xff] }
 0x28c   :  { %6573 = vmatpush1.bf16.msra.mxu1 %v8340_v6  ;;  %6122 = vmatprep.subr.bf16.mxu0 %v8347_v54  ;;  %v2209_v6 = vld [vmem:[#allocation8 + $0x3f0] sm:$0xff]  ;;  %v8370_v54 = vcombine.low %v2197_v3, %v2201_v41  ;;  %v2222_v3 = vld [vmem:[#allocation8 + $0x458] sm:$0xff] }
 0x28d   :  { %6574 = vmatprep.subr.bf16.mxu1 %v8349_v14  ;;  %v8372_v14 = vcombine.low %v2198_v42, %v2202_v26  ;;  %v2226_v41 = vld [vmem:[#allocation8 + $0x478] sm:$0xff]  ;;  %v2229_v42 = vld [vmem:[#allocation8 + $0x490] sm:$0xff] }
 0x28e   :  { %6123 = vmatpush1.bf16.msra.mxu0 %v8346_v58  ;;  %v8379_v58 = vcombine.high %v2205_v9, %v2209_v6  ;;  %v2233_v26 = vld [vmem:[#allocation8 + $0x4b0] sm:$0xff] }
 0x28f   :  { %6124 = vmatprep.subr.bf16.mxu0 %v8355_v56  ;;  %v8381_v56 = vcombine.high %v2206_v61, %v2210_v18 }
 0x290   :  { %6575 = vmatpush1.bf16.msra.mxu1 %v8348_v25  ;;  %v8378_v25 = vcombine.low %v2205_v9, %v2209_v6  ;;  %v8403_v9 = vcombine.high %v2229_v42, %v2233_v26  ;;  %v8396_v6 = vcombine.low %v2222_v3, %v2226_v41 }
 0x291   :  { %5628 = vmatmul.mubr.bf16.gmra.mrb[88].mxu0 %v10962_v38  ;;  %6576 = vmatprep.subr.bf16.mxu1 %v8357_v28  ;;  %v2214_v28 = vld [vmem:[#allocation8 + $0x418] sm:$0xff] }
 0x292   :  { %6080 = vmatmul.mubr.bf16.gmra.mrb[88].mxu1 %v10962_v38  ;;  %6125 = vmatpush1.bf16.msra.mxu0 %v8354_v20  ;;  %v8380_v20 = vcombine.low %v2206_v61, %v2210_v18  ;;  %v2241_v61 = vld [vmem:[#allocation8 + $0x4f0] sm:$0xff] }
 0x293   :  { %5637 = vmatprep.mubr.bf16.mxu0 %v10978_v45  ;;  %6089 = vmatprep.mubr.bf16.mxu1 %v10978_v45 }
 0x294   :  { %6577 = vmatpush1.bf16.msra.mxu1 %v8356_v24  ;;  %6126 = vmatprep.subr.bf16.mxu0 %v8363_v13  ;;  %v8389_v24 = vcombine.high %v2214_v28, %v2218_v37  ;;  %v8386_v13 = vcombine.low %v2213_v33, %v2217_v36  ;;  %v2242_v33 = vld [vmem:[#allocation8 + $0x4f8] sm:$0xff] }
 0x295   :  { %6578 = vmatprep.subr.bf16.mxu1 %v8365_v1  ;;  %v8395_v1 = vcombine.high %v2221_v17, %v2225_v43 }
 0x296   :  { %6127 = vmatpush1.bf16.msra.mxu0 %v8362_v55  ;;  %v8388_v55 = vcombine.low %v2214_v28, %v2218_v37  ;;  %v11762_v28 = vld [vmem:[#allocation19_spill] sm:$0xff] }
 0x297   :  { %6128 = vmatprep.subr.bf16.mxu0 %v8371_v52  ;;  %v8394_v52 = vcombine.low %v2221_v17, %v2225_v43  ;;  %v11763_v37 = vld [vmem:[#allocation23_spill] sm:$0xff] }
 0x298   :  { %6579 = vmatpush1.bf16.msra.mxu1 %v8364_v44  ;;  %v2230_v44 = vld [vmem:[#allocation8 + $0x498] sm:$0xff] }
 0x299   :  { %5638 = vmatmul.mubr.bf16.gmra.mrb[92].mxu0 %v10974_v31  ;;  %6580 = vmatprep.subr.bf16.mxu1 %v8373_v59  ;;  %v2234_v59 = vld [vmem:[#allocation8 + $0x4b8] sm:$0xff] }
 0x29a   :  { %6090 = vmatmul.mubr.bf16.gmra.mrb[92].mxu1 %v10974_v31  ;;  %6129 = vmatpush1.bf16.msra.mxu0 %v8370_v54  ;;  %v2237_v54 = vld [vmem:[#allocation8 + $0x4d0] sm:$0xff]  ;;  %v8405_v18 = vcombine.high %v2230_v44, %v2234_v59  ;;  %v2250_v17 = vld [vmem:[#allocation8 + $0x538] sm:$0xff] }
 0x29b   :  { %6132 = vmatprep.mubr.bf16.mxu0 %v10218_v35  ;;  %6584 = vmatprep.mubr.bf16.mxu1 %v10218_v35  ;;  %v8397_v35 = vcombine.high %v2222_v3, %v2226_v41  ;;  %v8411_v36 = vcombine.high %v2237_v54, %v2241_v61  ;;  %v2257_v3 = vld [vmem:[#allocation8 + $0x570] sm:$0xff] }
 0x29c   :  { %6581 = vmatpush1.bf16.msra.mxu1 %v8372_v14  ;;  %6130 = vmatprep.subr.bf16.mxu0 %v8379_v58  ;;  %v8402_v14 = vcombine.low %v2229_v42, %v2233_v26  ;;  %v2238_v58 = vld [vmem:[#allocation8 + $0x4d8] sm:$0xff] }
 0x29d   :  { %6582 = vmatprep.subr.bf16.mxu1 %v8381_v56  ;;  %v8404_v56 = vcombine.low %v2230_v44, %v2234_v59  ;;  %v2258_v42 = vld [vmem:[#allocation8 + $0x578] sm:$0xff]  ;;  %v2265_v44 = vld [vmem:[#allocation8 + $0x5b0] sm:$0xff] }
 0x29e   :  { %6131 = vmatpush1.bf16.msra.mxu0 %v8378_v25  ;;  %v2245_v25 = vld [vmem:[#allocation8 + $0x510] sm:$0xff] }
 0x29f   :  { %6213 = vmatprep.subr.bf16.mxu0 %v8387_v0  ;;  %v8410_v0 = vcombine.low %v2237_v54, %v2241_v61  ;;  %v11764_v59 = vld [vmem:[#allocation22_spill] sm:$0xff]  ;;  %v2262_v61 = vld [vmem:[#allocation8 + $0x598] sm:$0xff] }
 0x2a0   :  { %6583 = vmatpush1.bf16.msra.mxu1 %v8380_v20  ;;  %v2246_v20 = vld [vmem:[#allocation8 + $0x518] sm:$0xff] }
 0x2a1   :  { %6133 = vmatmul.mubr.bf16.vlgmr.msra.gmra.mrb[96].mxu0 %v10216_v50  ;;  %6665 = vmatprep.subr.bf16.mxu1 %v8389_v24  ;;  %v8412_v24 = vcombine.low %v2238_v58, %v2242_v33  ;;  %v8421_v41 = vcombine.high %v2246_v20, %v2250_v17 }
 0x2a2   :  { %6214 = vmatpush1.bf16.msra.mxu0 %v8386_v13  ;;  %6142 = vmatprep.mubr.bf16.mxu0 %v10270_v32  ;;  %v2253_v13 = vld [vmem:[#allocation8 + $0x550] sm:$0xff] }
 0x2a3   :  { %6585 = vmatmul.mubr.bf16.vlgmr.msra.gmra.mrb[96].mxu1 %v10216_v50  ;;  %6215 = vmatprep.subr.bf16.mxu0 %v8395_v1  ;;  %v2249_v50 = vld [vmem:[#allocation8 + $0x530] sm:$0xff]  ;;  %v8427_v26 = vcombine.high %v2253_v13, %v2257_v3  ;;  %v8426_v54 = vcombine.low %v2253_v13, %v2257_v3  ;;  %v2278_v3 = vld [vmem:[#allocation8 + $0x618] sm:$0xff] }
 0x2a4   :  { %6594 = vmatprep.mubr.bf16.mxu1 %v10270_v32  ;;  %6666 = vmatpush1.bf16.msra.mxu1 %v8388_v55  ;;  %v8413_v32 = vcombine.high %v2238_v58, %v2242_v33  ;;  %v8419_v43 = vcombine.high %v2245_v25, %v2249_v50  ;;  %v8418_v1 = vcombine.low %v2245_v25, %v2249_v50  ;;  %v2254_v55 = vld [vmem:[#allocation8 + $0x558] sm:$0xff]  ;;  %v2269_v33 = vld [vmem:[#allocation8 + $0x5d0] sm:$0xff] }
 0x2a5   :  { %6667 = vmatprep.subr.bf16.mxu1 %v8397_v35  ;;  %v8420_v35 = vcombine.low %v2246_v20, %v2250_v17  ;;  %v8428_v58 = vcombine.low %v2254_v55, %v2258_v42  ;;  %v2270_v50 = vld [vmem:[#allocation8 + $0x5d8] sm:$0xff]  ;;  %v2281_v20 = vld [vmem:[#allocation8 + $0x630] sm:$0xff] }
 0x2a6   :  { %6216 = vmatpush1.bf16.msra.mxu0 %v8394_v52  ;;  %v2261_v52 = vld [vmem:[#allocation8 + $0x590] sm:$0xff] }
 0x2a7   :  { %6217 = vmatprep.subr.bf16.mxu0 %v8403_v9  ;;  %v8429_v9 = vcombine.high %v2254_v55, %v2258_v42  ;;  %v8434_v25 = vcombine.low %v2261_v52, %v2265_v44  ;;  %v11766_v17 = vld [vmem:[#allocation26_spill] sm:$0xff] }
 0x2a8   :  { %6668 = vmatpush1.bf16.msra.mxu1 %v8396_v6  ;;  %v11765_v6 = vld [vmem:[#allocation27_spill] sm:$0xff] }
 0x2a9   :  { %6143 = vmatmul.mubr.bf16.gmra.mrb[100].mxu0 %v11762_v28  ;;  %6669 = vmatprep.subr.bf16.mxu1 %v8405_v18  ;;  %v2266_v18 = vld [vmem:[#allocation8 + $0x5b8] sm:$0xff]  ;;  %v2285_v42 = vld [vmem:[#allocation8 + $0x650] sm:$0xff] }
 0x2aa   :  { %6218 = vmatpush1.bf16.msra.mxu0 %v8402_v14  ;;  %6152 = vmatprep.mubr.bf16.mxu0 %v11763_v37  ;;  %v8435_v14 = vcombine.high %v2261_v52, %v2265_v44  ;;  %v2286_v44 = vld [vmem:[#allocation8 + $0x658] sm:$0xff] }
 0x2ab   :  { %6595 = vmatmul.mubr.bf16.gmra.mrb[100].mxu1 %v11762_v28  ;;  %6219 = vmatprep.subr.bf16.mxu0 %v8411_v36  ;;  %v2273_v36 = vld [vmem:[#allocation8 + $0x5f0] sm:$0xff]  ;;  %v2274_v28 = vld [vmem:[#allocation8 + $0x5f8] sm:$0xff] }
 0x2ac   :  { %6604 = vmatprep.mubr.bf16.mxu1 %v11763_v37  ;;  %6670 = vmatpush1.bf16.msra.mxu1 %v8404_v56  ;;  %v8437_v56 = vcombine.high %v2262_v61, %v2266_v18  ;;  %v8436_v37 = vcombine.low %v2262_v61, %v2266_v18  ;;  %v8442_v13 = vcombine.low %v2269_v33, %v2273_v36  ;;  %v2297_v61 = vld [vmem:[#allocation8 + $0x6b0] sm:$0xff] }
 0x2ad   :  { %6671 = vmatprep.subr.bf16.mxu1 %v8413_v32  ;;  %v8443_v32 = vcombine.high %v2269_v33, %v2273_v36  ;;  %v8444_v55 = vcombine.low %v2270_v50, %v2274_v28  ;;  %v11768_v18 = vld [vmem:[#allocation30_spill] sm:$0xff]  ;;  %v2294_v36 = vld [vmem:[#allocation8 + $0x698] sm:$0xff] }
 0x2ae   :  { %6220 = vmatpush1.bf16.msra.mxu0 %v8410_v0  ;;  %v2277_v0 = vld [vmem:[#allocation8 + $0x610] sm:$0xff] }
 0x2af   :  { %6221 = vmatprep.subr.bf16.mxu0 %v8419_v43  ;;  %v8445_v43 = vcombine.high %v2270_v50, %v2274_v28  ;;  %v8450_v52 = vcombine.low %v2277_v0, %v2281_v20  ;;  %v2301_v28 = vld [vmem:[#allocation8 + $0x6d0] sm:$0xff] }
 0x2b0   :  { %6672 = vmatpush1.bf16.msra.mxu1 %v8412_v24  ;;  %v11767_v24 = vld [vmem:[#allocation31_spill] sm:$0xff] }
 0x2b1   :  { %6153 = vmatmul.mubr.bf16.gmra.mrb[104].mxu0 %v11764_v59  ;;  %6673 = vmatprep.subr.bf16.mxu1 %v8421_v41  ;;  %v2282_v41 = vld [vmem:[#allocation8 + $0x638] sm:$0xff] }
 0x2b2   :  { %6222 = vmatpush1.bf16.msra.mxu0 %v8418_v1  ;;  %6162 = vmatprep.mubr.bf16.mxu0 %v11765_v6  ;;  %v8451_v1 = vcombine.high %v2277_v0, %v2281_v20  ;;  %v2302_v20 = vld [vmem:[#allocation8 + $0x6d8] sm:$0xff] }
 0x2b3   :  { %6605 = vmatmul.mubr.bf16.gmra.mrb[104].mxu1 %v11764_v59  ;;  %6223 = vmatprep.subr.bf16.mxu0 %v8427_v26  ;;  %v2289_v26 = vld [vmem:[#allocation8 + $0x670] sm:$0xff]  ;;  %v2290_v59 = vld [vmem:[#allocation8 + $0x678] sm:$0xff] }
 0x2b4   :  { %6614 = vmatprep.mubr.bf16.mxu1 %v11765_v6  ;;  %6674 = vmatpush1.bf16.msra.mxu1 %v8420_v35  ;;  %v8453_v35 = vcombine.high %v2278_v3, %v2282_v41  ;;  %v8452_v6 = vcombine.low %v2278_v3, %v2282_v41  ;;  %v8458_v33 = vcombine.low %v2285_v42, %v2289_v26  ;;  %v2313_v3 = vld [vmem:[#allocation8 + $0x730] sm:$0xff] }
 0x2b5   :  { %6675 = vmatprep.subr.bf16.mxu1 %v8429_v9  ;;  %v8459_v9 = vcombine.high %v2285_v42, %v2289_v26  ;;  %v8460_v50 = vcombine.low %v2286_v44, %v2290_v59  ;;  %v11770_v41 = vld [vmem:[#allocation34_spill] sm:$0xff]  ;;  %v2310_v26 = vld [vmem:[#allocation8 + $0x718] sm:$0xff] }
 0x2b6   :  { %6224 = vmatpush1.bf16.msra.mxu0 %v8426_v54  ;;  %v2293_v54 = vld [vmem:[#allocation8 + $0x690] sm:$0xff] }
 0x2b7   :  { %6225 = vmatprep.subr.bf16.mxu0 %v8435_v14  ;;  %v8461_v14 = vcombine.high %v2286_v44, %v2290_v59  ;;  %v8466_v0 = vcombine.low %v2293_v54, %v2297_v61  ;;  %v2317_v59 = vld [vmem:[#allocation8 + $0x750] sm:$0xff] }
 0x2b8   :  { %6676 = vmatpush1.bf16.msra.mxu1 %v8428_v58  ;;  %v11769_v58 = vld [vmem:[#allocation35_spill] sm:$0xff] }
 0x2b9   :  { %6163 = vmatmul.mubr.bf16.gmra.mrb[108].mxu0 %v11766_v17  ;;  %6677 = vmatprep.subr.bf16.mxu1 %v8437_v56  ;;  %v2298_v56 = vld [vmem:[#allocation8 + $0x6b8] sm:$0xff] }
 0x2ba   :  { %6226 = vmatpush1.bf16.msra.mxu0 %v8434_v25  ;;  %6172 = vmatprep.mubr.bf16.mxu0 %v11767_v24  ;;  %v8467_v25 = vcombine.high %v2293_v54, %v2297_v61  ;;  %v2318_v61 = vld [vmem:[#allocation8 + $0x758] sm:$0xff] }
 0x2bb   :  { %6615 = vmatmul.mubr.bf16.gmra.mrb[108].mxu1 %v11766_v17  ;;  %6227 = vmatprep.subr.bf16.mxu0 %v8443_v32  ;;  %v2305_v32 = vld [vmem:[#allocation8 + $0x6f0] sm:$0xff]  ;;  %v2306_v17 = vld [vmem:[#allocation8 + $0x6f8] sm:$0xff] }
 0x2bc   :  { %6624 = vmatprep.mubr.bf16.mxu1 %v11767_v24  ;;  %6678 = vmatpush1.bf16.msra.mxu1 %v8436_v37  ;;  %v8469_v37 = vcombine.high %v2294_v36, %v2298_v56  ;;  %v8468_v24 = vcombine.low %v2294_v36, %v2298_v56  ;;  %v8474_v42 = vcombine.low %v2301_v28, %v2305_v32  ;;  %v2329_v36 = vld [vmem:[#allocation8 + $0x7b0] sm:$0xff] }
 0x2bd   :  { %6679 = vmatprep.subr.bf16.mxu1 %v8445_v43  ;;  %v8475_v43 = vcombine.high %v2301_v28, %v2305_v32  ;;  %v8476_v44 = vcombine.low %v2302_v20, %v2306_v17  ;;  %v11772_v56 = vld [vmem:[#allocation38_spill] sm:$0xff]  ;;  %v2326_v32 = vld [vmem:[#allocation8 + $0x798] sm:$0xff] }
 0x2be   :  { %6228 = vmatpush1.bf16.msra.mxu0 %v8442_v13  ;;  %v2309_v13 = vld [vmem:[#allocation8 + $0x710] sm:$0xff] }
 0x2bf   :  { %6229 = vmatprep.subr.bf16.mxu0 %v8451_v1  ;;  %v8477_v1 = vcombine.high %v2302_v20, %v2306_v17  ;;  %v8482_v54 = vcombine.low %v2309_v13, %v2313_v3  ;;  %v2333_v17 = vld [vmem:[#allocation8 + $0x7d0] sm:$0xff] }
 0x2c0   :  { %6680 = vmatpush1.bf16.msra.mxu1 %v8444_v55  ;;  %v11771_v55 = vld [vmem:[#allocation39_spill] sm:$0xff] }
 0x2c1   :  { %6173 = vmatmul.mubr.bf16.gmra.mrb[112].mxu0 %v11768_v18  ;;  %6681 = vmatprep.subr.bf16.mxu1 %v8453_v35  ;;  %v2314_v35 = vld [vmem:[#allocation8 + $0x738] sm:$0xff] }
 0x2c2   :  { %6230 = vmatpush1.bf16.msra.mxu0 %v8450_v52  ;;  %6182 = vmatprep.mubr.bf16.mxu0 %v11769_v58  ;;  %v8483_v52 = vcombine.high %v2309_v13, %v2313_v3  ;;  %v2334_v3 = vld [vmem:[#allocation8 + $0x7d8] sm:$0xff] }
 0x2c3   :  { %6625 = vmatmul.mubr.bf16.gmra.mrb[112].mxu1 %v11768_v18  ;;  %6231 = vmatprep.subr.bf16.mxu0 %v8459_v9  ;;  %v2321_v9 = vld [vmem:[#allocation8 + $0x770] sm:$0xff]  ;;  %v2322_v18 = vld [vmem:[#allocation8 + $0x778] sm:$0xff] }
 0x2c4   :  { %6634 = vmatprep.mubr.bf16.mxu1 %v11769_v58  ;;  %6682 = vmatpush1.bf16.msra.mxu1 %v8452_v6  ;;  %v8485_v6 = vcombine.high %v2310_v26, %v2314_v35  ;;  %v8484_v58 = vcombine.low %v2310_v26, %v2314_v35  ;;  %v8490_v28 = vcombine.low %v2317_v59, %v2321_v9  ;;  %v2345_v26 = vld [vmem:[#allocation8 + $0x830] sm:$0xff] }
 0x2c5   :  { %6683 = vmatprep.subr.bf16.mxu1 %v8461_v14  ;;  %v8491_v14 = vcombine.high %v2317_v59, %v2321_v9  ;;  %v8492_v20 = vcombine.low %v2318_v61, %v2322_v18  ;;  %v11774_v35 = vld [vmem:[#allocation42_spill] sm:$0xff]  ;;  %v2342_v9 = vld [vmem:[#allocation8 + $0x818] sm:$0xff] }
 0x2c6   :  { %6232 = vmatpush1.bf16.msra.mxu0 %v8458_v33  ;;  %v2325_v33 = vld [vmem:[#allocation8 + $0x790] sm:$0xff] }
 0x2c7   :  { %6233 = vmatprep.subr.bf16.mxu0 %v8467_v25  ;;  %v8493_v25 = vcombine.high %v2318_v61, %v2322_v18  ;;  %v8498_v13 = vcombine.low %v2325_v33, %v2329_v36  ;;  %v2349_v18 = vld [vmem:[#allocation8 + $0x850] sm:$0xff] }
 0x2c8   :  { %6684 = vmatpush1.bf16.msra.mxu1 %v8460_v50  ;;  %v11773_v50 = vld [vmem:[#allocation43_spill] sm:$0xff] }
 0x2c9   :  { %6183 = vmatmul.mubr.bf16.gmra.mrb[116].mxu0 %v11770_v41  ;;  %6685 = vmatprep.subr.bf16.mxu1 %v8469_v37  ;;  %v2330_v37 = vld [vmem:[#allocation8 + $0x7b8] sm:$0xff] }
 0x2ca   :  { %6234 = vmatpush1.bf16.msra.mxu0 %v8466_v0  ;;  %6192 = vmatprep.mubr.bf16.mxu0 %v11771_v55  ;;  %v8499_v0 = vcombine.high %v2325_v33, %v2329_v36  ;;  %v2350_v36 = vld [vmem:[#allocation8 + $0x858] sm:$0xff] }
 0x2cb   :  { %6635 = vmatmul.mubr.bf16.gmra.mrb[116].mxu1 %v11770_v41  ;;  %6235 = vmatprep.subr.bf16.mxu0 %v8475_v43  ;;  %v2337_v43 = vld [vmem:[#allocation8 + $0x7f0] sm:$0xff]  ;;  %v2338_v41 = vld [vmem:[#allocation8 + $0x7f8] sm:$0xff] }
 0x2cc   :  { %6644 = vmatprep.mubr.bf16.mxu1 %v11771_v55  ;;  %6686 = vmatpush1.bf16.msra.mxu1 %v8468_v24  ;;  %v8501_v24 = vcombine.high %v2326_v32, %v2330_v37  ;;  %v8500_v55 = vcombine.low %v2326_v32, %v2330_v37  ;;  %v8506_v59 = vcombine.low %v2333_v17, %v2337_v43  ;;  %v2361_v32 = vld [vmem:[#allocation8 + $0x8b0] sm:$0xff]  ;;  %v11776_v37 = vld [vmem:[#allocation20_spill] sm:$0xff] }
 0x2cd   :  { %6687 = vmatprep.subr.bf16.mxu1 %v8477_v1  ;;  %v8507_v1 = vcombine.high %v2333_v17, %v2337_v43  ;;  %v8508_v61 = vcombine.low %v2334_v3, %v2338_v41  ;;  %v2358_v43 = vld [vmem:[#allocation8 + $0x898] sm:$0xff] }
 0x2ce   :  { %6236 = vmatpush1.bf16.msra.mxu0 %v8474_v42  ;;  %v2341_v42 = vld [vmem:[#allocation8 + $0x810] sm:$0xff] }
 0x2cf   :  { %6237 = vmatprep.subr.bf16.mxu0 %v8483_v52  ;;  %v8509_v52 = vcombine.high %v2334_v3, %v2338_v41  ;;  %v8514_v33 = vcombine.low %v2341_v42, %v2345_v26  ;;  %v2365_v41 = vld [vmem:[#allocation8 + $0x8d0] sm:$0xff] }
 0x2d0   :  { %6688 = vmatpush1.bf16.msra.mxu1 %v8476_v44  ;;  %v11775_v44 = vld [vmem:[#allocation21_spill] sm:$0xff] }
 0x2d1   :  { %6193 = vmatmul.mubr.bf16.gmra.mrb[120].mxu0 %v11772_v56  ;;  %6689 = vmatprep.subr.bf16.mxu1 %v8485_v6  ;;  %v2346_v6 = vld [vmem:[#allocation8 + $0x838] sm:$0xff] }
 0x2d2   :  { %6238 = vmatpush1.bf16.msra.mxu0 %v8482_v54  ;;  %6202 = vmatprep.mubr.bf16.mxu0 %v11773_v50  ;;  %v8515_v54 = vcombine.high %v2341_v42, %v2345_v26  ;;  %v2366_v26 = vld [vmem:[#allocation8 + $0x8d8] sm:$0xff] }
 0x2d3   :  { %6645 = vmatmul.mubr.bf16.gmra.mrb[120].mxu1 %v11772_v56  ;;  %6239 = vmatprep.subr.bf16.mxu0 %v8491_v14  ;;  %v2353_v14 = vld [vmem:[#allocation8 + $0x870] sm:$0xff]  ;;  %v2354_v56 = vld [vmem:[#allocation8 + $0x878] sm:$0xff] }
 0x2d4   :  { %6654 = vmatprep.mubr.bf16.mxu1 %v11773_v50  ;;  %6690 = vmatpush1.bf16.msra.mxu1 %v8484_v58  ;;  %v8517_v58 = vcombine.high %v2342_v9, %v2346_v6  ;;  %v8516_v50 = vcombine.low %v2342_v9, %v2346_v6  ;;  %v8522_v17 = vcombine.low %v2349_v18, %v2353_v14  ;;  %v2377_v9 = vld [vmem:[#allocation8 + $0x930] sm:$0xff]  ;;  %v11778_v6 = vld [vmem:[#allocation24_spill] sm:$0xff] }
 0x2d5   :  { %6691 = vmatprep.subr.bf16.mxu1 %v8493_v25  ;;  %v8523_v25 = vcombine.high %v2349_v18, %v2353_v14  ;;  %v8524_v3 = vcombine.low %v2350_v36, %v2354_v56  ;;  %v2374_v14 = vld [vmem:[#allocation8 + $0x918] sm:$0xff] }
 0x2d6   :  { %6240 = vmatpush1.bf16.msra.mxu0 %v8490_v28  ;;  %v2357_v28 = vld [vmem:[#allocation8 + $0x890] sm:$0xff] }
 0x2d7   :  { %6241 = vmatprep.subr.bf16.mxu0 %v8499_v0  ;;  %v8525_v0 = vcombine.high %v2350_v36, %v2354_v56  ;;  %v8530_v42 = vcombine.low %v2357_v28, %v2361_v32  ;;  %v2381_v56 = vld [vmem:[#allocation8 + $0x950] sm:$0xff] }
 0x2d8   :  { %6692 = vmatpush1.bf16.msra.mxu1 %v8492_v20  ;;  %v11777_v20 = vld [vmem:[#allocation25_spill] sm:$0xff] }
 0x2d9   :  { %6203 = vmatmul.mubr.bf16.gmra.mrb[124].mxu0 %v11774_v35  ;;  %6693 = vmatprep.subr.bf16.mxu1 %v8501_v24  ;;  %v2362_v24 = vld [vmem:[#allocation8 + $0x8b8] sm:$0xff] }
 0x2da   :  { %6242 = vmatpush1.bf16.msra.mxu0 %v8498_v13  ;;  %6245 = vmatprep.mubr.bf16.mxu0 %v11775_v44  ;;  %v8531_v13 = vcombine.high %v2357_v28, %v2361_v32  ;;  %v2382_v32 = vld [vmem:[#allocation8 + $0x958] sm:$0xff] }
 0x2db   :  { %6655 = vmatmul.mubr.bf16.gmra.mrb[124].mxu1 %v11774_v35  ;;  %6243 = vmatprep.subr.bf16.mxu0 %v8507_v1  ;;  %v2369_v1 = vld [vmem:[#allocation8 + $0x8f0] sm:$0xff]  ;;  %v2370_v35 = vld [vmem:[#allocation8 + $0x8f8] sm:$0xff] }
 0x2dc   :  { %6694 = vmatpush1.bf16.msra.mxu1 %v8500_v55  ;;  %6697 = vmatprep.mubr.bf16.mxu1 %v11775_v44  ;;  %v8533_v55 = vcombine.high %v2358_v43, %v2362_v24  ;;  %v8532_v44 = vcombine.low %v2358_v43, %v2362_v24  ;;  %v8538_v18 = vcombine.low %v2365_v41, %v2369_v1  ;;  %v2393_v43 = vld [vmem:[#allocation8 + $0x9b0] sm:$0xff]  ;;  %v11780_v24 = vld [vmem:[#allocation28_spill] sm:$0xff] }
 0x2dd   :  { %6695 = vmatprep.subr.bf16.mxu1 %v8509_v52  ;;  %v8539_v52 = vcombine.high %v2365_v41, %v2369_v1  ;;  %v8540_v36 = vcombine.low %v2366_v26, %v2370_v35  ;;  %v2390_v1 = vld [vmem:[#allocation8 + $0x998] sm:$0xff] }
 0x2de   :  { %6244 = vmatpush1.bf16.msra.mxu0 %v8506_v59  ;;  %v2373_v59 = vld [vmem:[#allocation8 + $0x910] sm:$0xff] }
 0x2df   :  { %6326 = vmatprep.subr.bf16.mxu0 %v8515_v54  ;;  %v8541_v54 = vcombine.high %v2366_v26, %v2370_v35  ;;  %v8546_v28 = vcombine.low %v2373_v59, %v2377_v9  ;;  %v2397_v35 = vld [vmem:[#allocation8 + $0x9d0] sm:$0xff] }
 0x2e0   :  { %6696 = vmatpush1.bf16.msra.mxu1 %v8508_v61  ;;  %v11779_v61 = vld [vmem:[#allocation29_spill] sm:$0xff] }
 0x2e1   :  { %6246 = vmatmul.mubr.bf16.vlgmr.msra.gmra.mrb[96].mxu0 %v11776_v37  ;;  %6778 = vmatprep.subr.bf16.mxu1 %v8517_v58  ;;  %v2378_v58 = vld [vmem:[#allocation8 + $0x938] sm:$0xff] }
 0x2e2   :  { %6327 = vmatpush1.bf16.msra.mxu0 %v8514_v33  ;;  %6255 = vmatprep.mubr.bf16.mxu0 %v11777_v20  ;;  %v8547_v33 = vcombine.high %v2373_v59, %v2377_v9  ;;  %v2398_v9 = vld [vmem:[#allocation8 + $0x9d8] sm:$0xff] }
 0x2e3   :  { %6698 = vmatmul.mubr.bf16.vlgmr.msra.gmra.mrb[96].mxu1 %v11776_v37  ;;  %6328 = vmatprep.subr.bf16.mxu0 %v8523_v25  ;;  %v2385_v25 = vld [vmem:[#allocation8 + $0x970] sm:$0xff]  ;;  %v2386_v37 = vld [vmem:[#allocation8 + $0x978] sm:$0xff] }
 0x2e4   :  { %6707 = vmatprep.mubr.bf16.mxu1 %v11777_v20  ;;  %6779 = vmatpush1.bf16.msra.mxu1 %v8516_v50  ;;  %v8549_v50 = vcombine.high %v2374_v14, %v2378_v58  ;;  %v8548_v20 = vcombine.low %v2374_v14, %v2378_v58  ;;  %v8554_v41 = vcombine.low %v2381_v56, %v2385_v25  ;;  %v2409_v14 = vld [vmem:[#allocation8 + $0xa30] sm:$0xff]  ;;  %v11782_v58 = vld [vmem:[#allocation32_spill] sm:$0xff] }
 0x2e5   :  { %6780 = vmatprep.subr.bf16.mxu1 %v8525_v0  ;;  %v8555_v0 = vcombine.high %v2381_v56, %v2385_v25  ;;  %v8556_v26 = vcombine.low %v2382_v32, %v2386_v37  ;;  %v2406_v25 = vld [vmem:[#allocation8 + $0xa18] sm:$0xff] }
 0x2e6   :  { %6329 = vmatpush1.bf16.msra.mxu0 %v8522_v17  ;;  %v2389_v17 = vld [vmem:[#allocation8 + $0x990] sm:$0xff] }
 0x2e7   :  { %6330 = vmatprep.subr.bf16.mxu0 %v8531_v13  ;;  %v8557_v13 = vcombine.high %v2382_v32, %v2386_v37  ;;  %v8562_v59 = vcombine.low %v2389_v17, %v2393_v43  ;;  %v2413_v37 = vld [vmem:[#allocation8 + $0xa50] sm:$0xff] }
 0x2e8   :  { %6781 = vmatpush1.bf16.msra.mxu1 %v8524_v3  ;;  %v11781_v3 = vld [vmem:[#allocation33_spill] sm:$0xff] }
 0x2e9   :  { %6256 = vmatmul.mubr.bf16.gmra.mrb[100].mxu0 %v11778_v6  ;;  %6782 = vmatprep.subr.bf16.mxu1 %v8533_v55  ;;  %v2394_v55 = vld [vmem:[#allocation8 + $0x9b8] sm:$0xff] }
 0x2ea   :  { %6331 = vmatpush1.bf16.msra.mxu0 %v8530_v42  ;;  %6265 = vmatprep.mubr.bf16.mxu0 %v11779_v61  ;;  %v8563_v42 = vcombine.high %v2389_v17, %v2393_v43  ;;  %v2414_v43 = vld [vmem:[#allocation8 + $0xa58] sm:$0xff] }
 0x2eb   :  { %6708 = vmatmul.mubr.bf16.gmra.mrb[100].mxu1 %v11778_v6  ;;  %6332 = vmatprep.subr.bf16.mxu0 %v8539_v52  ;;  %v2401_v52 = vld [vmem:[#allocation8 + $0x9f0] sm:$0xff]  ;;  %v2402_v6 = vld [vmem:[#allocation8 + $0x9f8] sm:$0xff] }
 0x2ec   :  { %6717 = vmatprep.mubr.bf16.mxu1 %v11779_v61  ;;  %6783 = vmatpush1.bf16.msra.mxu1 %v8532_v44  ;;  %v8565_v44 = vcombine.high %v2390_v1, %v2394_v55  ;;  %v8564_v61 = vcombine.low %v2390_v1, %v2394_v55  ;;  %v8570_v56 = vcombine.low %v2397_v35, %v2401_v52  ;;  %v2425_v1 = vld [vmem:[#allocation8 + $0xab0] sm:$0xff]  ;;  %v11784_v55 = vld [vmem:[#allocation36_spill] sm:$0xff] }
 0x2ed   :  { %6784 = vmatprep.subr.bf16.mxu1 %v8541_v54  ;;  %v8571_v54 = vcombine.high %v2397_v35, %v2401_v52  ;;  %v8572_v32 = vcombine.low %v2398_v9, %v2402_v6  ;;  %v2422_v52 = vld [vmem:[#allocation8 + $0xa98] sm:$0xff] }
 0x2ee   :  { %6333 = vmatpush1.bf16.msra.mxu0 %v8538_v18  ;;  %v2405_v18 = vld [vmem:[#allocation8 + $0xa10] sm:$0xff] }
 0x2ef   :  { %6334 = vmatprep.subr.bf16.mxu0 %v8547_v33  ;;  %v8573_v33 = vcombine.high %v2398_v9, %v2402_v6  ;;  %v8578_v17 = vcombine.low %v2405_v18, %v2409_v14  ;;  %v2429_v6 = vld [vmem:[#allocation8 + $0xad0] sm:$0xff] }
 0x2f0   :  { %6785 = vmatpush1.bf16.msra.mxu1 %v8540_v36  ;;  %v11783_v36 = vld [vmem:[#allocation37_spill] sm:$0xff] }
 0x2f1   :  { %6266 = vmatmul.mubr.bf16.gmra.mrb[104].mxu0 %v11780_v24  ;;  %6786 = vmatprep.subr.bf16.mxu1 %v8549_v50  ;;  %v2410_v50 = vld [vmem:[#allocation8 + $0xa38] sm:$0xff] }
 0x2f2   :  { %6335 = vmatpush1.bf16.msra.mxu0 %v8546_v28  ;;  %6275 = vmatprep.mubr.bf16.mxu0 %v11781_v3  ;;  %v8579_v28 = vcombine.high %v2405_v18, %v2409_v14  ;;  %v2430_v14 = vld [vmem:[#allocation8 + $0xad8] sm:$0xff] }
 0x2f3   :  { %6718 = vmatmul.mubr.bf16.gmra.mrb[104].mxu1 %v11780_v24  ;;  %6336 = vmatprep.subr.bf16.mxu0 %v8555_v0  ;;  %v2417_v0 = vld [vmem:[#allocation8 + $0xa70] sm:$0xff]  ;;  %v2418_v24 = vld [vmem:[#allocation8 + $0xa78] sm:$0xff] }
 0x2f4   :  { %6727 = vmatprep.mubr.bf16.mxu1 %v11781_v3  ;;  %6787 = vmatpush1.bf16.msra.mxu1 %v8548_v20  ;;  %v8581_v20 = vcombine.high %v2406_v25, %v2410_v50  ;;  %v8580_v3 = vcombine.low %v2406_v25, %v2410_v50  ;;  %v8586_v35 = vcombine.low %v2413_v37, %v2417_v0  ;;  %v2441_v25 = vld [vmem:[#allocation8 + $0xb30] sm:$0xff]  ;;  %v11786_v50 = vld [vmem:[#allocation40_spill] sm:$0xff] }
 0x2f5   :  { %6788 = vmatprep.subr.bf16.mxu1 %v8557_v13  ;;  %v8587_v13 = vcombine.high %v2413_v37, %v2417_v0  ;;  %v8588_v9 = vcombine.low %v2414_v43, %v2418_v24  ;;  %v2438_v0 = vld [vmem:[#allocation8 + $0xb18] sm:$0xff] }
 0x2f6   :  { %6337 = vmatpush1.bf16.msra.mxu0 %v8554_v41  ;;  %v2421_v41 = vld [vmem:[#allocation8 + $0xa90] sm:$0xff] }
 0x2f7   :  { %6338 = vmatprep.subr.bf16.mxu0 %v8563_v42  ;;  %v8589_v42 = vcombine.high %v2414_v43, %v2418_v24  ;;  %v8594_v18 = vcombine.low %v2421_v41, %v2425_v1  ;;  %v2445_v24 = vld [vmem:[#allocation8 + $0xb50] sm:$0xff] }
 0x2f8   :  { %6789 = vmatpush1.bf16.msra.mxu1 %v8556_v26  ;;  %v11785_v26 = vld [vmem:[#allocation41_spill] sm:$0xff] }
 0x2f9   :  { %6276 = vmatmul.mubr.bf16.gmra.mrb[108].mxu0 %v11782_v58  ;;  %6790 = vmatprep.subr.bf16.mxu1 %v8565_v44  ;;  %v2426_v44 = vld [vmem:[#allocation8 + $0xab8] sm:$0xff] }
 0x2fa   :  { %6339 = vmatpush1.bf16.msra.mxu0 %v8562_v59  ;;  %6285 = vmatprep.mubr.bf16.mxu0 %v11783_v36  ;;  %v8595_v59 = vcombine.high %v2421_v41, %v2425_v1  ;;  %v2446_v1 = vld [vmem:[#allocation8 + $0xb58] sm:$0xff] }
 0x2fb   :  { %6728 = vmatmul.mubr.bf16.gmra.mrb[108].mxu1 %v11782_v58  ;;  %6340 = vmatprep.subr.bf16.mxu0 %v8571_v54  ;;  %v2433_v54 = vld [vmem:[#allocation8 + $0xaf0] sm:$0xff]  ;;  %v2434_v58 = vld [vmem:[#allocation8 + $0xaf8] sm:$0xff] }
 0x2fc   :  { %6737 = vmatprep.mubr.bf16.mxu1 %v11783_v36  ;;  %6791 = vmatpush1.bf16.msra.mxu1 %v8564_v61  ;;  %v8597_v61 = vcombine.high %v2422_v52, %v2426_v44  ;;  %v8596_v36 = vcombine.low %v2422_v52, %v2426_v44  ;;  %v8602_v37 = vcombine.low %v2429_v6, %v2433_v54  ;;  %v2457_v52 = vld [vmem:[#allocation8 + $0xbb0] sm:$0xff]  ;;  %v11788_v44 = vld [vmem:[#allocation44_spill] sm:$0xff] }
 0x2fd   :  { %6792 = vmatprep.subr.bf16.mxu1 %v8573_v33  ;;  %v8603_v33 = vcombine.high %v2429_v6, %v2433_v54  ;;  %v8604_v43 = vcombine.low %v2430_v14, %v2434_v58  ;;  %v2454_v54 = vld [vmem:[#allocation8 + $0xb98] sm:$0xff] }
 0x2fe   :  { %6341 = vmatpush1.bf16.msra.mxu0 %v8570_v56  ;;  %v2437_v56 = vld [vmem:[#allocation8 + $0xb10] sm:$0xff] }
 0x2ff   :  { %6342 = vmatprep.subr.bf16.mxu0 %v8579_v28  ;;  %v8605_v28 = vcombine.high %v2430_v14, %v2434_v58  ;;  %v8610_v41 = vcombine.low %v2437_v56, %v2441_v25  ;;  %v2461_v58 = vld [vmem:[#allocation8 + $0xbd0] sm:$0xff] }
 0x300   :  { %6793 = vmatpush1.bf16.msra.mxu1 %v8572_v32  ;;  %v11787_v32 = vld [vmem:[#allocation45_spill] sm:$0xff] }
 0x301   :  { %6286 = vmatmul.mubr.bf16.gmra.mrb[112].mxu0 %v11784_v55  ;;  %6794 = vmatprep.subr.bf16.mxu1 %v8581_v20  ;;  %v2442_v20 = vld [vmem:[#allocation8 + $0xb38] sm:$0xff] }
 0x302   :  { %6343 = vmatpush1.bf16.msra.mxu0 %v8578_v17  ;;  %6295 = vmatprep.mubr.bf16.mxu0 %v11785_v26  ;;  %v8611_v17 = vcombine.high %v2437_v56, %v2441_v25  ;;  %v2462_v25 = vld [vmem:[#allocation8 + $0xbd8] sm:$0xff] }
 0x303   :  { %6738 = vmatmul.mubr.bf16.gmra.mrb[112].mxu1 %v11784_v55  ;;  %6344 = vmatprep.subr.bf16.mxu0 %v8587_v13  ;;  %v2449_v13 = vld [vmem:[#allocation8 + $0xb70] sm:$0xff]  ;;  %v2450_v55 = vld [vmem:[#allocation8 + $0xb78] sm:$0xff] }
 0x304   :  { %6747 = vmatprep.mubr.bf16.mxu1 %v11785_v26  ;;  %6795 = vmatpush1.bf16.msra.mxu1 %v8580_v3  ;;  %v8613_v3 = vcombine.high %v2438_v0, %v2442_v20  ;;  %v8612_v26 = vcombine.low %v2438_v0, %v2442_v20  ;;  %v8618_v6 = vcombine.low %v2445_v24, %v2449_v13  ;;  %v2473_v0 = vld [vmem:[#allocation8 + $0xc30] sm:$0xff] }
 0x305   :  { %6796 = vmatprep.subr.bf16.mxu1 %v8589_v42  ;;  %v8619_v42 = vcombine.high %v2445_v24, %v2449_v13  ;;  %v8620_v14 = vcombine.low %v2446_v1, %v2450_v55  ;;  %v2474_v24 = vld [vmem:[#allocation8 + $0xc38] sm:$0xff] }
 0x306   :  { %6345 = vmatpush1.bf16.msra.mxu0 %v8586_v35  ;;  %v2453_v35 = vld [vmem:[#allocation8 + $0xb90] sm:$0xff] }
 0x307   :  { %6346 = vmatprep.subr.bf16.mxu0 %v8595_v59  ;;  %v8621_v59 = vcombine.high %v2446_v1, %v2450_v55  ;;  %v8626_v56 = vcombine.low %v2453_v35, %v2457_v52  ;;  %v2481_v1 = vld [vmem:[#allocation8 + $0xc70] sm:$0xff] }
 0x308   :  { %6797 = vmatpush1.bf16.msra.mxu1 %v8588_v9  ;;  %v11789_v9 = vld [vmem:[#allocation46_spill] sm:$0xff] }
 0x309   :  { %6296 = vmatmul.mubr.bf16.gmra.mrb[116].mxu0 %v11786_v50  ;;  %6798 = vmatprep.subr.bf16.mxu1 %v8597_v61  ;;  %v2458_v61 = vld [vmem:[#allocation8 + $0xbb8] sm:$0xff] }
 0x30a   :  { %6347 = vmatpush1.bf16.msra.mxu0 %v8594_v18  ;;  %6305 = vmatprep.mubr.bf16.mxu0 %v11787_v32  ;;  %v8627_v18 = vcombine.high %v2453_v35, %v2457_v52  ;;  %v2482_v35 = vld [vmem:[#allocation8 + $0xc78] sm:$0xff] }
 0x30b   :  { %6748 = vmatmul.mubr.bf16.gmra.mrb[116].mxu1 %v11786_v50  ;;  %6348 = vmatprep.subr.bf16.mxu0 %v8603_v33  ;;  %v2465_v33 = vld [vmem:[#allocation8 + $0xbf0] sm:$0xff]  ;;  %v2466_v50 = vld [vmem:[#allocation8 + $0xbf8] sm:$0xff] }
 0x30c   :  { %6757 = vmatprep.mubr.bf16.mxu1 %v11787_v32  ;;  %6799 = vmatpush1.bf16.msra.mxu1 %v8596_v36  ;;  %v8629_v36 = vcombine.high %v2454_v54, %v2458_v61  ;;  %v8628_v32 = vcombine.low %v2454_v54, %v2458_v61  ;;  %v8637_v20 = vcombine.high %v2462_v25, %v2466_v50  ;;  %v2490_v54 = vld [vmem:[#allocation8 + $0xcb8] sm:$0xff] }
 0x30d   :  { %6800 = vmatprep.subr.bf16.mxu1 %v8605_v28  ;;  %v8635_v28 = vcombine.high %v2461_v58, %v2465_v33 }
 0x30e   :  { %6349 = vmatpush1.bf16.msra.mxu0 %v8602_v37  ;;  %v2469_v37 = vld [vmem:[#allocation8 + $0xc10] sm:$0xff] }
 0x30f   :  { %6350 = vmatprep.subr.bf16.mxu0 %v8611_v17  ;;  %v8634_v17 = vcombine.low %v2461_v58, %v2465_v33  ;;  %v8643_v13 = vcombine.high %v2469_v37, %v2473_v0  ;;  %v2497_v58 = vld [vmem:[#allocation8 + $0xcf0] sm:$0xff] }
 0x310   :  { %6801 = vmatpush1.bf16.msra.mxu1 %v8604_v43  ;;  %v2470_v43 = vld [vmem:[#allocation8 + $0xc18] sm:$0xff] }
 0x311   :  { %6306 = vmatmul.mubr.bf16.gmra.mrb[120].mxu0 %v11788_v44  ;;  %6802 = vmatprep.subr.bf16.mxu1 %v8613_v3  ;;  %v8636_v3 = vcombine.low %v2462_v25, %v2466_v50  ;;  %v8645_v55 = vcombine.high %v2470_v43, %v2474_v24  ;;  %v2498_v25 = vld [vmem:[#allocation8 + $0xcf8] sm:$0xff] }
 0x312   :  { %6351 = vmatpush1.bf16.msra.mxu0 %v8610_v41  ;;  %6315 = vmatprep.mubr.bf16.mxu0 %v11789_v9  ;;  %v2477_v41 = vld [vmem:[#allocation8 + $0xc50] sm:$0xff] }
 0x313   :  { %6758 = vmatmul.mubr.bf16.gmra.mrb[120].mxu1 %v11788_v44  ;;  %6352 = vmatprep.subr.bf16.mxu0 %v8619_v42  ;;  %v8642_v42 = vcombine.low %v2469_v37, %v2473_v0  ;;  %v8651_v52 = vcombine.high %v2477_v41, %v2481_v1  ;;  %v8644_v44 = vcombine.low %v2470_v43, %v2474_v24  ;;  %v2502_v0 = vld [vmem:[#allocation8 + $0xd18] sm:$0xff]  ;;  %v2509_v24 = vld [vmem:[#allocation8 + $0xd50] sm:$0xff] }
 0x314   :  { %6767 = vmatprep.mubr.bf16.mxu1 %v11789_v9  ;;  %6803 = vmatpush1.bf16.msra.mxu1 %v8612_v26  ;;  %v2478_v26 = vld [vmem:[#allocation8 + $0xc58] sm:$0xff] }
 0x315   :  { %6804 = vmatprep.subr.bf16.mxu1 %v8621_v59  ;;  %v2485_v59 = vld [vmem:[#allocation8 + $0xc90] sm:$0xff]  ;;  %v8653_v9 = vcombine.high %v2478_v26, %v2482_v35 }
 0x316   :  { %6353 = vmatpush1.bf16.msra.mxu0 %v8618_v6  ;;  %v2486_v6 = vld [vmem:[#allocation8 + $0xc98] sm:$0xff] }
 0x317   :  { %6354 = vmatprep.subr.bf16.mxu0 %v8627_v18  ;;  %v8652_v18 = vcombine.low %v2478_v26, %v2482_v35  ;;  %v8661_v33 = vcombine.high %v2486_v6, %v2490_v54 }
 0x318   :  { %6805 = vmatpush1.bf16.msra.mxu1 %v8620_v14  ;;  %v2493_v14 = vld [vmem:[#allocation8 + $0xcd0] sm:$0xff] }
 0x319   :  { %6316 = vmatmul.mubr.bf16.gmra.mrb[124].mxu0 %v10677_v22  ;;  %6806 = vmatprep.subr.bf16.mxu1 %v8629_v36  ;;  %v8667_v50 = vcombine.high %v2493_v14, %v2497_v58  ;;  %v8666_v37 = vcombine.low %v2493_v14, %v2497_v58  ;;  %v2522_v14 = vld [vmem:[#allocation8 + $0xdb8] sm:$0xff] }
 0x31a   :  { %6355 = vmatpush1.bf16.msra.mxu0 %v8626_v56  ;;  %6358 = vmatprep.mubr.bf16.mxu0 %v10663_v10  ;;  %v2494_v56 = vld [vmem:[#allocation8 + $0xcd8] sm:$0xff] }
 0x31b   :  { %6768 = vmatmul.mubr.bf16.gmra.mrb[124].mxu1 %v10677_v22  ;;  %6356 = vmatprep.subr.bf16.mxu0 %v8635_v28  ;;  %v2489_v22 = vld [vmem:[#allocation8 + $0xcb0] sm:$0xff]  ;;  %v8660_v28 = vcombine.low %v2486_v6, %v2490_v54  ;;  %v8668_v43 = vcombine.low %v2494_v56, %v2498_v25 }
 0x31c   :  { %6807 = vmatpush1.bf16.msra.mxu1 %v8628_v32  ;;  %6810 = vmatprep.mubr.bf16.mxu1 %v10663_v10  ;;  %v8650_v10 = vcombine.low %v2477_v41, %v2481_v1  ;;  %v8659_v61 = vcombine.high %v2485_v59, %v2489_v22  ;;  %v8658_v36 = vcombine.low %v2485_v59, %v2489_v22  ;;  %v2501_v32 = vld [vmem:[#allocation8 + $0xd10] sm:$0xff]  ;;  %v125_v1 = vld [vmem:[#allocation10] sm:$0xff] }
 0x31d   :  { %6808 = vmatprep.subr.bf16.mxu1 %v8637_v20  ;;  %v2506_v20 = vld [vmem:[#allocation8 + $0xd38] sm:$0xff] }
 0x31e   :  { %6357 = vmatpush1.bf16.msra.mxu0 %v8634_v17  ;;  %v8676_v35 = vcombine.low %v2502_v0, %v2506_v20 }
 0x31f   :  { %6439 = vmatprep.subr.bf16.mxu0 %v8643_v13  ;;  %v2513_v13 = vld [vmem:[#allocation8 + $0xd70] sm:$0xff] }
 0x320   :  { %6809 = vmatpush1.bf16.msra.mxu1 %v8636_v3  ;;  %v8677_v3 = vcombine.high %v2502_v0, %v2506_v20  ;;  %v8683_v26 = vcombine.high %v2509_v24, %v2513_v13  ;;  %v8682_v6 = vcombine.low %v2509_v24, %v2513_v13  ;;  %v11143_v24 = vld [vmem:[#allocation8 + $0xdf8] sm:$0xff] }
 0x321   :  { %6359 = vmatmul.mubr.bf16.vlgmr.msra.gmra.mrb[96].mxu0 %v10650_v57  ;;  %6891 = vmatprep.subr.bf16.mxu1 %v8645_v55  ;;  %v2510_v55 = vld [vmem:[#allocation8 + $0xd58] sm:$0xff] }
 0x322   :  { %6440 = vmatpush1.bf16.msra.mxu0 %v8642_v42  ;;  %6368 = vmatprep.mubr.bf16.mxu0 %v10714_v11  ;;  %v2514_v42 = vld [vmem:[#allocation8 + $0xd78] sm:$0xff] }
 0x323   :  { %6811 = vmatmul.mubr.bf16.vlgmr.msra.gmra.mrb[96].mxu1 %v10650_v57  ;;  %6441 = vmatprep.subr.bf16.mxu0 %v8651_v52  ;;  %v2505_v57 = vld [vmem:[#allocation8 + $0xd30] sm:$0xff]  ;;  %v8685_v22 = vcombine.high %v2510_v55, %v2514_v42 }
 0x324   :  { %6820 = vmatprep.mubr.bf16.mxu1 %v10714_v11  ;;  %6892 = vmatpush1.bf16.msra.mxu1 %v8644_v44  ;;  %v8669_v11 = vcombine.high %v2494_v56, %v2498_v25  ;;  %v8675_v17 = vcombine.high %v2501_v32, %v2505_v57  ;;  %v8674_v41 = vcombine.low %v2501_v32, %v2505_v57  ;;  %v2521_v52 = vld [vmem:[#allocation8 + $0xdb0] sm:$0xff] }
 0x325   :  { %6893 = vmatprep.subr.bf16.mxu1 %v8653_v9  ;;  %v8684_v25 = vcombine.low %v2510_v55, %v2514_v42 }
 0x326   :  { %6442 = vmatpush1.bf16.msra.mxu0 %v8650_v10 }
 0x327   :  { %6443 = vmatprep.subr.bf16.mxu0 %v8659_v61 }
 0x328   :  { %6894 = vmatpush1.bf16.msra.mxu1 %v8652_v18  ;;  %v2518_v18 = vld [vmem:[#allocation8 + $0xd98] sm:$0xff] }
 0x329   :  { %6369 = vmatmul.mubr.bf16.gmra.mrb[100].mxu0 %v10706_v51  ;;  %6895 = vmatprep.subr.bf16.mxu1 %v8661_v33 }
 0x32a   :  { %6444 = vmatpush1.bf16.msra.mxu0 %v8658_v36  ;;  %6378 = vmatprep.mubr.bf16.mxu0 %v10758_v60 }
 0x32b   :  { %6821 = vmatmul.mubr.bf16.gmra.mrb[100].mxu1 %v10706_v51  ;;  %6445 = vmatprep.subr.bf16.mxu0 %v8667_v50  ;;  %v2517_v51 = vld [vmem:[#allocation8 + $0xd90] sm:$0xff] }
 0x32c   :  { %6830 = vmatprep.mubr.bf16.mxu1 %v10758_v60  ;;  %6896 = vmatpush1.bf16.msra.mxu1 %v8660_v28  ;;  %v11790_v60 = vld [vmem:[#allocation18_spill] sm:$0xff]  ;;  %v8691_v36 = vcombine.high %v2517_v51, %v2521_v52 }
 0x32d   :  { %6897 = vmatprep.subr.bf16.mxu1 %v8669_v11  ;;  %v11791_v44 = vsub.s32 0, %v11790_v60  ;;  %v11792_v9 = vsub.s32 2, %v11790_v60  ;;  %v11793_v54 = vsub.s32 1, %v11790_v60  ;;  %v11794_v58 = vsub.s32 3, %v11790_v60  ;;  %v11134_v50 = vld [vmem:[#allocation8 + $0xdd0] sm:$0xff] }
 0x32e   :  { %6446 = vmatpush1.bf16.msra.mxu0 %v8666_v37  ;;  %v11136_v28 = vld [vmem:[#allocation8 + $0xdf0] sm:$0xff] }
 0x32f   :  { %6447 = vmatprep.subr.bf16.mxu0 %v8675_v17  ;;  %v11117_v59 = vrot.slane %v125_v1, %v11791_v44  ;;  %v11122_v10 = vrot.slane %v125_v1, %v11792_v9  ;;  %v11126_v61 = vrot.slane %v125_v1, %v11793_v54  ;;  %v11131_v33 = vrot.slane %v125_v1, %v11794_v58  ;;  %v11153_v44 = vld [vmem:[#allocation8 + $0xe10] sm:$0xff] }
 0x330   :  { %6898 = vmatpush1.bf16.msra.mxu1 %v8668_v43  ;;  %v8690_v17 = vcombine.low %v2517_v51, %v2521_v52  ;;  %v11141_v43 = vld [vmem:[#allocation8 + $0xdd8] sm:$0xff]  ;;  %v8699_v55 = vcombine.high %v11134_v50, %v11136_v28  ;;  %v8692_v51 = vcombine.low %v2518_v18, %v2522_v14  ;;  %v8698_v52 = vcombine.low %v11134_v50, %v11136_v28 }
 0x331   :  { %6379 = vmatmul.mubr.bf16.gmra.mrb[104].mxu0 %v10750_v48  ;;  %6899 = vmatprep.subr.bf16.mxu1 %v8677_v3  ;;  %v8701_v58 = vcombine.high %v11141_v43, %v11143_v24  ;;  %v11164_v50 = vld [vmem:[#allocation8 + $0xe38] sm:$0xff] }
 0x332   :  { %6448 = vmatpush1.bf16.msra.mxu0 %v8674_v41  ;;  %6388 = vmatprep.mubr.bf16.mxu0 %v10802_v23 }
 0x333   :  { %6831 = vmatmul.mubr.bf16.gmra.mrb[104].mxu1 %v10750_v48  ;;  %6449 = vmatprep.subr.bf16.mxu0 %v8683_v26  ;;  %v8693_v48 = vcombine.high %v2518_v18, %v2522_v14 }
 0x334   :  { %6840 = vmatprep.mubr.bf16.mxu1 %v10802_v23  ;;  %6900 = vmatpush1.bf16.msra.mxu1 %v8676_v35  ;;  %v5569_v56 = vpop.f32.mrb[64].mxu0 }
 0x335   :  { %v9087_v32 = vadd.f32 %v5569_v56, %v11117_v59  ;;  %v6021_v57 = vpop.f32.mrb[64].mxu1  ;;  %v5571_v11 = vpop.f32.mrb[65].mxu0  ;;  %6901 = vmatprep.subr.bf16.mxu1 %v8685_v22  ;;  %v11155_v22 = vld [vmem:[#allocation8 + $0xe30] sm:$0xff] }
 0x336   :  { %v9119_v37 = vadd.f32 %v6021_v57, %v11122_v10  ;;  %v9088_v0 = vadd.f32 %v5571_v11, %v11126_v61  ;;  %v6023_v20 = vpop.f32.mrb[65].mxu1  ;;  %6450 = vmatpush1.bf16.msra.mxu0 %v8682_v6  ;;  %v5573_v23 = vpop.f32.mrb[66].mxu0  ;;  %v8707_v11 = vcombine.high %v11153_v44, %v11155_v22 }
 0x337   :  { %v9120_v13 = vadd.f32 %v6023_v20, %v11131_v33  ;;  %v9089_v3 = vadd.f32 %v5573_v23, %v11117_v59  ;;  %v6025_v41 = vpop.f32.mrb[66].mxu1  ;;  %v5575_v1 = vpop.f32.mrb[67].mxu0  ;;  %6451 = vmatprep.subr.bf16.mxu0 %v8691_v36  ;;  %v7004_v9 = vmax.f32 %v9087_v32, 0.0  ;;  %v8700_v20 = vcombine.low %v11141_v43, %v11143_v24  ;;  %v11178_v23 = vld [vmem:[#allocation8 + $0xe50] sm:$0xff] }
 0x338   :  { %v9121_v42 = vadd.f32 %v6025_v41, %v11122_v10  ;;  %6902 = vmatpush1.bf16.msra.mxu1 %v8684_v25  ;;  %v9090_v26 = vadd.f32 %v5575_v1, %v11126_v61  ;;  %v6027_v35 = vpop.f32.mrb[67].mxu1  ;;  %v7006_v36 = vmax.f32 %v9119_v37, 0.0  ;;  %v7005_v56 = vmax.f32 %v9088_v0, 0.0  ;;  %v11162_v25 = vld [vmem:[#allocation8 + $0xe18] sm:$0xff] }
 0x339   :  { %v7012_v6 = vmax.f32 %v9089_v3, 0.0  ;;  %v9122_v54 = vadd.f32 %v6027_v35, %v11131_v33  ;;  %6389 = vmatmul.mubr.bf16.gmra.mrb[108].mxu0 %v10794_v49  ;;  %6903 = vmatprep.subr.bf16.mxu1 %v8693_v48  ;;  %v7007_v28 = vmax.f32 %v9120_v13, 0.0  ;;  %v8709_v1 = vcombine.high %v11162_v25, %v11164_v50  ;;  %v11193_v35 = vld [vmem:[#allocation8 + $0xe78] sm:$0xff] }
 0x33a   :  { %v7014_v18 = vmax.f32 %v9121_v42, 0.0  ;;  %v7013_v14 = vmax.f32 %v9090_v26, 0.0  ;;  %6452 = vmatpush1.bf16.msra.mxu0 %v8690_v17  ;;  %6398 = vmatprep.mubr.bf16.mxu0 %v10846_v2  ;;  %v11180_v17 = vld [vmem:[#allocation8 + $0xe70] sm:$0xff]  ;;  %v8706_v24 = vcombine.low %v11153_v44, %v11155_v22  ;;  %v11191_v26 = vld [vmem:[#allocation8 + $0xe58] sm:$0xff]  ;;  %v8708_v22 = vcombine.low %v11162_v25, %v11164_v50 }
 0x33b   :  { %v11166_v32 = vpack.c.bf16 %v7012_v6, %v7004_v9  ;;  %v7015_v57 = vmax.f32 %v9122_v54, 0.0  ;;  %6841 = vmatmul.mubr.bf16.gmra.mrb[108].mxu1 %v10794_v49  ;;  %6453 = vmatprep.subr.bf16.mxu0 %v8699_v55 }
 0x33c   :  { %v11171_v48 = vpack.c.bf16 %v7014_v18, %v7006_v36  ;;  %v11173_v37 = vpack.c.bf16 %v7013_v14, %v7005_v56  ;;  %6850 = vmatprep.mubr.bf16.mxu1 %v10846_v2  ;;  %6904 = vmatpush1.bf16.msra.mxu1 %v8692_v51  ;;  %v5579_v0 = vpop.f32.mrb[68].mxu0  ;;  %v8714_v56 = vcombine.low %v11178_v23, %v11180_v17  ;;  %v11205_v18 = vld [vmem:[#allocation8 + $0xe90] sm:$0xff] }
 0x33d   :  { %v11182_v49 = vpack.c.bf16 %v7015_v57, %v7007_v28  ;;  %v9091_v13 = vadd.f32 %v5579_v0, %v11117_v59  ;;  %v6031_v3 = vpop.f32.mrb[68].mxu1  ;;  %v5581_v41 = vpop.f32.mrb[69].mxu0  ;;  %6905 = vmatprep.subr.bf16.mxu1 %v8701_v58  ;;  %v8715_v58 = vcombine.high %v11178_v23, %v11180_v17  ;;  %v11207_v14 = vld [vmem:[#allocation8 + $0xeb0] sm:$0xff]  ;;  %v8717_v0 = vcombine.high %v11191_v26, %v11193_v35  ;;  %v11214_v23 = vld [vmem:[#allocation8 + $0xe98] sm:$0xff] }
 0x33e   :  { %v9123_v2 = vadd.f32 %v6031_v3, %v11122_v10  ;;  %v9092_v55 = vadd.f32 %v5581_v41, %v11126_v61  ;;  %v6033_v42 = vpop.f32.mrb[69].mxu1  ;;  %6454 = vmatpush1.bf16.msra.mxu0 %v8698_v52  ;;  %v5583_v43 = vpop.f32.mrb[70].mxu0  ;;  %v11216_v17 = vld [vmem:[#allocation8 + $0xeb8] sm:$0xff] }
 0x33f   :  { %v9124_v51 = vadd.f32 %v6033_v42, %v11131_v33  ;;  %v9093_v9 = vadd.f32 %v5583_v43, %v11117_v59  ;;  %v6035_v6 = vpop.f32.mrb[70].mxu1  ;;  %v5585_v54 = vpop.f32.mrb[71].mxu0  ;;  %6455 = vmatprep.subr.bf16.mxu0 %v8707_v11  ;;  %v7020_v28 = vmax.f32 %v9091_v13, 0.0 }
 0x340   :  { %v9125_v52 = vadd.f32 %v6035_v6, %v11122_v10  ;;  %6906 = vmatpush1.bf16.msra.mxu1 %v8700_v20  ;;  %v9094_v36 = vadd.f32 %v5585_v54, %v11126_v61  ;;  %v6037_v44 = vpop.f32.mrb[71].mxu1  ;;  %v7022_v20 = vmax.f32 %v9123_v2, 0.0  ;;  %v7021_v3 = vmax.f32 %v9092_v55, 0.0 }
 0x341   :  { %v7028_v57 = vmax.f32 %v9093_v9, 0.0  ;;  %v9126_v11 = vadd.f32 %v6037_v44, %v11131_v33  ;;  %6399 = vmatmul.mubr.bf16.gmra.mrb[112].mxu0 %v10838_v12  ;;  %6907 = vmatprep.subr.bf16.mxu1 %v8709_v1  ;;  %v7023_v13 = vmax.f32 %v9124_v51, 0.0  ;;  %v8723_v1 = vcombine.high %v11205_v18, %v11207_v14  ;;  %v11230_v51 = vld [vmem:[#allocation8 + $0xed0] sm:$0xff] }
 0x342   :  { %v7030_v25 = vmax.f32 %v9125_v52, 0.0  ;;  %v7029_v50 = vmax.f32 %v9094_v36, 0.0  ;;  %6456 = vmatpush1.bf16.msra.mxu0 %v8706_v24  ;;  %6408 = vmatprep.mubr.bf16.mxu0 %v10890_v63  ;;  %v8716_v24 = vcombine.low %v11191_v26, %v11193_v35  ;;  %v11232_v9 = vld [vmem:[#allocation8 + $0xef0] sm:$0xff]  ;;  %v8725_v52 = vcombine.high %v11214_v23, %v11216_v17 }
 0x343   :  { %v11218_v41 = vpack.c.bf16 %v7028_v57, %v7020_v28  ;;  %v7031_v42 = vmax.f32 %v9126_v11, 0.0  ;;  %6851 = vmatmul.mubr.bf16.gmra.mrb[112].mxu1 %v10838_v12  ;;  %6457 = vmatprep.subr.bf16.mxu0 %v8715_v58  ;;  %v8722_v35 = vcombine.low %v11205_v18, %v11207_v14  ;;  %v11245_v28 = vld [vmem:[#allocation8 + $0xef8] sm:$0xff]  ;;  %v8724_v14 = vcombine.low %v11214_v23, %v11216_v17 }
 0x344   :  { %v11223_v2 = vpack.c.bf16 %v7030_v25, %v7022_v20  ;;  %v11225_v55 = vpack.c.bf16 %v7029_v50, %v7021_v3  ;;  %6860 = vmatprep.mubr.bf16.mxu1 %v10890_v63  ;;  %6908 = vmatpush1.bf16.msra.mxu1 %v8708_v22  ;;  %v5589_v43 = vpop.f32.mrb[72].mxu0  ;;  %v11243_v22 = vld [vmem:[#allocation8 + $0xed8] sm:$0xff]  ;;  %v8731_v3 = vcombine.high %v11230_v51, %v11232_v9 }
 0x345   :  { %v11234_v12 = vpack.c.bf16 %v7031_v42, %v7023_v13  ;;  %v9095_v6 = vadd.f32 %v5589_v43, %v11117_v59  ;;  %v6041_v54 = vpop.f32.mrb[72].mxu1  ;;  %v5591_v58 = vpop.f32.mrb[73].mxu0  ;;  %6909 = vmatprep.subr.bf16.mxu1 %v8717_v0  ;;  %v8730_v50 = vcombine.low %v11230_v51, %v11232_v9  ;;  %v11257_v13 = vld [vmem:[#allocation8 + $0xf10] sm:$0xff]  ;;  %v11266_v51 = vld [vmem:[#allocation8 + $0xf18] sm:$0xff] }
 0x346   :  { %v9127_v63 = vadd.f32 %v6041_v54, %v11122_v10  ;;  %v9096_v36 = vadd.f32 %v5591_v58, %v11126_v61  ;;  %v6043_v44 = vpop.f32.mrb[73].mxu1  ;;  %6458 = vmatpush1.bf16.msra.mxu0 %v8714_v56  ;;  %v5593_v26 = vpop.f32.mrb[74].mxu0  ;;  %v11259_v42 = vld [vmem:[#allocation8 + $0xf30] sm:$0xff]  ;;  %v11268_v9 = vld [vmem:[#allocation8 + $0xf38] sm:$0xff] }
 0x347   :  { %v9128_v57 = vadd.f32 %v6043_v44, %v11131_v33  ;;  %v9097_v11 = vadd.f32 %v5593_v26, %v11117_v59  ;;  %v6045_v0 = vpop.f32.mrb[74].mxu1  ;;  %v5595_v20 = vpop.f32.mrb[75].mxu0  ;;  %6459 = vmatprep.subr.bf16.mxu0 %v8723_v1  ;;  %v7036_v1 = vmax.f32 %v9095_v6, 0.0 }
 0x348   :  { %v9129_v56 = vadd.f32 %v6045_v0, %v11122_v10  ;;  %6910 = vmatpush1.bf16.msra.mxu1 %v8716_v24  ;;  %v9098_v25 = vadd.f32 %v5595_v20, %v11126_v61  ;;  %v6047_v18 = vpop.f32.mrb[75].mxu1  ;;  %v8733_v24 = vcombine.high %v11243_v22, %v11245_v28  ;;  %v7038_v58 = vmax.f32 %v9127_v63, 0.0  ;;  %v11282_v0 = vld [vmem:[#allocation8 + $0xf50] sm:$0xff] }
 0x349   :  { %v7044_v43 = vmax.f32 %v9097_v11, 0.0  ;;  %v9130_v54 = vadd.f32 %v6047_v18, %v11131_v33  ;;  %6409 = vmatmul.mubr.bf16.gmra.mrb[116].mxu0 %v10882_v34  ;;  %6911 = vmatprep.subr.bf16.mxu1 %v8725_v52  ;;  %v7037_v44 = vmax.f32 %v9096_v36, 0.0  ;;  %v7039_v6 = vmax.f32 %v9128_v57, 0.0  ;;  %v11284_v20 = vld [vmem:[#allocation8 + $0xf70] sm:$0xff] }
 0x34a   :  { %v7046_v23 = vmax.f32 %v9129_v56, 0.0  ;;  %v7045_v17 = vmax.f32 %v9098_v25, 0.0  ;;  %6460 = vmatpush1.bf16.msra.mxu0 %v8722_v35  ;;  %6418 = vmatprep.mubr.bf16.mxu0 %v10934_v8  ;;  %v8739_v52 = vcombine.high %v11257_v13, %v11259_v42  ;;  %v8732_v57 = vcombine.low %v11243_v22, %v11245_v28 }
 0x34b   :  { %v11270_v26 = vpack.c.bf16 %v7044_v43, %v7036_v1  ;;  %v7047_v11 = vmax.f32 %v9130_v54, 0.0  ;;  %6861 = vmatmul.mubr.bf16.gmra.mrb[116].mxu1 %v10882_v34  ;;  %6461 = vmatprep.subr.bf16.mxu0 %v8731_v3  ;;  %v8741_v18 = vcombine.high %v11266_v51, %v11268_v9  ;;  %v8738_v28 = vcombine.low %v11257_v13, %v11259_v42  ;;  %v11295_v43 = vld [vmem:[#allocation8 + $0xf58] sm:$0xff] }
 0x34c   :  { %v11275_v63 = vpack.c.bf16 %v7046_v23, %v7038_v58  ;;  %v11277_v36 = vpack.c.bf16 %v7045_v17, %v7037_v44  ;;  %6870 = vmatprep.mubr.bf16.mxu1 %v10934_v8  ;;  %6912 = vmatpush1.bf16.msra.mxu1 %v8724_v14  ;;  %v5599_v35 = vpop.f32.mrb[76].mxu0  ;;  %v11297_v54 = vld [vmem:[#allocation8 + $0xf78] sm:$0xff]  ;;  %v8747_v17 = vcombine.high %v11282_v0, %v11284_v20 }
 0x34d   :  { %v11286_v34 = vpack.c.bf16 %v7047_v11, %v7039_v6  ;;  %v9099_v3 = vadd.f32 %v5599_v35, %v11117_v59  ;;  %v6051_v56 = vpop.f32.mrb[76].mxu1  ;;  %v5601_v25 = vpop.f32.mrb[77].mxu0  ;;  %6913 = vmatprep.subr.bf16.mxu1 %v8733_v24  ;;  %v8740_v42 = vcombine.low %v11266_v51, %v11268_v9  ;;  %v8746_v11 = vcombine.low %v11282_v0, %v11284_v20  ;;  %v11309_v35 = vld [vmem:[#allocation8 + $0xf90] sm:$0xff]  ;;  %v2582_v0 = vld [vmem:[#allocation8 + $0xf98] sm:$0xff] }
 0x34e   :  { %v9131_v8 = vadd.f32 %v6051_v56, %v11122_v10  ;;  %v9100_v14 = vadd.f32 %v5601_v25, %v11126_v61  ;;  %v6053_v1 = vpop.f32.mrb[77].mxu1  ;;  %6462 = vmatpush1.bf16.msra.mxu0 %v8730_v50  ;;  %v5603_v22 = vpop.f32.mrb[78].mxu0  ;;  %v11311_v56 = vld [vmem:[#allocation8 + $0xfb0] sm:$0xff]  ;;  %v2586_v20 = vld [vmem:[#allocation8 + $0xfb8] sm:$0xff] }
 0x34f   :  { %v9132_v58 = vadd.f32 %v6053_v1, %v11131_v33  ;;  %v9101_v24 = vadd.f32 %v5603_v22, %v11117_v59  ;;  %v6055_v44 = vpop.f32.mrb[78].mxu1  ;;  %v5605_v23 = vpop.f32.mrb[79].mxu0  ;;  %6463 = vmatprep.subr.bf16.mxu0 %v8739_v52  ;;  %v7052_v52 = vmax.f32 %v9099_v3, 0.0 }
 0x350   :  { %v9133_v50 = vadd.f32 %v6055_v44, %v11122_v10  ;;  %6914 = vmatpush1.bf16.msra.mxu1 %v8732_v57  ;;  %v9102_v6 = vadd.f32 %v5605_v23, %v11126_v61  ;;  %v6057_v13 = vpop.f32.mrb[79].mxu1  ;;  %v8749_v57 = vcombine.high %v11295_v43, %v11297_v54  ;;  %v7054_v22 = vmax.f32 %v9131_v8, 0.0 }
 0x351   :  { %v7060_v25 = vmax.f32 %v9101_v24, 0.0  ;;  %v9134_v1 = vadd.f32 %v6057_v13, %v11131_v33  ;;  %6419 = vmatmul.mubr.bf16.gmra.mrb[120].mxu0 %v10926_v62  ;;  %6915 = vmatprep.subr.bf16.mxu1 %v8741_v18  ;;  %v7053_v44 = vmax.f32 %v9100_v14, 0.0  ;;  %v7055_v23 = vmax.f32 %v9132_v58, 0.0  ;;  %v2589_v58 = vld [vmem:[#allocation8 + $0xfd0] sm:$0xff] }
 0x352   :  { %v7062_v51 = vmax.f32 %v9133_v50, 0.0  ;;  %v7061_v9 = vmax.f32 %v9102_v6, 0.0  ;;  %6464 = vmatpush1.bf16.msra.mxu0 %v8738_v28  ;;  %6428 = vmatprep.mubr.bf16.mxu0 %v10960_v46  ;;  %v8755_v18 = vcombine.high %v11309_v35, %v11311_v56  ;;  %v8748_v28 = vcombine.low %v11295_v43, %v11297_v54  ;;  %v2593_v50 = vld [vmem:[#allocation8 + $0xff0] sm:$0xff]  ;;  %v2590_v54 = vld [vmem:[#allocation8 + $0xfd8] sm:$0xff] }
 0x353   :  { %v11318_v3 = vpack.c.bf16 %v7060_v25, %v7052_v52  ;;  %v7063_v24 = vmax.f32 %v9134_v1, 0.0  ;;  %6871 = vmatmul.mubr.bf16.gmra.mrb[120].mxu1 %v10926_v62  ;;  %6465 = vmatprep.subr.bf16.mxu0 %v8747_v17  ;;  %v8757_v25 = vcombine.high %v2582_v0, %v2586_v20  ;;  %v8754_v43 = vcombine.low %v11309_v35, %v11311_v56 }
 0x354   :  { %v11323_v13 = vpack.c.bf16 %v7062_v51, %v7054_v22  ;;  %v11325_v8 = vpack.c.bf16 %v7061_v9, %v7053_v44  ;;  %6880 = vmatprep.mubr.bf16.mxu1 %v10960_v46  ;;  %6916 = vmatpush1.bf16.msra.mxu1 %v8740_v42  ;;  %v5609_v14 = vpop.f32.mrb[80].mxu0  ;;  %v2594_v44 = vld [vmem:[#allocation8 + $0xff8] sm:$0xff]  ;;  %v8762_v60 = vcombine.low %v2589_v58, %v2593_v50 }
 0x355   :  { %11795 = vst [vmem:[#allocation19_spill] sm:$0xff] %v11318_v3  ;;  %v11330_v6 = vpack.c.bf16 %v7063_v24, %v7055_v23  ;;  %v9103_v62 = vadd.f32 %v5609_v14, %v11117_v59  ;;  %v6061_v17 = vpop.f32.mrb[80].mxu1  ;;  %v5611_v52 = vpop.f32.mrb[81].mxu0  ;;  %6917 = vmatprep.subr.bf16.mxu1 %v8749_v57  ;;  %v8763_v57 = vcombine.high %v2589_v58, %v2593_v50 }
 0x356   :  { %11796 = vst [vmem:[#allocation23_spill] sm:$0xff] %v11323_v13  ;;  %v9135_v1 = vadd.f32 %v6061_v17, %v11122_v10  ;;  %v9104_v22 = vadd.f32 %v5611_v52, %v11126_v61  ;;  %v6063_v46 = vpop.f32.mrb[81].mxu1  ;;  %6466 = vmatpush1.bf16.msra.mxu0 %v8746_v11  ;;  %v5613_v42 = vpop.f32.mrb[82].mxu0  ;;  %v8756_v52 = vcombine.low %v2582_v0, %v2586_v20  ;;  %v9644_v20 = vld [vmem:[#allocation11 + $0x40] sm:$0xff]  }
 0x357   :  { %11797 = vst [vmem:[#allocation22_spill] sm:$0xff] %v11330_v6  ;;  %v9136_v51 = vadd.f32 %v6063_v46, %v11131_v33  ;;  %v9105_v9 = vadd.f32 %v5613_v42, %v11117_v59  ;;  %v6065_v23 = vpop.f32.mrb[82].mxu1  ;;  %v5615_v24 = vpop.f32.mrb[83].mxu0  ;;  %6467 = vmatprep.subr.bf16.mxu0 %v8755_v18  ;;  %v7068_v13 = vmax.f32 %v9103_v62, 0.0  ;;  %v8765_v46 = vcombine.high %v2590_v54, %v2594_v44 }
 0x358   :  { %v9137_v14 = vadd.f32 %v6065_v23, %v11122_v10  ;;  %6918 = vmatpush1.bf16.msra.mxu1 %v8748_v28  ;;  %v9106_v17 = vadd.f32 %v5615_v24, %v11126_v61  ;;  %v6067_v11 = vpop.f32.mrb[83].mxu1  ;;  %v7070_v42 = vmax.f32 %v9135_v1, 0.0  ;;  %v7069_v3 = vmax.f32 %v9104_v22, 0.0 }
 0x359   :  { %v7076_v35 = vmax.f32 %v9105_v9, 0.0  ;;  %v9138_v56 = vadd.f32 %v6067_v11, %v11131_v33  ;;  %6429 = vmatmul.mubr.bf16.gmra.mrb[124].mxu0 %v10958_v27  ;;  %6919 = vmatprep.subr.bf16.mxu1 %v8757_v25  ;;  %v7071_v28 = vmax.f32 %v9136_v51, 0.0  ;;  %v8764_v25 = vcombine.low %v2590_v54, %v2594_v44  ;;  %v9645_v51 = vld [vmem:[#allocation11 + $0xc0] sm:$0xff]  }
 0x35a   :  { %v7078_v18 = vmax.f32 %v9137_v14, 0.0  ;;  %v7077_v6 = vmax.f32 %v9106_v17, 0.0  ;;  %6468 = vmatpush1.bf16.msra.mxu0 %v8754_v43  ;;  %6471 = vmatprep.mubr.bf16.mxu0 %v10728_v29  ;;  %v9648_v14 = vld [vmem:[#allocation11 + $0x48] sm:$0xff]  }
 0x35b   :  { %v11344_v23 = vpack.c.bf16 %v7076_v35, %v7068_v13  ;;  %v7079_v0 = vmax.f32 %v9138_v56, 0.0  ;;  %6881 = vmatmul.mubr.bf16.gmra.mrb[124].mxu1 %v10958_v27  ;;  %6469 = vmatprep.subr.bf16.mxu0 %v8763_v57  ;;  %v9647_v35 = vld [vmem:[#allocation11 + $0x80] sm:$0xff]  }
 0x35c   :  { %v11347_v58 = vpack.c.bf16 %v7078_v18, %v7070_v42  ;;  %v11349_v50 = vpack.c.bf16 %v7077_v6, %v7069_v3  ;;  %6920 = vmatpush1.bf16.msra.mxu1 %v8756_v52  ;;  %6923 = vmatprep.mubr.bf16.mxu1 %v10728_v29  ;;  %v5619_v62 = vpop.f32.mrb[84].mxu0  ;;  %v9646_v6 = vld [vmem:[#allocation11] sm:$0xff]   ;;  %v9649_v42 = vld [vmem:[#allocation11 + $0xc8] sm:$0xff]  }
 0x35d   :  { %v11352_v1 = vpack.c.bf16 %v7079_v0, %v7071_v28  ;;  %v9107_v22 = vadd.f32 %v5619_v62, %v11117_v59  ;;  %v6071_v13 = vpop.f32.mrb[84].mxu1  ;;  %v5621_v43 = vpop.f32.mrb[85].mxu0  ;;  %6921 = vmatprep.subr.bf16.mxu1 %v8765_v46  ;;  %v9650_v62 = vld [vmem:[#allocation11 + $0x8] sm:$0xff]  }
 0x35e   :  { %v9139_v27 = vadd.f32 %v6071_v13, %v11122_v10  ;;  %v9108_v9 = vadd.f32 %v5621_v43, %v11126_v61  ;;  %v6073_v24 = vpop.f32.mrb[85].mxu1  ;;  %6470 = vmatpush1.bf16.msra.mxu0 %v8762_v60  ;;  %v5623_v3 = vpop.f32.mrb[86].mxu0 }
 0x35f   :  { %v9140_v29 = vadd.f32 %v6073_v24, %v11131_v33  ;;  %v9109_v54 = vadd.f32 %v5623_v3, %v11117_v59  ;;  %v6075_v44 = vpop.f32.mrb[86].mxu1  ;;  %v5625_v57 = vpop.f32.mrb[87].mxu0  ;;  %8831 = vmatprep.subr.bf16.mxu0 %v9644_v20  ;;  %v7084_v56 = vmax.f32 %v9107_v22, 0.0  ;;  %v9652_v22 = vld [vmem:[#allocation11 + $0x50] sm:$0xff]  }
 0x360   :  { %v9141_v17 = vadd.f32 %v6075_v44, %v11122_v10  ;;  %6922 = vmatpush1.bf16.msra.mxu1 %v8764_v25  ;;  %v9110_v11 = vadd.f32 %v5625_v57, %v11126_v61  ;;  %v6077_v52 = vpop.f32.mrb[87].mxu1  ;;  %v7086_v18 = vmax.f32 %v9139_v27, 0.0  ;;  %v7085_v28 = vmax.f32 %v9108_v9, 0.0  ;;  %v9651_v9 = vld [vmem:[#allocation11 + $0x88] sm:$0xff]   ;;  %v9653_v44 = vld [vmem:[#allocation11 + $0xd0] sm:$0xff]  }
 0x361   :  { %v7092_v46 = vmax.f32 %v9109_v54, 0.0  ;;  %v9142_v60 = vadd.f32 %v6077_v52, %v11131_v33  ;;  %6472 = vmatmul.mubr.bf16.vlgmr.msra.gmra.mrb[96].mxu0 %v10723_v15  ;;  %8895 = vmatprep.subr.bf16.mxu1 %v9645_v51  ;;  %v7087_v25 = vmax.f32 %v9140_v29, 0.0 }
 0x362   :  { %v7094_v0 = vmax.f32 %v9141_v17, 0.0  ;;  %v7093_v20 = vmax.f32 %v9110_v11, 0.0  ;;  %6481 = vmatprep.mubr.bf16.mxu0 %v10772_v4  ;;  %8832 = vmatpush3.bf16.msra.mxu0 %v9646_v6  ;;  %v9654_v11 = vld [vmem:[#allocation11 + $0x10] sm:$0xff]  }
 0x363   :  { %v11364_v13 = vpack.c.bf16 %v7092_v46, %v7084_v56  ;;  %v7095_v43 = vmax.f32 %v9142_v60, 0.0  ;;  %6924 = vmatmul.mubr.bf16.vlgmr.msra.gmra.mrb[96].mxu1 %v10723_v15  ;;  %8833 = vmatprep.subr.bf16.mxu0 %v9648_v14  ;;  %v9656_v46 = vld [vmem:[#allocation11 + $0x58] sm:$0xff]  }
 0x364   :  { %v11367_v24 = vpack.c.bf16 %v7094_v0, %v7086_v18  ;;  %v11369_v51 = vpack.c.bf16 %v7093_v20, %v7085_v28  ;;  %6933 = vmatprep.mubr.bf16.mxu1 %v10772_v4  ;;  %v5629_v27 = vpop.f32.mrb[88].mxu0  ;;  %8896 = vmatpush3.bf16.msra.mxu1 %v9647_v35  ;;  %v9655_v28 = vld [vmem:[#allocation11 + $0x90] sm:$0xff]  }
 0x365   :  { %v11372_v3 = vpack.c.bf16 %v7095_v43, %v7087_v25  ;;  %v9111_v6 = vadd.f32 %v5629_v27, %v11117_v59  ;;  %v6081_v29 = vpop.f32.mrb[88].mxu1  ;;  %v5631_v54 = vpop.f32.mrb[89].mxu0  ;;  %8897 = vmatprep.subr.bf16.mxu1 %v9649_v42  ;;  %v9657_v25 = vld [vmem:[#allocation11 + $0xd8] sm:$0xff]  }
 0x366   :  { %v9143_v15 = vadd.f32 %v6081_v29, %v11122_v10  ;;  %v9112_v57 = vadd.f32 %v5631_v54, %v11126_v61  ;;  %v6083_v14 = vpop.f32.mrb[89].mxu1  ;;  %v5633_v17 = vpop.f32.mrb[90].mxu0  ;;  %8834 = vmatpush3.bf16.msra.mxu0 %v9650_v62  ;;  %v9658_v54 = vld [vmem:[#allocation11 + $0x18] sm:$0xff]  }
 0x367   :  { %v9144_v4 = vadd.f32 %v6083_v14, %v11131_v33  ;;  %v9113_v52 = vadd.f32 %v5633_v17, %v11117_v59  ;;  %v6085_v35 = vpop.f32.mrb[90].mxu1  ;;  %v5635_v56 = vpop.f32.mrb[91].mxu0  ;;  %8835 = vmatprep.subr.bf16.mxu0 %v9652_v22  ;;  %v7100_v0 = vmax.f32 %v9111_v6, 0.0  ;;  %v9660_v6 = vld [vmem:[#allocation11 + $0x60] sm:$0xff]  }
 0x368   :  { %v9145_v60 = vadd.f32 %v6085_v35, %v11122_v10  ;;  %v9114_v42 = vadd.f32 %v5635_v56, %v11126_v61  ;;  %v6087_v18 = vpop.f32.mrb[91].mxu1  ;;  %8898 = vmatpush3.bf16.msra.mxu1 %v9651_v9  ;;  %v7102_v43 = vmax.f32 %v9143_v15, 0.0  ;;  %v7101_v27 = vmax.f32 %v9112_v57, 0.0  ;;  %v9659_v57 = vld [vmem:[#allocation11 + $0x98] sm:$0xff]  }
 0x369   :  { %v7108_v20 = vmax.f32 %v9113_v52, 0.0  ;;  %v9146_v62 = vadd.f32 %v6087_v18, %v11131_v33  ;;  %6482 = vmatmul.mubr.bf16.gmra.mrb[100].mxu0 %v10767_v16  ;;  %8899 = vmatprep.subr.bf16.mxu1 %v9653_v44  ;;  %v7103_v14 = vmax.f32 %v9144_v4, 0.0 }
 0x36a   :  { %v7110_v29 = vmax.f32 %v9145_v60, 0.0  ;;  %v7109_v22 = vmax.f32 %v9114_v42, 0.0  ;;  %6491 = vmatprep.mubr.bf16.mxu0 %v10816_v47  ;;  %8836 = vmatpush3.bf16.msra.mxu0 %v9654_v11  ;;  %v9661_v60 = vld [vmem:[#allocation11 + $0xe0] sm:$0xff]  }
 0x36b   :  { %v11384_v17 = vpack.c.bf16 %v7108_v20, %v7100_v0  ;;  %v7111_v9 = vmax.f32 %v9146_v62, 0.0  ;;  %6934 = vmatmul.mubr.bf16.gmra.mrb[100].mxu1 %v10767_v16  ;;  %8837 = vmatprep.subr.bf16.mxu0 %v9656_v46  ;;  %v9662_v0 = vld [vmem:[#allocation11 + $0x20] sm:$0xff]  }
 0x36c   :  { %v11387_v52 = vpack.c.bf16 %v7110_v29, %v7102_v43  ;;  %v11389_v44 = vpack.c.bf16 %v7109_v22, %v7101_v27  ;;  %6943 = vmatprep.mubr.bf16.mxu1 %v10816_v47  ;;  %v5639_v15 = vpop.f32.mrb[92].mxu0  ;;  %8900 = vmatpush3.bf16.msra.mxu1 %v9655_v28  ;;  %v9664_v43 = vld [vmem:[#allocation11 + $0x68] sm:$0xff]   ;;  %v9663_v22 = vld [vmem:[#allocation11 + $0xa0] sm:$0xff]  }
 0x36d   :  { %v11392_v35 = vpack.c.bf16 %v7111_v9, %v7103_v14  ;;  %v9115_v11 = vadd.f32 %v5639_v15, %v11117_v59  ;;  %v6091_v4 = vpop.f32.mrb[92].mxu1  ;;  %v5641_v56 = vpop.f32.mrb[93].mxu0  ;;  %8901 = vmatprep.subr.bf16.mxu1 %v9657_v25  ;;  %v9665_v15 = vld [vmem:[#allocation11 + $0xe8] sm:$0xff]  }
 0x36e   :  { %v9147_v16 = vadd.f32 %v6091_v4, %v11122_v10  ;;  %v9116_v46 = vadd.f32 %v5641_v56, %v11126_v61  ;;  %v6093_v42 = vpop.f32.mrb[93].mxu1  ;;  %v5643_v18 = vpop.f32.mrb[94].mxu0  ;;  %8838 = vmatpush3.bf16.msra.mxu0 %v9658_v54 }
 0x36f   :  { %v9148_v47 = vadd.f32 %v6093_v42, %v11131_v33  ;;  %v9117_v28 = vadd.f32 %v5643_v18, %v11117_v59  ;;  %v6095_v20 = vpop.f32.mrb[94].mxu1  ;;  %v5645_v62 = vpop.f32.mrb[95].mxu0  ;;  %8839 = vmatprep.subr.bf16.mxu0 %v9660_v6  ;;  %v7116_v14 = vmax.f32 %v9115_v11, 0.0  ;;  %v9669_v18 = vld [vmem:[#allocation11 + $0xf0] sm:$0xff]  }
 0x370   :  { %v9149_v27 = vadd.f32 %v6095_v20, %v11122_v10  ;;  %v9118_v25 = vadd.f32 %v5645_v62, %v11126_v61  ;;  %v6097_v29 = vpop.f32.mrb[95].mxu1  ;;  %8902 = vmatpush3.bf16.msra.mxu1 %v9659_v57  ;;  %v7118_v59 = vmax.f32 %v9147_v16, 0.0  ;;  %v7117_v4 = vmax.f32 %v9116_v46, 0.0  ;;  %v9666_v10 = vld [vmem:[#allocation11 + $0x28] sm:$0xff]   ;;  %v9676_v20 = vld [vmem:[#allocation11 + $0x140] sm:$0xff]   ;;  %v9675_v62 = vld [vmem:[#allocation11 + $0xb8] sm:$0xff]  }
 0x371   :  { %v7124_v9 = vmax.f32 %v9117_v28, 0.0  ;;  %v9150_v54 = vadd.f32 %v6097_v29, %v11131_v33  ;;  %6492 = vmatmul.mubr.bf16.gmra.mrb[104].mxu0 %v10811_v40  ;;  %8903 = vmatprep.subr.bf16.mxu1 %v9661_v60  ;;  %v7119_v61 = vmax.f32 %v9148_v47, 0.0  ;;  %v9668_v33 = vld [vmem:[#allocation11 + $0x70] sm:$0xff]   ;;  %v9667_v16 = vld [vmem:[#allocation11 + $0xa8] sm:$0xff]   ;;  %v9672_v47 = vld [vmem:[#allocation11 + $0x78] sm:$0xff]  }
 0x372   :  { %v7126_v56 = vmax.f32 %v9149_v27, 0.0  ;;  %v7125_v6 = vmax.f32 %v9118_v25, 0.0  ;;  %6501 = vmatprep.mubr.bf16.mxu0 %v10860_v5  ;;  %8840 = vmatpush3.bf16.msra.mxu0 %v9662_v0  ;;  %v9670_v0 = vld [vmem:[#allocation11 + $0x30] sm:$0xff]   ;;  %v9673_v28 = vld [vmem:[#allocation11 + $0xf8] sm:$0xff]   ;;  %v9694_v27 = vld [vmem:[#allocation11 + $0x1e0] sm:$0xff]  }
 0x373   :  { %v11404_v42 = vpack.c.bf16 %v7124_v9, %v7116_v14  ;;  %v7127_v57 = vmax.f32 %v9150_v54, 0.0  ;;  %6944 = vmatmul.mubr.bf16.gmra.mrb[104].mxu1 %v10811_v40  ;;  %8841 = vmatprep.subr.bf16.mxu0 %v9664_v43  ;;  %v9671_v40 = vld [vmem:[#allocation11 + $0xb0] sm:$0xff]   ;;  %v9678_v43 = vld [vmem:[#allocation11 + $0x1c0] sm:$0xff]   ;;  %v9699_v14 = vld [vmem:[#allocation11 + $0x1a8] sm:$0xff]  }
 0x374   :  { %v11407_v11 = vpack.c.bf16 %v7126_v56, %v7118_v59  ;;  %v11409_v60 = vpack.c.bf16 %v7125_v6, %v7117_v4  ;;  %6953 = vmatprep.mubr.bf16.mxu1 %v10860_v5  ;;  %8904 = vmatpush3.bf16.msra.mxu1 %v9663_v22  ;;  %v9674_v5 = vld [vmem:[#allocation11 + $0x38] sm:$0xff]   ;;  %v9693_v25 = vld [vmem:[#allocation11 + $0x120] sm:$0xff]   ;;  %v9702_v9 = vld [vmem:[#allocation11 + $0x1f0] sm:$0xff]  }
 0x375   :  { %v11412_v46 = vpack.c.bf16 %v7127_v57, %v7119_v61  ;;  %8905 = vmatprep.subr.bf16.mxu1 %v9665_v15  ;;  %v9695_v29 = vld [vmem:[#allocation11 + $0x1a0] sm:$0xff]   ;;  %v9701_v54 = vld [vmem:[#allocation11 + $0x130] sm:$0xff]   ;;  %v9706_v59 = vld [vmem:[#allocation11 + $0x1f8] sm:$0xff]  }
 0x376   :  { %8842 = vmatpush3.bf16.msra.mxu0 %v9666_v10  ;;  %v11798_v22 = vld [vmem:[#allocation22_spill] sm:$0xff]  ;;  %v11799_v15 = vld [vmem:[#allocation19_spill] sm:$0xff]  ;;  %v9705_v4 = vld [vmem:[#allocation11 + $0x138] sm:$0xff]  }
 0x377   :  { %8843 = vmatprep.subr.bf16.mxu0 %v9668_v33  ;;  %v9707_v56 = vld [vmem:[#allocation11 + $0x1b8] sm:$0xff]  }
 0x378   :  { %8906 = vmatpush3.bf16.msra.mxu1 %v9667_v16 }
 0x379   :  { %6502 = vmatmul.mubr.bf16.gmra.mrb[108].mxu0 %v10855_v30  ;;  %8907 = vmatprep.subr.bf16.mxu1 %v9669_v18 }
 0x37a   :  { %6511 = vmatprep.mubr.bf16.mxu0 %v10904_v21  ;;  %8844 = vmatpush3.bf16.msra.mxu0 %v9670_v0 }
 0x37b   :  { %6954 = vmatmul.mubr.bf16.gmra.mrb[108].mxu1 %v10855_v30  ;;  %8845 = vmatprep.subr.bf16.mxu0 %v9672_v47  ;;  %v9677_v30 = vld [vmem:[#allocation11 + $0x100] sm:$0xff]  }
 0x37c   :  { %6963 = vmatprep.mubr.bf16.mxu1 %v10904_v21  ;;  %8908 = vmatpush3.bf16.msra.mxu1 %v9671_v40  ;;  %v9679_v21 = vld [vmem:[#allocation11 + $0x180] sm:$0xff]  }
 0x37d   :  { %8909 = vmatprep.subr.bf16.mxu1 %v9673_v28 }
 0x37e   :  { %8846 = vmatpush3.bf16.msra.mxu0 %v9674_v5 }
 0x37f   :  { %8959 = vmatprep.subr.bf16.mxu0 %v9676_v20 }
 0x380   :  { %8910 = vmatpush3.bf16.msra.mxu1 %v9675_v62 }
 0x381   :  { %6512 = vmatmul.mubr.bf16.gmra.mrb[112].mxu0 %v10899_v53  ;;  %9023 = vmatprep.subr.bf16.mxu1 %v9678_v43 }
 0x382   :  { %6521 = vmatprep.mubr.bf16.mxu0 %v10944_v39 }
 0x383   :  { %6964 = vmatmul.mubr.bf16.gmra.mrb[112].mxu1 %v10899_v53  ;;  %v9680_v53 = vld [vmem:[#allocation11 + $0x148] sm:$0xff]  }
 0x384   :  { %6973 = vmatprep.mubr.bf16.mxu1 %v10944_v39  ;;  %v9681_v39 = vld [vmem:[#allocation11 + $0x108] sm:$0xff]  }
 0x389   :  { %6522 = vmatmul.mubr.bf16.gmra.mrb[116].mxu0 %v10939_v19 }
 0x38a   :  { %6531 = vmatprep.mubr.bf16.mxu0 %v10966_v7 }
 0x38b   :  { %6974 = vmatmul.mubr.bf16.gmra.mrb[116].mxu1 %v10939_v19  ;;  %v9682_v19 = vld [vmem:[#allocation11 + $0x1c8] sm:$0xff]  }
 0x38c   :  { %6983 = vmatprep.mubr.bf16.mxu1 %v10966_v7  ;;  %v9683_v7 = vld [vmem:[#allocation11 + $0x188] sm:$0xff]  }
 0x391   :  { %6532 = vmatmul.mubr.bf16.gmra.mrb[120].mxu0 %v10962_v38 }
 0x392   :  { %6541 = vmatprep.mubr.bf16.mxu0 %v10978_v45 }
 0x393   :  { %6984 = vmatmul.mubr.bf16.gmra.mrb[120].mxu1 %v10962_v38  ;;  %v9684_v38 = vld [vmem:[#allocation11 + $0x150] sm:$0xff]  }
 0x394   :  { %6993 = vmatprep.mubr.bf16.mxu1 %v10978_v45  ;;  %v9685_v45 = vld [vmem:[#allocation11 + $0x110] sm:$0xff]  }
 0x399   :  { %6542 = vmatmul.mubr.bf16.gmra.mrb[124].mxu0 %v10974_v31 }
 0x39a   :  { %7746 = vmatprep.mubr.bf16.mxu0 %v11173_v37  ;;  %v9688_v37 = vld [vmem:[#allocation11 + $0x158] sm:$0xff]  }
 0x39b   :  { %6994 = vmatmul.mubr.bf16.gmra.mrb[124].mxu1 %v10974_v31  ;;  %v9686_v31 = vld [vmem:[#allocation11 + $0x1d0] sm:$0xff]  }
 0x39c   :  { %7843 = vmatprep.mubr.bf16.mxu1 %v11182_v49  ;;  %v9690_v49 = vld [vmem:[#allocation11 + $0x1d8] sm:$0xff]  }
 0x3a1   :  { %7747 = vmatmul.mubr.bf16.vlgmr.msra.gmra.mrb[128].mxu0 %v11166_v32  ;;  %v9687_v32 = vld [vmem:[#allocation11 + $0x190] sm:$0xff]  }
 0x3a2   :  { %7754 = vmatprep.mubr.bf16.mxu0 %v11225_v55  ;;  %8960 = vmatpush3.bf16.msra.mxu0 %v9677_v30  ;;  %v9692_v55 = vld [vmem:[#allocation11 + $0x160] sm:$0xff]  }
 0x3a3   :  { %7844 = vmatmul.mubr.bf16.vlgmr.msra.gmra.mrb[128].mxu1 %v11171_v48  ;;  %8961 = vmatprep.subr.bf16.mxu0 %v9680_v53  ;;  %v9689_v48 = vld [vmem:[#allocation11 + $0x118] sm:$0xff]  }
 0x3a4   :  { %7851 = vmatprep.mubr.bf16.mxu1 %v11234_v12  ;;  %9024 = vmatpush3.bf16.msra.mxu1 %v9679_v21  ;;  %v9691_v12 = vld [vmem:[#allocation11 + $0x198] sm:$0xff]  }
 0x3a5   :  { %9025 = vmatprep.subr.bf16.mxu1 %v9682_v19 }
 0x3a6   :  { %8962 = vmatpush3.bf16.msra.mxu0 %v9681_v39 }
 0x3a7   :  { %8963 = vmatprep.subr.bf16.mxu0 %v9684_v38 }
 0x3a8   :  { %9026 = vmatpush3.bf16.msra.mxu1 %v9683_v7 }
 0x3a9   :  { %7755 = vmatmul.mubr.bf16.gmra.mrb[132].mxu0 %v11218_v41  ;;  %9027 = vmatprep.subr.bf16.mxu1 %v9686_v31  ;;  %v9696_v41 = vld [vmem:[#allocation11 + $0x168] sm:$0xff]  }
 0x3aa   :  { %7762 = vmatprep.mubr.bf16.mxu0 %v11277_v36  ;;  %8964 = vmatpush3.bf16.msra.mxu0 %v9685_v45  ;;  %v9698_v36 = vld [vmem:[#allocation11 + $0x1e8] sm:$0xff]  }
 0x3ab   :  { %7852 = vmatmul.mubr.bf16.gmra.mrb[132].mxu1 %v11223_v2  ;;  %8965 = vmatprep.subr.bf16.mxu0 %v9688_v37  ;;  %v9697_v2 = vld [vmem:[#allocation11 + $0x128] sm:$0xff]  }
 0x3ac   :  { %7859 = vmatprep.mubr.bf16.mxu1 %v11286_v34  ;;  %9028 = vmatpush3.bf16.msra.mxu1 %v9687_v32  ;;  %v9700_v34 = vld [vmem:[#allocation11 + $0x170] sm:$0xff]  }
 0x3ad   :  { %9029 = vmatprep.subr.bf16.mxu1 %v9690_v49 }
 0x3ae   :  { %8966 = vmatpush3.bf16.msra.mxu0 %v9689_v48 }
 0x3af   :  { %8967 = vmatprep.subr.bf16.mxu0 %v9692_v55 }
 0x3b0   :  { %9030 = vmatpush3.bf16.msra.mxu1 %v9691_v12 }
 0x3b1   :  { %7763 = vmatmul.mubr.bf16.gmra.mrb[136].mxu0 %v11270_v26  ;;  %9031 = vmatprep.subr.bf16.mxu1 %v9694_v27  ;;  %v9703_v26 = vld [vmem:[#allocation11 + $0x1b0] sm:$0xff]  }
 0x3b2   :  { %7770 = vmatprep.mubr.bf16.mxu0 %v11325_v8  ;;  %8968 = vmatpush3.bf16.msra.mxu0 %v9693_v25  ;;  %v9704_v8 = vld [vmem:[#allocation11 + $0x178] sm:$0xff]  }
 0x3b3   :  { %7860 = vmatmul.mubr.bf16.gmra.mrb[136].mxu1 %v11275_v63  ;;  %8969 = vmatprep.subr.bf16.mxu0 %v9696_v41  ;;  %v11800_v63 = vld [vmem:[#allocation23_spill] sm:$0xff] }
 0x3b4   :  { %7867 = vmatprep.mubr.bf16.mxu1 %v11798_v22  ;;  %9032 = vmatpush3.bf16.msra.mxu1 %v9695_v29 }
 0x3b5   :  { %9033 = vmatprep.subr.bf16.mxu1 %v9698_v36 }
 0x3b6   :  { %8970 = vmatpush3.bf16.msra.mxu0 %v9697_v2 }
 0x3b7   :  { %8971 = vmatprep.subr.bf16.mxu0 %v9700_v34 }
 0x3b8   :  { %9034 = vmatpush3.bf16.msra.mxu1 %v9699_v14 }
 0x3b9   :  { %7771 = vmatmul.mubr.bf16.gmra.mrb[140].mxu0 %v11799_v15  ;;  %9035 = vmatprep.subr.bf16.mxu1 %v9702_v9 }
 0x3ba   :  { %7778 = vmatprep.mubr.bf16.mxu0 %v11349_v50  ;;  %8972 = vmatpush3.bf16.msra.mxu0 %v9701_v54 }
 0x3bb   :  { %7868 = vmatmul.mubr.bf16.gmra.mrb[140].mxu1 %v11800_v63  ;;  %8973 = vmatprep.subr.bf16.mxu0 %v9704_v8 }
 0x3bc   :  { %7875 = vmatprep.mubr.bf16.mxu1 %v11352_v1  ;;  %9036 = vmatpush3.bf16.msra.mxu1 %v9703_v26 }
 0x3bd   :  { %9037 = vmatprep.subr.bf16.mxu1 %v9706_v59 }
 0x3be   :  { %8974 = vmatpush3.bf16.msra.mxu0 %v9705_v4 }
 0x3c0   :  { %9038 = vmatpush3.bf16.msra.mxu1 %v9707_v56 }
 0x3c1   :  { %7779 = vmatmul.mubr.bf16.gmra.mrb[144].mxu0 %v11344_v23  ;;  %v9717_v23 = vld [vmem:[#allocation10] sm:$0xff] }
 0x3c2   :  { %7786 = vmatprep.mubr.bf16.mxu0 %v11369_v51 }
 0x3c3   :  { %7876 = vmatmul.mubr.bf16.gmra.mrb[144].mxu1 %v11347_v58  ;;  %v11801_v58 = vld [vmem:[#allocation18_spill] sm:$0xff] }
 0x3c4   :  { %7883 = vmatprep.mubr.bf16.mxu1 %v11372_v3  ;;  %v11802_v50 = vsub.s32 4, %v11801_v58  ;;  %v11804_v51 = vsub.s32 6, %v11801_v58 }
 0x3c6   :  { %v11466_v1 = vrot.slane %v9717_v23, %v11802_v50  ;;  %v11474_v3 = vrot.slane %v9717_v23, %v11804_v51 }
 0x3c9   :  { %7787 = vmatmul.mubr.bf16.gmra.mrb[148].mxu0 %v11364_v13  ;;  %v11803_v13 = vsub.s32 5, %v11801_v58 }
 0x3ca   :  { %7794 = vmatprep.mubr.bf16.mxu0 %v11389_v44 }
 0x3cb   :  { %7884 = vmatmul.mubr.bf16.gmra.mrb[148].mxu1 %v11367_v24  ;;  %v11470_v24 = vrot.slane %v9717_v23, %v11803_v13 }
 0x3cc   :  { %7891 = vmatprep.mubr.bf16.mxu1 %v11392_v35 }
 0x3d1   :  { %7795 = vmatmul.mubr.bf16.gmra.mrb[152].mxu0 %v11384_v17 }
 0x3d2   :  { %7802 = vmatprep.mubr.bf16.mxu0 %v11409_v60 }
 0x3d3   :  { %7892 = vmatmul.mubr.bf16.gmra.mrb[152].mxu1 %v11387_v52  ;;  %v11805_v52 = vsub.s32 7, %v11801_v58 }
 0x3d4   :  { %7899 = vmatprep.mubr.bf16.mxu1 %v11412_v46 }
 0x3d5   :  { %v11478_v44 = vrot.slane %v9717_v23, %v11805_v52 }
 0x3d9   :  { %7803 = vmatmul.mubr.bf16.gmra.mrb[156].mxu0 %v11404_v42 }
 0x3db   :  { %7900 = vmatmul.mubr.bf16.gmra.mrb[156].mxu1 %v11407_v11 }
 0x434   :  { %v6473_v17 = vpop.f32.mrb[96].mxu0 }
 0x435   :  { %v9151_v35 = vadd.f32 %v6473_v17, %v11466_v1  ;;  %v6475_v6 = vpop.f32.mrb[97].mxu0 }
 0x436   :  { %v6925_v10 = vpop.f32.mrb[96].mxu1  ;;  %v9152_v61 = vadd.f32 %v6475_v6, %v11470_v24  ;;  %v6477_v42 = vpop.f32.mrb[98].mxu0 }
 0x437   :  { %v9183_v57 = vadd.f32 %v6925_v10, %v11474_v3  ;;  %v6927_v33 = vpop.f32.mrb[97].mxu1  ;;  %v9153_v11 = vadd.f32 %v6477_v42, %v11466_v1  ;;  %v6479_v60 = vpop.f32.mrb[99].mxu0  ;;  %v7008_v0 = vmax.f32 %v9151_v35, 0.0 }
 0x438   :  { %v9184_v16 = vadd.f32 %v6927_v33, %v11478_v44  ;;  %v6929_v46 = vpop.f32.mrb[98].mxu1  ;;  %v9154_v18 = vadd.f32 %v6479_v60, %v11470_v24  ;;  %v7009_v5 = vmax.f32 %v9152_v61, 0.0 }
 0x439   :  { %v7016_v47 = vmax.f32 %v9153_v11, 0.0  ;;  %v9185_v40 = vadd.f32 %v6929_v46, %v11474_v3  ;;  %v6931_v28 = vpop.f32.mrb[99].mxu1  ;;  %v7010_v43 = vmax.f32 %v9183_v57, 0.0 }
 0x43a   :  { %v7017_v20 = vmax.f32 %v9154_v18, 0.0  ;;  %v9186_v62 = vadd.f32 %v6931_v28, %v11478_v44  ;;  %v7011_v21 = vmax.f32 %v9184_v16, 0.0 }
 0x43b   :  { %v7136_v30 = vpack.c.bf16 %v7016_v47, %v7008_v0  ;;  %v7018_v53 = vmax.f32 %v9185_v40, 0.0 }
 0x43c   :  { %v7137_v19 = vpack.c.bf16 %v7017_v20, %v7009_v5  ;;  %v7019_v39 = vmax.f32 %v9186_v62, 0.0  ;;  %v6483_v38 = vpop.f32.mrb[100].mxu0 }
 0x43d   :  { %v7138_v7 = vpack.c.bf16 %v7018_v53, %v7010_v43  ;;  %v9155_v31 = vadd.f32 %v6483_v38, %v11466_v1  ;;  %v6485_v45 = vpop.f32.mrb[101].mxu0 }
 0x43e   :  { %v7139_v37 = vpack.c.bf16 %v7019_v39, %v7011_v21  ;;  %v6935_v32 = vpop.f32.mrb[100].mxu1  ;;  %v9156_v49 = vadd.f32 %v6485_v45, %v11470_v24  ;;  %v6487_v48 = vpop.f32.mrb[102].mxu0  ;;  %7940 = vmatprep.mubr.bf16.mxu0 %v7137_v19 }
 0x43f   :  { %v9187_v55 = vadd.f32 %v6935_v32, %v11474_v3  ;;  %v6937_v12 = vpop.f32.mrb[101].mxu1  ;;  %v9157_v27 = vadd.f32 %v6487_v48, %v11466_v1  ;;  %v6489_v25 = vpop.f32.mrb[103].mxu0  ;;  %7941 = vmatmul.mubr.bf16.vlgmr.msra.gmra.mrb[160].mxu0 %v7136_v30  ;;  %v7024_v2 = vmax.f32 %v9155_v31, 0.0 }
 0x440   :  { %v9188_v41 = vadd.f32 %v6937_v12, %v11478_v44  ;;  %v6939_v29 = vpop.f32.mrb[102].mxu1  ;;  %8037 = vmatprep.mubr.bf16.mxu1 %v7139_v37  ;;  %v9158_v36 = vadd.f32 %v6489_v25, %v11470_v24  ;;  %v7025_v9 = vmax.f32 %v9156_v49, 0.0 }
 0x441   :  { %v7032_v34 = vmax.f32 %v9157_v27, 0.0  ;;  %v9189_v22 = vadd.f32 %v6939_v29, %v11474_v3  ;;  %v6941_v14 = vpop.f32.mrb[103].mxu1  ;;  %8038 = vmatmul.mubr.bf16.vlgmr.msra.gmra.mrb[160].mxu1 %v7138_v7  ;;  %v7026_v15 = vmax.f32 %v9187_v55, 0.0 }
 0x442   :  { %v7033_v54 = vmax.f32 %v9158_v36, 0.0  ;;  %v9190_v26 = vadd.f32 %v6941_v14, %v11478_v44  ;;  %v7027_v59 = vmax.f32 %v9188_v41, 0.0 }
 0x443   :  { %v7144_v63 = vpack.c.bf16 %v7032_v34, %v7024_v2  ;;  %v7034_v8 = vmax.f32 %v9189_v22, 0.0 }
 0x444   :  { %v7145_v4 = vpack.c.bf16 %v7033_v54, %v7025_v9  ;;  %v7035_v56 = vmax.f32 %v9190_v26, 0.0  ;;  %v6493_v23 = vpop.f32.mrb[104].mxu0 }
 0x445   :  { %v7146_v58 = vpack.c.bf16 %v7034_v8, %v7026_v15  ;;  %v9159_v50 = vadd.f32 %v6493_v23, %v11466_v1  ;;  %v6495_v13 = vpop.f32.mrb[105].mxu0 }
 0x446   :  { %v7147_v51 = vpack.c.bf16 %v7035_v56, %v7027_v59  ;;  %v6945_v17 = vpop.f32.mrb[104].mxu1  ;;  %v9160_v52 = vadd.f32 %v6495_v13, %v11470_v24  ;;  %v6497_v35 = vpop.f32.mrb[106].mxu0  ;;  %7948 = vmatprep.mubr.bf16.mxu0 %v7145_v4 }
 0x447   :  { %v9191_v6 = vadd.f32 %v6945_v17, %v11474_v3  ;;  %v6947_v10 = vpop.f32.mrb[105].mxu1  ;;  %v9161_v61 = vadd.f32 %v6497_v35, %v11466_v1  ;;  %v6499_v42 = vpop.f32.mrb[107].mxu0  ;;  %7949 = vmatmul.mubr.bf16.gmra.mrb[164].mxu0 %v7144_v63  ;;  %v7040_v60 = vmax.f32 %v9159_v50, 0.0 }
 0x448   :  { %v9192_v57 = vadd.f32 %v6947_v10, %v11478_v44  ;;  %v6949_v33 = vpop.f32.mrb[106].mxu1  ;;  %8045 = vmatprep.mubr.bf16.mxu1 %v7147_v51  ;;  %v9162_v11 = vadd.f32 %v6499_v42, %v11470_v24  ;;  %v7041_v0 = vmax.f32 %v9160_v52, 0.0 }
 0x449   :  { %v7048_v16 = vmax.f32 %v9161_v61, 0.0  ;;  %v9193_v46 = vadd.f32 %v6949_v33, %v11474_v3  ;;  %v6951_v18 = vpop.f32.mrb[107].mxu1  ;;  %8046 = vmatmul.mubr.bf16.gmra.mrb[164].mxu1 %v7146_v58  ;;  %v7042_v28 = vmax.f32 %v9191_v6, 0.0 }
 0x44a   :  { %v7049_v47 = vmax.f32 %v9162_v11, 0.0  ;;  %v9194_v40 = vadd.f32 %v6951_v18, %v11478_v44  ;;  %v7043_v62 = vmax.f32 %v9192_v57, 0.0 }
 0x44b   :  { %v7152_v5 = vpack.c.bf16 %v7048_v16, %v7040_v60  ;;  %v7050_v20 = vmax.f32 %v9193_v46, 0.0 }
 0x44c   :  { %v7153_v43 = vpack.c.bf16 %v7049_v47, %v7041_v0  ;;  %v7051_v30 = vmax.f32 %v9194_v40, 0.0  ;;  %v6503_v53 = vpop.f32.mrb[108].mxu0 }
 0x44d   :  { %v7154_v21 = vpack.c.bf16 %v7050_v20, %v7042_v28  ;;  %v9163_v19 = vadd.f32 %v6503_v53, %v11466_v1  ;;  %v6505_v39 = vpop.f32.mrb[109].mxu0 }
 0x44e   :  { %v7155_v38 = vpack.c.bf16 %v7051_v30, %v7043_v62  ;;  %v6955_v7 = vpop.f32.mrb[108].mxu1  ;;  %v9164_v31 = vadd.f32 %v6505_v39, %v11470_v24  ;;  %v6507_v45 = vpop.f32.mrb[110].mxu0  ;;  %7956 = vmatprep.mubr.bf16.mxu0 %v7153_v43 }
 0x44f   :  { %v9195_v37 = vadd.f32 %v6955_v7, %v11474_v3  ;;  %v6957_v32 = vpop.f32.mrb[109].mxu1  ;;  %v9165_v49 = vadd.f32 %v6507_v45, %v11466_v1  ;;  %v6509_v48 = vpop.f32.mrb[111].mxu0  ;;  %7957 = vmatmul.mubr.bf16.gmra.mrb[168].mxu0 %v7152_v5  ;;  %v7056_v25 = vmax.f32 %v9163_v19, 0.0 }
 0x450   :  { %v9196_v55 = vadd.f32 %v6957_v32, %v11478_v44  ;;  %v6959_v12 = vpop.f32.mrb[110].mxu1  ;;  %8053 = vmatprep.mubr.bf16.mxu1 %v7155_v38  ;;  %v9166_v27 = vadd.f32 %v6509_v48, %v11470_v24  ;;  %v7057_v2 = vmax.f32 %v9164_v31, 0.0 }
 0x451   :  { %v7064_v41 = vmax.f32 %v9165_v49, 0.0  ;;  %v9197_v29 = vadd.f32 %v6959_v12, %v11474_v3  ;;  %v6961_v36 = vpop.f32.mrb[111].mxu1  ;;  %8054 = vmatmul.mubr.bf16.gmra.mrb[168].mxu1 %v7154_v21  ;;  %v7058_v14 = vmax.f32 %v9195_v37, 0.0 }
 0x452   :  { %v7065_v34 = vmax.f32 %v9166_v27, 0.0  ;;  %v9198_v22 = vadd.f32 %v6961_v36, %v11478_v44  ;;  %v7059_v26 = vmax.f32 %v9196_v55, 0.0 }
 0x453   :  { %v7160_v9 = vpack.c.bf16 %v7064_v41, %v7056_v25  ;;  %v7066_v54 = vmax.f32 %v9197_v29, 0.0 }
 0x454   :  { %v7161_v15 = vpack.c.bf16 %v7065_v34, %v7057_v2  ;;  %v7067_v63 = vmax.f32 %v9198_v22, 0.0  ;;  %v6513_v8 = vpop.f32.mrb[112].mxu0 }
 0x455   :  { %v7162_v59 = vpack.c.bf16 %v7066_v54, %v7058_v14  ;;  %v9167_v4 = vadd.f32 %v6513_v8, %v11466_v1  ;;  %v6515_v56 = vpop.f32.mrb[113].mxu0 }
 0x456   :  { %v7163_v23 = vpack.c.bf16 %v7067_v63, %v7059_v26  ;;  %v6965_v58 = vpop.f32.mrb[112].mxu1  ;;  %v9168_v50 = vadd.f32 %v6515_v56, %v11470_v24  ;;  %v6517_v13 = vpop.f32.mrb[114].mxu0  ;;  %7964 = vmatprep.mubr.bf16.mxu0 %v7161_v15 }
 0x457   :  { %v9199_v51 = vadd.f32 %v6965_v58, %v11474_v3  ;;  %v6967_v17 = vpop.f32.mrb[113].mxu1  ;;  %v9169_v52 = vadd.f32 %v6517_v13, %v11466_v1  ;;  %v6519_v35 = vpop.f32.mrb[115].mxu0  ;;  %7965 = vmatmul.mubr.bf16.gmra.mrb[172].mxu0 %v7160_v9  ;;  %v7072_v42 = vmax.f32 %v9167_v4, 0.0 }
 0x458   :  { %v9200_v6 = vadd.f32 %v6967_v17, %v11478_v44  ;;  %v6969_v10 = vpop.f32.mrb[114].mxu1  ;;  %8061 = vmatprep.mubr.bf16.mxu1 %v7163_v23  ;;  %v9170_v61 = vadd.f32 %v6519_v35, %v11470_v24  ;;  %v7073_v60 = vmax.f32 %v9168_v50, 0.0 }
 0x459   :  { %v7080_v57 = vmax.f32 %v9169_v52, 0.0  ;;  %v9201_v33 = vadd.f32 %v6969_v10, %v11474_v3  ;;  %v6971_v11 = vpop.f32.mrb[115].mxu1  ;;  %8062 = vmatmul.mubr.bf16.gmra.mrb[172].mxu1 %v7162_v59  ;;  %v7074_v18 = vmax.f32 %v9199_v51, 0.0 }
 0x45a   :  { %v7081_v16 = vmax.f32 %v9170_v61, 0.0  ;;  %v9202_v46 = vadd.f32 %v6971_v11, %v11478_v44  ;;  %v7075_v40 = vmax.f32 %v9200_v6, 0.0 }
 0x45b   :  { %v7168_v0 = vpack.c.bf16 %v7080_v57, %v7072_v42  ;;  %v7082_v47 = vmax.f32 %v9201_v33, 0.0 }
 0x45c   :  { %v7169_v28 = vpack.c.bf16 %v7081_v16, %v7073_v60  ;;  %v7083_v5 = vmax.f32 %v9202_v46, 0.0  ;;  %v6523_v20 = vpop.f32.mrb[116].mxu0 }
 0x45d   :  { %v7170_v62 = vpack.c.bf16 %v7082_v47, %v7074_v18  ;;  %v9171_v43 = vadd.f32 %v6523_v20, %v11466_v1  ;;  %v6525_v30 = vpop.f32.mrb[117].mxu0 }
 0x45e   :  { %v7171_v53 = vpack.c.bf16 %v7083_v5, %v7075_v40  ;;  %v6975_v21 = vpop.f32.mrb[116].mxu1  ;;  %v9172_v19 = vadd.f32 %v6525_v30, %v11470_v24  ;;  %v6527_v39 = vpop.f32.mrb[118].mxu0  ;;  %7972 = vmatprep.mubr.bf16.mxu0 %v7169_v28 }
 0x45f   :  { %v9203_v38 = vadd.f32 %v6975_v21, %v11474_v3  ;;  %v6977_v7 = vpop.f32.mrb[117].mxu1  ;;  %v9173_v31 = vadd.f32 %v6527_v39, %v11466_v1  ;;  %v6529_v45 = vpop.f32.mrb[119].mxu0  ;;  %7973 = vmatmul.mubr.bf16.gmra.mrb[176].mxu0 %v7168_v0  ;;  %v7088_v48 = vmax.f32 %v9171_v43, 0.0 }
 0x460   :  { %v9204_v37 = vadd.f32 %v6977_v7, %v11478_v44  ;;  %v6979_v32 = vpop.f32.mrb[118].mxu1  ;;  %8069 = vmatprep.mubr.bf16.mxu1 %v7171_v53  ;;  %v9174_v49 = vadd.f32 %v6529_v45, %v11470_v24  ;;  %v7089_v25 = vmax.f32 %v9172_v19, 0.0 }
 0x461   :  { %v7096_v55 = vmax.f32 %v9173_v31, 0.0  ;;  %v9205_v12 = vadd.f32 %v6979_v32, %v11474_v3  ;;  %v6981_v27 = vpop.f32.mrb[119].mxu1  ;;  %8070 = vmatmul.mubr.bf16.gmra.mrb[176].mxu1 %v7170_v62  ;;  %v7090_v36 = vmax.f32 %v9203_v38, 0.0 }
 0x462   :  { %v7097_v41 = vmax.f32 %v9174_v49, 0.0  ;;  %v9206_v29 = vadd.f32 %v6981_v27, %v11478_v44  ;;  %v7091_v22 = vmax.f32 %v9204_v37, 0.0 }
 0x463   :  { %v7176_v2 = vpack.c.bf16 %v7096_v55, %v7088_v48  ;;  %v7098_v34 = vmax.f32 %v9205_v12, 0.0 }
 0x464   :  { %v7177_v14 = vpack.c.bf16 %v7097_v41, %v7089_v25  ;;  %v7099_v9 = vmax.f32 %v9206_v29, 0.0  ;;  %v6533_v54 = vpop.f32.mrb[120].mxu0 }
 0x465   :  { %v7178_v26 = vpack.c.bf16 %v7098_v34, %v7090_v36  ;;  %v9175_v15 = vadd.f32 %v6533_v54, %v11466_v1  ;;  %v6535_v63 = vpop.f32.mrb[121].mxu0 }
 0x466   :  { %v7179_v8 = vpack.c.bf16 %v7099_v9, %v7091_v22  ;;  %v6985_v59 = vpop.f32.mrb[120].mxu1  ;;  %v9176_v4 = vadd.f32 %v6535_v63, %v11470_v24  ;;  %v6537_v56 = vpop.f32.mrb[122].mxu0  ;;  %7980 = vmatprep.mubr.bf16.mxu0 %v7177_v14  ;;  %v11544_v22 = vld [vmem:[#allocation13] ss:$0 sm:$0xff] }
 0x467   :  { %v9207_v23 = vadd.f32 %v6985_v59, %v11474_v3  ;;  %v6987_v58 = vpop.f32.mrb[121].mxu1  ;;  %v9177_v50 = vadd.f32 %v6537_v56, %v11466_v1  ;;  %v6539_v13 = vpop.f32.mrb[123].mxu0  ;;  %7981 = vmatmul.mubr.bf16.gmra.mrb[180].mxu0 %v7176_v2  ;;  %v7104_v35 = vmax.f32 %v9175_v15, 0.0 }
 0x468   :  { %v9208_v51 = vadd.f32 %v6987_v58, %v11478_v44  ;;  %v6989_v17 = vpop.f32.mrb[122].mxu1  ;;  %8077 = vmatprep.mubr.bf16.mxu1 %v7179_v8  ;;  %v9178_v52 = vadd.f32 %v6539_v13, %v11470_v24  ;;  %v7105_v42 = vmax.f32 %v9176_v4, 0.0 }
 0x469   :  { %v7112_v6 = vmax.f32 %v9177_v50, 0.0  ;;  %v9209_v10 = vadd.f32 %v6989_v17, %v11474_v3  ;;  %v6991_v61 = vpop.f32.mrb[123].mxu1  ;;  %8078 = vmatmul.mubr.bf16.gmra.mrb[180].mxu1 %v7178_v26  ;;  %v7106_v11 = vmax.f32 %v9207_v23, 0.0 }
 0x46a   :  { %v7113_v57 = vmax.f32 %v9178_v52, 0.0  ;;  %v9210_v33 = vadd.f32 %v6991_v61, %v11478_v44  ;;  %v7107_v46 = vmax.f32 %v9208_v51, 0.0 }
 0x46b   :  { %v7184_v60 = vpack.c.bf16 %v7112_v6, %v7104_v35  ;;  %v7114_v16 = vmax.f32 %v9209_v10, 0.0 }
 0x46c   :  { %v7185_v18 = vpack.c.bf16 %v7113_v57, %v7105_v42  ;;  %v7115_v0 = vmax.f32 %v9210_v33, 0.0  ;;  %v6543_v47 = vpop.f32.mrb[124].mxu0 }
 0x46d   :  { %v7186_v40 = vpack.c.bf16 %v7114_v16, %v7106_v11  ;;  %v9179_v28 = vadd.f32 %v6543_v47, %v11466_v1  ;;  %v6545_v5 = vpop.f32.mrb[125].mxu0 }
 0x46e   :  { %v7187_v20 = vpack.c.bf16 %v7115_v0, %v7107_v46  ;;  %v6995_v62 = vpop.f32.mrb[124].mxu1  ;;  %v9180_v43 = vadd.f32 %v6545_v5, %v11470_v24  ;;  %v6547_v30 = vpop.f32.mrb[126].mxu0  ;;  %7988 = vmatprep.mubr.bf16.mxu0 %v7185_v18 }
 0x46f   :  { %v9211_v53 = vadd.f32 %v6995_v62, %v11474_v3  ;;  %v6997_v21 = vpop.f32.mrb[125].mxu1  ;;  %v9181_v19 = vadd.f32 %v6547_v30, %v11466_v1  ;;  %v6549_v39 = vpop.f32.mrb[127].mxu0  ;;  %7989 = vmatmul.mubr.bf16.gmra.mrb[184].mxu0 %v7184_v60  ;;  %v7120_v45 = vmax.f32 %v9179_v28, 0.0 }
 0x470   :  { %v9212_v38 = vadd.f32 %v6997_v21, %v11478_v44  ;;  %v6999_v7 = vpop.f32.mrb[126].mxu1  ;;  %8085 = vmatprep.mubr.bf16.mxu1 %v7187_v20  ;;  %v9182_v31 = vadd.f32 %v6549_v39, %v11470_v24  ;;  %v7121_v48 = vmax.f32 %v9180_v43, 0.0 }
 0x471   :  { %v7128_v37 = vmax.f32 %v9181_v19, 0.0  ;;  %v9213_v32 = vadd.f32 %v6999_v7, %v11474_v3  ;;  %v7001_v49 = vpop.f32.mrb[127].mxu1  ;;  %8086 = vmatmul.mubr.bf16.gmra.mrb[184].mxu1 %v7186_v40  ;;  %v7122_v27 = vmax.f32 %v9211_v53, 0.0 }
 0x472   :  { %v7129_v55 = vmax.f32 %v9182_v31, 0.0  ;;  %v9214_v12 = vadd.f32 %v7001_v49, %v11478_v44  ;;  %v7123_v41 = vmax.f32 %v9212_v38, 0.0 }
 0x473   :  { %v7192_v1 = vpack.c.bf16 %v7128_v37, %v7120_v45  ;;  %v7130_v25 = vmax.f32 %v9213_v32, 0.0 }
 0x474   :  { %v7193_v29 = vpack.c.bf16 %v7129_v55, %v7121_v48  ;;  %v7131_v36 = vmax.f32 %v9214_v12, 0.0  ;;  %v8847_v2 = vpop.f32.mrb[128].mxu0 }
 0x475   :  { %v7194_v34 = vpack.c.bf16 %v7130_v25, %v7122_v27  ;;  %v8848_v24 = vpop.f32.mrb[129].mxu0 }
 0x476   :  { %v7195_v14 = vpack.c.bf16 %v7131_v36, %v7123_v41  ;;  %v8911_v9 = vpop.f32.mrb[128].mxu1  ;;  %v8849_v3 = vadd.f32 %v8848_v24, %v8847_v2  ;;  %v8850_v54 = vpop.f32.mrb[130].mxu0  ;;  %7996 = vmatprep.mubr.bf16.mxu0 %v7193_v29 }
 0x477   :  { %v8912_v26 = vpop.f32.mrb[129].mxu1  ;;  %v8851_v15 = vpop.f32.mrb[131].mxu0  ;;  %7997 = vmatmul.mubr.bf16.gmra.mrb[188].mxu0 %v7192_v1 }
 0x478   :  { %v7749_v44 = vadd.f32 %v8849_v3, %v11544_v22  ;;  %v8913_v63 = vadd.f32 %v8912_v26, %v8911_v9  ;;  %v8914_v8 = vpop.f32.mrb[130].mxu1  ;;  %8093 = vmatprep.mubr.bf16.mxu1 %v7195_v14  ;;  %v8852_v59 = vadd.f32 %v8851_v15, %v8850_v54 }
 0x479   :  { %v8915_v4 = vpop.f32.mrb[131].mxu1  ;;  %8094 = vmatmul.mubr.bf16.gmra.mrb[188].mxu1 %v7194_v34 }
 0x47a   :  { %v11547_v56 = vadd.f32 %v8913_v63, %v7749_v44  ;;  %v7752_v23 = vadd.f32 %v8852_v59, %v11544_v22  ;;  %v8916_v58 = vadd.f32 %v8915_v4, %v8914_v8 }
 0x47c   :  { %v11550_v50 = vadd.f32 %v8916_v58, %v7752_v23  ;;  %v8853_v13 = vpop.f32.mrb[132].mxu0 }
 0x47d   :  { %v8854_v51 = vpop.f32.mrb[133].mxu0 }
 0x47e   :  { %v8917_v17 = vpop.f32.mrb[132].mxu1  ;;  %v8855_v52 = vadd.f32 %v8854_v51, %v8853_v13  ;;  %v8856_v35 = vpop.f32.mrb[134].mxu0 }
 0x47f   :  { %v8918_v6 = vpop.f32.mrb[133].mxu1  ;;  %v8857_v10 = vpop.f32.mrb[135].mxu0 }
 0x480   :  { %v7757_v61 = vadd.f32 %v8855_v52, %v11544_v22  ;;  %v8919_v42 = vadd.f32 %v8918_v6, %v8917_v17  ;;  %v8920_v57 = vpop.f32.mrb[134].mxu1  ;;  %v8858_v33 = vadd.f32 %v8857_v10, %v8856_v35 }
 0x481   :  { %v8921_v11 = vpop.f32.mrb[135].mxu1 }
 0x482   :  { %v11553_v60 = vadd.f32 %v8919_v42, %v7757_v61  ;;  %v7760_v16 = vadd.f32 %v8858_v33, %v11544_v22  ;;  %v8922_v46 = vadd.f32 %v8921_v11, %v8920_v57 }
 0x484   :  { %v11556_v18 = vadd.f32 %v8922_v46, %v7760_v16  ;;  %v8859_v0 = vpop.f32.mrb[136].mxu0 }
 0x485   :  { %v8860_v47 = vpop.f32.mrb[137].mxu0 }
 0x486   :  { %v8923_v40 = vpop.f32.mrb[136].mxu1  ;;  %v8861_v28 = vadd.f32 %v8860_v47, %v8859_v0  ;;  %v8862_v5 = vpop.f32.mrb[138].mxu0 }
 0x487   :  { %v8924_v20 = vpop.f32.mrb[137].mxu1  ;;  %v8863_v62 = vpop.f32.mrb[139].mxu0 }
 0x488   :  { %v7765_v43 = vadd.f32 %v8861_v28, %v11544_v22  ;;  %v8925_v30 = vadd.f32 %v8924_v20, %v8923_v40  ;;  %v8926_v53 = vpop.f32.mrb[138].mxu1  ;;  %v8864_v21 = vadd.f32 %v8863_v62, %v8862_v5 }
 0x489   :  { %v8927_v19 = vpop.f32.mrb[139].mxu1 }
 0x48a   :  { %v11559_v39 = vadd.f32 %v8925_v30, %v7765_v43  ;;  %v7768_v38 = vadd.f32 %v8864_v21, %v11544_v22  ;;  %v8928_v7 = vadd.f32 %v8927_v19, %v8926_v53 }
 0x48c   :  { %v11562_v31 = vadd.f32 %v8928_v7, %v7768_v38  ;;  %v8865_v45 = vpop.f32.mrb[140].mxu0 }
 0x48d   :  { %v8866_v37 = vpop.f32.mrb[141].mxu0 }
 0x48e   :  { %v8929_v32 = vpop.f32.mrb[140].mxu1  ;;  %v8867_v49 = vadd.f32 %v8866_v37, %v8865_v45  ;;  %v8868_v48 = vpop.f32.mrb[142].mxu0 }
 0x48f   :  { %v8930_v55 = vpop.f32.mrb[141].mxu1  ;;  %v8869_v12 = vpop.f32.mrb[143].mxu0 }
 0x490   :  { %v7773_v27 = vadd.f32 %v8867_v49, %v11544_v22  ;;  %v8931_v1 = vadd.f32 %v8930_v55, %v8929_v32  ;;  %v8932_v25 = vpop.f32.mrb[142].mxu1  ;;  %v8870_v41 = vadd.f32 %v8869_v12, %v8868_v48 }
 0x491   :  { %v8933_v29 = vpop.f32.mrb[143].mxu1 }
 0x492   :  { %v11565_v36 = vadd.f32 %v8931_v1, %v7773_v27  ;;  %v7776_v2 = vadd.f32 %v8870_v41, %v11544_v22  ;;  %v8934_v34 = vadd.f32 %v8933_v29, %v8932_v25 }
 0x494   :  { %v11568_v24 = vadd.f32 %v8934_v34, %v7776_v2  ;;  %v8871_v14 = vpop.f32.mrb[144].mxu0 }
 0x495   :  { %v8872_v9 = vpop.f32.mrb[145].mxu0 }
 0x496   :  { %v8935_v3 = vpop.f32.mrb[144].mxu1  ;;  %v8873_v54 = vadd.f32 %v8872_v9, %v8871_v14  ;;  %v8874_v26 = vpop.f32.mrb[146].mxu0 }
 0x497   :  { %v8936_v15 = vpop.f32.mrb[145].mxu1  ;;  %v8875_v44 = vpop.f32.mrb[147].mxu0 }
 0x498   :  { %v7781_v63 = vadd.f32 %v8873_v54, %v11544_v22  ;;  %v8937_v8 = vadd.f32 %v8936_v15, %v8935_v3  ;;  %v8938_v59 = vpop.f32.mrb[146].mxu1  ;;  %v8876_v4 = vadd.f32 %v8875_v44, %v8874_v26 }
 0x499   :  { %v8939_v23 = vpop.f32.mrb[147].mxu1 }
 0x49a   :  { %v11571_v58 = vadd.f32 %v8937_v8, %v7781_v63  ;;  %v7784_v13 = vadd.f32 %v8876_v4, %v11544_v22  ;;  %v8940_v51 = vadd.f32 %v8939_v23, %v8938_v59 }
 0x49c   :  { %v11574_v17 = vadd.f32 %v8940_v51, %v7784_v13  ;;  %v8877_v52 = vpop.f32.mrb[148].mxu0 }
 0x49d   :  { %v8878_v35 = vpop.f32.mrb[149].mxu0 }
 0x49e   :  { %v8941_v6 = vpop.f32.mrb[148].mxu1  ;;  %v8879_v10 = vadd.f32 %v8878_v35, %v8877_v52  ;;  %v8880_v61 = vpop.f32.mrb[150].mxu0 }
 0x49f   :  { %v8942_v42 = vpop.f32.mrb[149].mxu1  ;;  %v8881_v57 = vpop.f32.mrb[151].mxu0 }
 0x4a0   :  { %v7789_v33 = vadd.f32 %v8879_v10, %v11544_v22  ;;  %v8943_v11 = vadd.f32 %v8942_v42, %v8941_v6  ;;  %v8944_v16 = vpop.f32.mrb[150].mxu1  ;;  %v8882_v46 = vadd.f32 %v8881_v57, %v8880_v61 }
 0x4a1   :  { %v8945_v0 = vpop.f32.mrb[151].mxu1 }
 0x4a2   :  { %v11577_v47 = vadd.f32 %v8943_v11, %v7789_v33  ;;  %v7792_v40 = vadd.f32 %v8882_v46, %v11544_v22  ;;  %v8946_v28 = vadd.f32 %v8945_v0, %v8944_v16 }
 0x4a4   :  { %v11580_v5 = vadd.f32 %v8946_v28, %v7792_v40  ;;  %v8883_v20 = vpop.f32.mrb[152].mxu0 }
 0x4a5   :  { %v8884_v62 = vpop.f32.mrb[153].mxu0 }
 0x4a6   :  { %v8947_v43 = vpop.f32.mrb[152].mxu1  ;;  %v8885_v30 = vadd.f32 %v8884_v62, %v8883_v20  ;;  %v8886_v53 = vpop.f32.mrb[154].mxu0 }
 0x4a7   :  { %v8948_v21 = vpop.f32.mrb[153].mxu1  ;;  %v8887_v19 = vpop.f32.mrb[155].mxu0 }
 0x4a8   :  { %v7797_v38 = vadd.f32 %v8885_v30, %v11544_v22  ;;  %v8949_v7 = vadd.f32 %v8948_v21, %v8947_v43  ;;  %v8950_v45 = vpop.f32.mrb[154].mxu1  ;;  %v8888_v37 = vadd.f32 %v8887_v19, %v8886_v53 }
 0x4a9   :  { %v8951_v32 = vpop.f32.mrb[155].mxu1 }
 0x4aa   :  { %v11583_v49 = vadd.f32 %v8949_v7, %v7797_v38  ;;  %v7800_v48 = vadd.f32 %v8888_v37, %v11544_v22  ;;  %v8952_v55 = vadd.f32 %v8951_v32, %v8950_v45 }
 0x4ac   :  { %v11586_v12 = vadd.f32 %v8952_v55, %v7800_v48  ;;  %v8889_v27 = vpop.f32.mrb[156].mxu0 }
 0x4ad   :  { %v8890_v1 = vpop.f32.mrb[157].mxu0 }
 0x4ae   :  { %v8953_v25 = vpop.f32.mrb[156].mxu1  ;;  %v8891_v41 = vadd.f32 %v8890_v1, %v8889_v27  ;;  %v8892_v29 = vpop.f32.mrb[158].mxu0 }
 0x4af   :  { %v8954_v2 = vpop.f32.mrb[157].mxu1  ;;  %v8893_v34 = vpop.f32.mrb[159].mxu0 }
 0x4b0   :  { %v7805_v14 = vadd.f32 %v8891_v41, %v11544_v22  ;;  %v8955_v9 = vadd.f32 %v8954_v2, %v8953_v25  ;;  %v8956_v3 = vpop.f32.mrb[158].mxu1  ;;  %v8894_v54 = vadd.f32 %v8893_v34, %v8892_v29 }
 0x4b1   :  { %v8957_v26 = vpop.f32.mrb[159].mxu1 }
 0x4b2   :  { %v11589_v15 = vadd.f32 %v8955_v9, %v7805_v14  ;;  %v7808_v44 = vadd.f32 %v8894_v54, %v11544_v22  ;;  %v8958_v63 = vadd.f32 %v8957_v26, %v8956_v3 }
 0x4b4   :  { %v11592_v8 = vadd.f32 %v8958_v63, %v7808_v44 }
 0x512   :  { %v8975_v59 = vpop.f32.mrb[160].mxu0 }
 0x513   :  { %v8976_v4 = vpop.f32.mrb[161].mxu0 }
 0x514   :  { %v9039_v23 = vpop.f32.mrb[160].mxu1  ;;  %v8977_v13 = vadd.f32 %v8976_v4, %v8975_v59  ;;  %v8978_v51 = vpop.f32.mrb[162].mxu0 }
 0x515   :  { %v9040_v52 = vpop.f32.mrb[161].mxu1  ;;  %v8979_v35 = vpop.f32.mrb[163].mxu0 }
 0x516   :  { %v7943_v6 = vadd.f32 %v8977_v13, %v11547_v56  ;;  %v9041_v10 = vadd.f32 %v9040_v52, %v9039_v23  ;;  %v9042_v61 = vpop.f32.mrb[162].mxu1  ;;  %v8980_v42 = vadd.f32 %v8979_v35, %v8978_v51 }
 0x517   :  { %v9043_v57 = vpop.f32.mrb[163].mxu1 }
 0x518   :  { %v8040_v33 = vadd.f32 %v9041_v10, %v7943_v6  ;;  %v7946_v11 = vadd.f32 %v8980_v42, %v11550_v50  ;;  %v9044_v22 = vadd.f32 %v9043_v57, %v9042_v61 }
 0x51a   :  { %8102 = vst [vmem:[%s11665_s7] sm:$0xff] %v8040_v33  ;;  %v8043_v16 = vadd.f32 %v9044_v22, %v7946_v11  ;;  %v8981_v46 = vpop.f32.mrb[164].mxu0 }
 0x51b   :  { %v8982_v0 = vpop.f32.mrb[165].mxu0 }
 0x51c   :  { %8103 = vst [vmem:[%s11665_s7 + $0x8] sm:$0xff] %v8043_v16  ;;  %v9045_v56 = vpop.f32.mrb[164].mxu1  ;;  %v8983_v40 = vadd.f32 %v8982_v0, %v8981_v46  ;;  %v8984_v28 = vpop.f32.mrb[166].mxu0 }
 0x51d   :  { %v9046_v20 = vpop.f32.mrb[165].mxu1  ;;  %v8985_v62 = vpop.f32.mrb[167].mxu0 }
 0x51e   :  { %v7951_v43 = vadd.f32 %v8983_v40, %v11553_v60  ;;  %v9047_v50 = vadd.f32 %v9046_v20, %v9045_v56  ;;  %v9048_v30 = vpop.f32.mrb[166].mxu1  ;;  %v8986_v53 = vadd.f32 %v8985_v62, %v8984_v28 }
 0x51f   :  { %v9049_v21 = vpop.f32.mrb[167].mxu1 }
 0x520   :  { %v8048_v19 = vadd.f32 %v9047_v50, %v7951_v43  ;;  %v7954_v38 = vadd.f32 %v8986_v53, %v11556_v18  ;;  %v9050_v7 = vadd.f32 %v9049_v21, %v9048_v30 }
 0x522   :  { %8104 = vst [vmem:[%s11665_s7 + $0x10] sm:$0xff] %v8048_v19  ;;  %v8051_v45 = vadd.f32 %v9050_v7, %v7954_v38  ;;  %v8987_v37 = vpop.f32.mrb[168].mxu0 }
 0x523   :  { %v8988_v32 = vpop.f32.mrb[169].mxu0 }
 0x524   :  { %8105 = vst [vmem:[%s11665_s7 + $0x18] sm:$0xff] %v8051_v45  ;;  %v9051_v60 = vpop.f32.mrb[168].mxu1  ;;  %v8989_v48 = vadd.f32 %v8988_v32, %v8987_v37  ;;  %v8990_v55 = vpop.f32.mrb[170].mxu0 }
 0x525   :  { %v9052_v27 = vpop.f32.mrb[169].mxu1  ;;  %v8991_v1 = vpop.f32.mrb[171].mxu0 }
 0x526   :  { %v7959_v25 = vadd.f32 %v8989_v48, %v11559_v39  ;;  %v9053_v18 = vadd.f32 %v9052_v27, %v9051_v60  ;;  %v9054_v41 = vpop.f32.mrb[170].mxu1  ;;  %v8992_v29 = vadd.f32 %v8991_v1, %v8990_v55 }
 0x527   :  { %v9055_v2 = vpop.f32.mrb[171].mxu1 }
 0x528   :  { %v8056_v34 = vadd.f32 %v9053_v18, %v7959_v25  ;;  %v7962_v14 = vadd.f32 %v8992_v29, %v11562_v31  ;;  %v9056_v9 = vadd.f32 %v9055_v2, %v9054_v41 }
 0x52a   :  { %8106 = vst [vmem:[%s11665_s7 + $0x20] sm:$0xff] %v8056_v34  ;;  %v8059_v3 = vadd.f32 %v9056_v9, %v7962_v14  ;;  %v8993_v54 = vpop.f32.mrb[172].mxu0 }
 0x52b   :  { %v8994_v26 = vpop.f32.mrb[173].mxu0 }
 0x52c   :  { %8107 = vst [vmem:[%s11665_s7 + $0x28] sm:$0xff] %v8059_v3  ;;  %v9057_v39 = vpop.f32.mrb[172].mxu1  ;;  %v8995_v44 = vadd.f32 %v8994_v26, %v8993_v54  ;;  %v8996_v63 = vpop.f32.mrb[174].mxu0 }
 0x52d   :  { %v9058_v59 = vpop.f32.mrb[173].mxu1  ;;  %v8997_v4 = vpop.f32.mrb[175].mxu0 }
 0x52e   :  { %v7967_v23 = vadd.f32 %v8995_v44, %v11565_v36  ;;  %v9059_v31 = vadd.f32 %v9058_v59, %v9057_v39  ;;  %v9060_v13 = vpop.f32.mrb[174].mxu1  ;;  %v8998_v51 = vadd.f32 %v8997_v4, %v8996_v63 }
 0x52f   :  { %v9061_v52 = vpop.f32.mrb[175].mxu1 }
 0x530   :  { %v8064_v35 = vadd.f32 %v9059_v31, %v7967_v23  ;;  %v7970_v6 = vadd.f32 %v8998_v51, %v11568_v24  ;;  %v9062_v10 = vadd.f32 %v9061_v52, %v9060_v13 }
 0x532   :  { %8108 = vst [vmem:[%s11665_s7 + $0x30] sm:$0xff] %v8064_v35  ;;  %v8067_v61 = vadd.f32 %v9062_v10, %v7970_v6  ;;  %v8999_v42 = vpop.f32.mrb[176].mxu0 }
 0x533   :  { %v9000_v57 = vpop.f32.mrb[177].mxu0 }
 0x534   :  { %8109 = vst [vmem:[%s11665_s7 + $0x38] sm:$0xff] %v8067_v61  ;;  %v9063_v36 = vpop.f32.mrb[176].mxu1  ;;  %v9001_v33 = vadd.f32 %v9000_v57, %v8999_v42  ;;  %v9002_v11 = vpop.f32.mrb[178].mxu0 }
 0x535   :  { %v9064_v22 = vpop.f32.mrb[177].mxu1  ;;  %v9003_v16 = vpop.f32.mrb[179].mxu0 }
 0x536   :  { %v7975_v46 = vadd.f32 %v9001_v33, %v11571_v58  ;;  %v9065_v24 = vadd.f32 %v9064_v22, %v9063_v36  ;;  %v9066_v0 = vpop.f32.mrb[178].mxu1  ;;  %v9004_v56 = vadd.f32 %v9003_v16, %v9002_v11 }
 0x537   :  { %v9067_v40 = vpop.f32.mrb[179].mxu1 }
 0x538   :  { %v8072_v28 = vadd.f32 %v9065_v24, %v7975_v46  ;;  %v7978_v20 = vadd.f32 %v9004_v56, %v11574_v17  ;;  %v9068_v62 = vadd.f32 %v9067_v40, %v9066_v0 }
 0x53a   :  { %8110 = vst [vmem:[%s11665_s7 + $0x40] sm:$0xff] %v8072_v28  ;;  %v8075_v43 = vadd.f32 %v9068_v62, %v7978_v20  ;;  %v9005_v50 = vpop.f32.mrb[180].mxu0 }
 0x53b   :  { %v9006_v30 = vpop.f32.mrb[181].mxu0 }
 0x53c   :  { %8111 = vst [vmem:[%s11665_s7 + $0x48] sm:$0xff] %v8075_v43  ;;  %v9069_v58 = vpop.f32.mrb[180].mxu1  ;;  %v9007_v53 = vadd.f32 %v9006_v30, %v9005_v50  ;;  %v9008_v21 = vpop.f32.mrb[182].mxu0 }
 0x53d   :  { %v9070_v19 = vpop.f32.mrb[181].mxu1  ;;  %v9009_v38 = vpop.f32.mrb[183].mxu0 }
 0x53e   :  { %v7983_v7 = vadd.f32 %v9007_v53, %v11577_v47  ;;  %v9071_v17 = vadd.f32 %v9070_v19, %v9069_v58  ;;  %v9072_v45 = vpop.f32.mrb[182].mxu1  ;;  %v9010_v37 = vadd.f32 %v9009_v38, %v9008_v21 }
 0x53f   :  { %v9073_v32 = vpop.f32.mrb[183].mxu1 }
 0x540   :  { %v8080_v60 = vadd.f32 %v9071_v17, %v7983_v7  ;;  %v7986_v48 = vadd.f32 %v9010_v37, %v11580_v5  ;;  %v9074_v55 = vadd.f32 %v9073_v32, %v9072_v45 }
 0x542   :  { %8112 = vst [vmem:[%s11665_s7 + $0x50] sm:$0xff] %v8080_v60  ;;  %v8083_v27 = vadd.f32 %v9074_v55, %v7986_v48  ;;  %v9011_v1 = vpop.f32.mrb[184].mxu0 }
 0x543   :  { %v9012_v25 = vpop.f32.mrb[185].mxu0 }
 0x544   :  { %8113 = vst [vmem:[%s11665_s7 + $0x58] sm:$0xff] %v8083_v27  ;;  %v9075_v47 = vpop.f32.mrb[184].mxu1  ;;  %v9013_v18 = vadd.f32 %v9012_v25, %v9011_v1  ;;  %v9014_v41 = vpop.f32.mrb[186].mxu0 }
 0x545   :  { %v9076_v29 = vpop.f32.mrb[185].mxu1  ;;  %v9015_v2 = vpop.f32.mrb[187].mxu0 }
 0x546   :  { %v7991_v34 = vadd.f32 %v9013_v18, %v11583_v49  ;;  %v9077_v5 = vadd.f32 %v9076_v29, %v9075_v47  ;;  %v9078_v14 = vpop.f32.mrb[186].mxu1  ;;  %v9016_v9 = vadd.f32 %v9015_v2, %v9014_v41 }
 0x547   :  { %v9079_v3 = vpop.f32.mrb[187].mxu1 }
 0x548   :  { %v8088_v54 = vadd.f32 %v9077_v5, %v7991_v34  ;;  %v7994_v26 = vadd.f32 %v9016_v9, %v11586_v12  ;;  %v9080_v39 = vadd.f32 %v9079_v3, %v9078_v14 }
 0x54a   :  { %8114 = vst [vmem:[%s11665_s7 + $0x60] sm:$0xff] %v8088_v54  ;;  %v8091_v44 = vadd.f32 %v9080_v39, %v7994_v26  ;;  %v9017_v63 = vpop.f32.mrb[188].mxu0 }
 0x54b   :  { %v9018_v59 = vpop.f32.mrb[189].mxu0 }
 0x54c   :  { %8115 = vst [vmem:[%s11665_s7 + $0x68] sm:$0xff] %v8091_v44  ;;  %v9081_v49 = vpop.f32.mrb[188].mxu1  ;;  %v9019_v4 = vadd.f32 %v9018_v59, %v9017_v63  ;;  %v9020_v23 = vpop.f32.mrb[190].mxu0 }
 0x54d   :  { %v9082_v31 = vpop.f32.mrb[189].mxu1  ;;  %v9021_v13 = vpop.f32.mrb[191].mxu0 }
 0x54e   :  { %v7999_v51 = vadd.f32 %v9019_v4, %v11589_v15  ;;  %v9083_v12 = vadd.f32 %v9082_v31, %v9081_v49  ;;  %v9084_v52 = vpop.f32.mrb[190].mxu1  ;;  %v9022_v35 = vadd.f32 %v9021_v13, %v9020_v23 }
 0x54f   :  { %v9085_v6 = vpop.f32.mrb[191].mxu1 }
 0x550   :  { %v8096_v10 = vadd.f32 %v9083_v12, %v7999_v51  ;;  %v8002_v61 = vadd.f32 %v9022_v35, %v11592_v8  ;;  %v9086_v42 = vadd.f32 %v9085_v6, %v9084_v52 }
 0x552   :  { %8116 = vst [vmem:[%s11665_s7 + $0x70] sm:$0xff] %v8096_v10  ;;  %v8099_v57 = vadd.f32 %v9086_v42, %v8002_v61 }
 0x554   :  { %8117 = vst [vmem:[%s11665_s7 + $0x78] sm:$0xff] %v8099_v57 }
 0x555   :  { %8122 = vsyncpa [#allocation4], 1 }
 0x556   :  { %8123 = vsyncpa [#allocation6], 1 }
 0x557   :  { %8124 = vsyncpa [#allocation9], 1 }
 0x558   :  { %8125 = vsyncpa [#allocation12], 1 }

</bundles_post_ra>
